<compile_context>
chip_gen: v6e
topology: v6e:2x2x1
jax: 0.10.0
libtpu: 0.0.40
codegen_flags: <defaults>
</compile_context>

<pallas_src>
import math
from functools import partial

import jax
import jax.numpy as jnp
from jax import lax
from jax.experimental import pallas as pl
from jax.experimental.pallas import tpu as pltpu


# ----------------------------- per-generation knobs -----------------------------

def _default_knobs():
    """Pick tile sizes / VMEM limit from physical VMEM (v5e/v6e: 128 MiB,
    v7x: 64 MiB).  Falls back to the conservative (v7x-safe) setting."""
    vmem = 64 << 20
    try:
        info = pltpu.get_tpu_info()
        vmem = int(getattr(info, "vmem_capacity_bytes", vmem)) or vmem
    except Exception:
        pass
    if vmem >= (100 << 20):          # v5e / v6e (128 MiB physical VMEM)
        return dict(TM=1024, TN=512, TK=512, TH=1024, TQ=256,
                    VMEM_LIMIT=96 << 20)
    return dict(TM=512, TN=512, TK=512, TH=512, TQ=128,   # v7x / unknown
                VMEM_LIMIT=48 << 20)


_KNOBS = _default_knobs()
TM = _KNOBS["TM"]      # activation row (sublane) tile
TN = _KNOBS["TN"]      # output-feature (lane) tile
TK = _KNOBS["TK"]      # contraction tile for the plain matmul
TH = _KNOBS["TH"]      # FFN hidden (4*C) tile
TQ = _KNOBS["TQ"]      # attention query/kv row tile
_VMEM_LIMIT = _KNOBS["VMEM_LIMIT"]

_EPS = 1e-5            # F.layer_norm eps used by the reference LayerNorm


def _tile(dim, target, align):
    """Largest t <= target with t % align == 0 and dim % t == 0, else full dim."""
    if dim <= target:
        return dim
    t = (target // align) * align
    while t >= align:
        if dim % t == 0:
            return t
        t -= align
    return dim  # TODO(synk): pad non-divisible dims instead of untiled fallback


def _cparams(sem):
    return pltpu.CompilerParams(dimension_semantics=sem,
                                vmem_limit_bytes=_VMEM_LIMIT)


def _ln_f32(x, gamma):
    """LayerNorm (no bias, eps=1e-5) in f32 over the last dim."""
    mean = jnp.mean(x, axis=-1, keepdims=True)
    xc = x - mean
    var = jnp.mean(xc * xc, axis=-1, keepdims=True)
    return xc * lax.rsqrt(var + _EPS) * gamma


# ------------------- fused LayerNorm + matmul (QKV / lm_head) -------------------

def _ln_matmul_kernel(x_ref, g_ref, w_ref, o_ref, xn_ref):
    # LayerNorm computed once per row tile (j == 0), cached in VMEM, reused for
    # every output-column tile.  The j axis is "arbitrary" so the cache is safe.
    @pl.when(pl.program_id(1) == 0)
    def _():
        xn_ref[...] = _ln_f32(x_ref[...].astype(jnp.float32),
                              g_ref[...].astype(jnp.float32)).astype(xn_ref.dtype)

    o_ref[...] = jnp.dot(xn_ref[...], w_ref[...],
                         preferred_element_type=jnp.float32).astype(o_ref.dtype)


def ln_matmul(x2d, gamma, w_t, out_dtype=None):
    """out = LayerNorm(x2d) @ w_t.  Output columns padded to a 128 multiple."""
    M, C = x2d.shape
    _, N = w_t.shape
    n_pad = (-N) % 128
    if n_pad:
        w_t = jnp.pad(w_t, ((0, 0), (0, n_pad)))
    Np = N + n_pad
    tm = _tile(M, TM, 16)
    tn = _tile(Np, TN, 128)
    grid = (M // tm, Np // tn)
    out = pl.pallas_call(
        _ln_matmul_kernel,
        out_shape=jax.ShapeDtypeStruct((M, Np), out_dtype or x2d.dtype),
        grid=grid,
        in_specs=[pl.BlockSpec((tm, C), lambda i, j: (i, 0)),
                  pl.BlockSpec((1, C), lambda i, j: (0, 0)),
                  pl.BlockSpec((C, tn), lambda i, j: (0, j))],
        out_specs=pl.BlockSpec((tm, tn), lambda i, j: (i, j)),
        scratch_shapes=[pltpu.VMEM((tm, C), w_t.dtype)],   # cached LN(x), bf16
        compiler_params=_cparams(("parallel", "arbitrary")),
    )(x2d, gamma.reshape(1, C), w_t)
    return out[:, :N] if n_pad else out


# ------------------ tiled matmul + fused residual add -----------------------

def _matmul_resid_kernel(x_ref, w_ref, r_ref, o_ref, acc_ref):
    @pl.when(pl.program_id(2) == 0)
    def _():
        acc_ref[...] = jnp.zeros_like(acc_ref)

    acc_ref[...] += jnp.dot(x_ref[...], w_ref[...],
                            preferred_element_type=jnp.float32)

    @pl.when(pl.program_id(2) == pl.num_programs(2) - 1)
    def _():
        o_ref[...] = (acc_ref[...] + r_ref[...].astype(jnp.float32)).astype(o_ref.dtype)


def matmul_residual(x2d, w_t, resid):
    """out = resid + x2d @ w_t, tiled over (M, N, K) with f32 accumulation."""
    M, K = x2d.shape
    _, N = w_t.shape
    tm = _tile(M, TM, 16)
    tn = _tile(N, TN, 128)
    tk = _tile(K, TK, 128)
    grid = (M // tm, N // tn, K // tk)
    return pl.pallas_call(
        _matmul_resid_kernel,
        out_shape=jax.ShapeDtypeStruct((M, N), resid.dtype),
        grid=grid,
        in_specs=[pl.BlockSpec((tm, tk), lambda i, j, k: (i, k)),
                  pl.BlockSpec((tk, tn), lambda i, j, k: (k, j)),
                  pl.BlockSpec((tm, tn), lambda i, j, k: (i, j))],
        out_specs=pl.BlockSpec((tm, tn), lambda i, j, k: (i, j)),
        scratch_shapes=[pltpu.VMEM((tm, tn), jnp.float32)],
        compiler_params=_cparams(("parallel", "parallel", "arbitrary")),
    )(x2d, w_t, resid)


# ------------- fused LayerNorm + FFN (exact GELU) + residual kernel ---------------

def _ffn_kernel(x_ref, g_ref, w1_ref, w2_ref, o_ref, xn_ref, acc_ref):
    h = pl.program_id(1)

    @pl.when(h == 0)
    def _():
        xn_ref[...] = _ln_f32(x_ref[...].astype(jnp.float32),
                              g_ref[...].astype(jnp.float32)).astype(xn_ref.dtype)
        acc_ref[...] = jnp.zeros_like(acc_ref)

    mid = jnp.dot(xn_ref[...], w1_ref[...], preferred_element_type=jnp.float32)
    # exact (erf-based) GELU, matching nn.GELU() default
    mid = 0.5 * mid * (1.0 + lax.erf(mid * jnp.float32(1.0 / math.sqrt(2.0))))
    acc_ref[...] += jnp.dot(mid.astype(w2_ref.dtype), w2_ref[...],
                            preferred_element_type=jnp.float32)

    @pl.when(h == pl.num_programs(1) - 1)
    def _():
        o_ref[...] = (acc_ref[...] + x_ref[...].astype(jnp.float32)).astype(o_ref.dtype)


def ffn_residual(x2d, gamma, w1_t, w2_t):
    """out = x + W2(GELU(W1(LayerNorm(x)))), hidden dim tiled, f32 accumulate."""
    M, C = x2d.shape
    _, H4 = w1_t.shape
    tm = _tile(M, TM, 16)
    th = _tile(H4, TH, 128)
    grid = (M // tm, H4 // th)
    return pl.pallas_call(
        _ffn_kernel,
        out_shape=jax.ShapeDtypeStruct((M, C), x2d.dtype),
        grid=grid,
        in_specs=[pl.BlockSpec((tm, C), lambda i, h: (i, 0)),
                  pl.BlockSpec((1, C), lambda i, h: (0, 0)),
                  pl.BlockSpec((C, th), lambda i, h: (0, h)),
                  pl.BlockSpec((th, C), lambda i, h: (h, 0))],
        out_specs=pl.BlockSpec((tm, C), lambda i, h: (i, 0)),
        scratch_shapes=[pltpu.VMEM((tm, C), w1_t.dtype),    # cached LN(x), bf16
                        pltpu.VMEM((tm, C), jnp.float32)],  # f32 accumulator
        compiler_params=_cparams(("parallel", "arbitrary")),
    )(x2d, gamma.reshape(1, C), w1_t, w2_t)


# ---------------------- flash-style causal attention ------------------------

def _flash_attn_kernel(q_ref, k_ref, v_ref, o_ref, m_sc, l_sc, acc_sc, *,
                       nh, dh, tq, tkv):
    qi = pl.program_id(1)
    ki = pl.program_id(2)

    @pl.when(ki == 0)
    def _():
        m_sc[...] = jnp.full_like(m_sc, -jnp.inf)
        l_sc[...] = jnp.zeros_like(l_sc)
        acc_sc[...] = jnp.zeros_like(acc_sc)

    # tq == tkv, so kv tiles with ki > qi are fully masked: compute skipped here
    # and their DMA skipped by the clamped index_map in the wrapper.
    @pl.when(ki <= qi)
    def _():
        scale = jnp.float32(1.0 / math.sqrt(dh))
        # Causal additive bias built once per kv tile from broadcast-shaped
        # iotas; all-zero on sub-diagonal tiles, -1e30 above the diagonal.
        row = qi * tq + lax.broadcasted_iota(jnp.int32, (tq, 1), 0)
        col = ki * tkv + lax.broadcasted_iota(jnp.int32, (1, tkv), 1)
        bias = jnp.where(col <= row, jnp.float32(0.0), jnp.float32(-1e30))

        q = q_ref[0]    # (tq,  C) lane-dense, heads packed along C
        k = k_ref[0]    # (tkv, C)
        v = v_ref[0]    # (tkv, C)
        nt = (((1,), (1,)), ((), ()))   # contract last dims: q @ k^T, no transpose

        for h in range(nh):             # static unroll over heads
            sl = slice(h * dh, (h + 1) * dh)
            s = lax.dot_general(q[:, sl], k[:, sl], nt,
                                preferred_element_type=jnp.float32) * scale + bias
            m_prev = m_sc[h]
            m_new = jnp.maximum(m_prev, jnp.max(s, axis=-1, keepdims=True))
            alpha = jnp.exp(m_prev - m_new)
            p = jnp.exp(s - m_new)
            l_sc[h] = alpha * l_sc[h] + jnp.sum(p, axis=-1, keepdims=True)
            acc_sc[h] = alpha * acc_sc[h] + jnp.dot(
                p.astype(v.dtype), v[:, sl], preferred_element_type=jnp.float32)
            m_sc[h] = m_new

    @pl.when(ki == pl.num_programs(2) - 1)
    def _():
        cols = [acc_sc[h] * pl.reciprocal(l_sc[h], approx=True)
                for h in range(nh)]
        # heads re-packed along C inside the kernel -> lane-dense single store
        o_ref[0] = jnp.concatenate(cols, axis=-1).astype(o_ref.dtype)


def flash_attention(qkv, *, n_head):
    """qkv: (B, T, 3*C) with q|k|v packed along the last axis (heads packed in
    each C slice).  Returns causal self-attention output (B, T, C)."""
    B, T, C3 = qkv.shape
    C = C3 // 3
    dh = C // n_head
    tq = _tile(T, TQ, 16)
    tkv = tq  # equal tiles -> the per-tile causal skip (ki <= qi) is exact
    grid = (B, T // tq, T // tkv)
    kernel = partial(_flash_attn_kernel, nh=n_head, dh=dh, tq=tq, tkv=tkv)

    if C % 128 == 0:
        # q/k/v sliced directly out of the packed array via block indices along
        # the last axis -> no XLA-level split; kv index clamped so causally
        # skipped tiles issue no DMA.
        ins = (qkv, qkv, qkv)
        in_specs = [
            pl.BlockSpec((1, tq, C), lambda b, i, j: (b, i, 0)),
            pl.BlockSpec((1, tkv, C), lambda b, i, j: (b, jnp.minimum(j, i), 1)),
            pl.BlockSpec((1, tkv, C), lambda b, i, j: (b, jnp.minimum(j, i), 2)),
        ]
    else:
        # fallback for C not a multiple of 128: cheap XLA slices, full-dim blocks
        ins = tuple(qkv[:, :, t * C:(t + 1) * C] for t in range(3))
        in_specs = [
            pl.BlockSpec((1, tq, C), lambda b, i, j: (b, i, 0)),
            pl.BlockSpec((1, tkv, C), lambda b, i, j: (b, jnp.minimum(j, i), 0)),
            pl.BlockSpec((1, tkv, C), lambda b, i, j: (b, jnp.minimum(j, i), 0)),
        ]

    return pl.pallas_call(
        kernel,
        out_shape=jax.ShapeDtypeStruct((B, T, C), qkv.dtype),
        grid=grid,
        in_specs=in_specs,
        out_specs=pl.BlockSpec((1, tq, C), lambda b, i, j: (b, i, 0)),
        scratch_shapes=[pltpu.VMEM((n_head, tq, 1), jnp.float32),   # running max
                        pltpu.VMEM((n_head, tq, 1), jnp.float32),   # running sum
                        pltpu.VMEM((n_head, tq, dh), jnp.float32)], # output acc
        compiler_params=_cparams(("parallel", "parallel", "arbitrary")),
    )(*ins)


# ----------------------------- model (glue) -----------------------------

def init_params(key, *, vocab_size, block_size, n_layer, n_head, n_embd,
                dtype=jnp.bfloat16):
    C = n_embd
    keys = iter(jax.random.split(key, 4 + 4 * n_layer))

    def w(shape, scale=0.02):
        return (jax.random.normal(next(keys), shape, jnp.float32) * scale).astype(dtype)

    params = {
        "tok_emb": w((vocab_size, C)),
        "pos_emb": w((block_size, C)),
        "lnf_w": jnp.ones((C,), jnp.float32),
        "wout": w((C, vocab_size)),           # pre-transposed: (in, out)
        "layers": [],
    }
    for _ in range(n_layer):
        params["layers"].append({
            "ln1_w": jnp.ones((C,), jnp.float32),
            "ln2_w": jnp.ones((C,), jnp.float32),
            "wqkv": w((C, 3 * C)),            # q|k|v fused along the output dim
            "wo": w((C, C)),
            "w1": w((C, 4 * C)),
            "w2": w((4 * C, C)),
        })
    return params


def transformer_forward(params, idx, *, n_head, n_embd, vocab_size):
    """dropout = 0.0 -> identity; targets=None path -> (logits, None)."""
    B, T = idx.shape
    C = n_embd

    # token + position embedding (data-dependent gather kept in XLA)
    tok = jnp.take(params["tok_emb"], idx.astype(jnp.int32), axis=0)   # (B, T, C)
    pos = params["pos_emb"][:T]
    x2 = (tok + pos[None, :, :]).reshape(B * T, C)

    for lp in params["layers"]:
        # fused LayerNorm + packed QKV projection (one weight stream, one output)
        qkv = ln_matmul(x2, lp["ln1_w"], lp["wqkv"])                   # (M, 3C)
        # flash attention on the packed (B, T, 3C) array; head split/merge and
        # q/k/v selection happen inside the kernel (no XLA transposes/splits).
        y = flash_attention(qkv.reshape(B, T, 3 * C), n_head=n_head)  # (B, T, C)
        # output projection with the residual add fused into the kernel
        x2 = matmul_residual(y.reshape(B * T, C), lp["wo"], x2)
        # fused LayerNorm + FFN (exact GELU between matmuls) + residual
        x2 = ffn_residual(x2, lp["ln2_w"], lp["w1"], lp["w2"])

    # final LayerNorm fused into the lm_head matmul; logits in f32
    logits = ln_matmul(x2, params["lnf_w"], params["wout"], out_dtype=jnp.float32)
    return logits.reshape(B, T, vocab_size), None
    # TODO(synk): cross-entropy loss path (targets is not None) not implemented.
    # TODO(synk): bias=True variants (projection / LayerNorm biases) not implemented
    #             (the reference config uses bias=False, so none are needed here).


# ----------------------------- main -----------------------------

if __name__ == "__main__":
    cfg = dict(vocab_size=128, block_size=32, n_layer=2, n_head=4, n_embd=128)

    key = jax.random.PRNGKey(0)
    pkey, ikey = jax.random.split(key)
    params = init_params(pkey, **cfg)

    B, T = 2, 16
    idx = jax.random.randint(ikey, (B, T), 0, cfg["vocab_size"], dtype=jnp.int32)

    fwd = jax.jit(partial(transformer_forward, n_head=cfg["n_head"],
                          n_embd=cfg["n_embd"], vocab_size=cfg["vocab_size"]))
    logits, loss = fwd(params, idx)
    logits = jax.block_until_ready(logits)

    assert logits.shape == (B, T, cfg["vocab_size"])
    assert loss is None
    assert bool(jnp.all(jnp.isfinite(logits)))
    print("KERNEL_OK")
</pallas_src>

<mosaic_0001>
module attributes {stable_mosaic.version = 11 : i64} {
  func.func @_matmul_resid_kernel(%arg0: i32, %arg1: i32, %arg2: i32, %arg3: memref<32x128xbf16, #tpu.memory_space<vmem>>, %arg4: memref<128x128xbf16, #tpu.memory_space<vmem>>, %arg5: memref<32x128xbf16, #tpu.memory_space<vmem>>, %arg6: memref<32x128xbf16, #tpu.memory_space<vmem>>, %arg7: memref<32x128xf32, #tpu.memory_space<vmem>>) attributes {dimension_semantics = [#tpu.dimension_semantics<parallel>, #tpu.dimension_semantics<parallel>, #tpu.dimension_semantics<arbitrary>], iteration_bounds = array<i64: 1, 1, 1>, scalar_prefetch = 0 : i64, scratch_operands = 1 : i64, tpu.core_type = #tpu.core_type<tc>, window_params = [{transform_indices = @transform_0, window_bounds = array<i64: 32, 128>}, {transform_indices = @transform_1, window_bounds = array<i64: 128, 128>}, {transform_indices = @transform_2, window_bounds = array<i64: 32, 128>}, {transform_indices = @transform_3, window_bounds = array<i64: 32, 128>}]} {
    %c0_i32 = arith.constant 0 : i32
    %0 = arith.cmpi eq, %arg2, %c0_i32 : i32
    %1 = arith.extui %0 : i1 to i32
    %c0_i32_0 = arith.constant 0 : i32
    %2 = arith.cmpi ne, %1, %c0_i32_0 : i32
    scf.if %2 {
      %cst_10 = arith.constant 0.000000e+00 : f32
      %12 = vector.broadcast %cst_10 : f32 to vector<32x128xf32>
      %c0_11 = arith.constant 0 : index
      %c0_12 = arith.constant 0 : index
      %13 = vector.load %arg7[%c0_11, %c0_12] : memref<32x128xf32, #tpu.memory_space<vmem>>, vector<32x128xf32>
      tpu.vector_store %arg7[%c0_11, %c0_12], %12 {strides = array<i32>} : memref<32x128xf32, #tpu.memory_space<vmem>>, vector<32x128xf32>,
    } else {
    }
    %c0 = arith.constant 0 : index
    %c0_1 = arith.constant 0 : index
    %3 = vector.load %arg7[%c0, %c0_1] : memref<32x128xf32, #tpu.memory_space<vmem>>, vector<32x128xf32>
    %c0_2 = arith.constant 0 : index
    %c0_3 = arith.constant 0 : index
    %4 = vector.load %arg3[%c0_2, %c0_3] : memref<32x128xbf16, #tpu.memory_space<vmem>>, vector<32x128xbf16>
    %c0_4 = arith.constant 0 : index
    %c0_5 = arith.constant 0 : index
    %5 = vector.load %arg4[%c0_4, %c0_5] : memref<128x128xbf16, #tpu.memory_space<vmem>>, vector<128x128xbf16>
    %cst = arith.constant dense<0.000000e+00> : vector<32x128xf32>
    %6 = tpu.matmul %4, %5, %cst {dimension_numbers = #tpu.dot_dimension_numbers<[1], [0], [0], [1], [0, 0, 1, 1], [], []>} : vector<32x128xbf16>, vector<128x128xbf16>, vector<32x128xf32> -> vector<32x128xf32>
    %7 = arith.addf %3, %6 : vector<32x128xf32>
    %c0_6 = arith.constant 0 : index
    %c0_7 = arith.constant 0 : index
    %8 = vector.load %arg7[%c0_6, %c0_7] : memref<32x128xf32, #tpu.memory_space<vmem>>, vector<32x128xf32>
    tpu.vector_store %arg7[%c0_6, %c0_7], %7 {strides = array<i32>} : memref<32x128xf32, #tpu.memory_space<vmem>>, vector<32x128xf32>,
    %c0_i32_8 = arith.constant 0 : i32
    %9 = arith.cmpi eq, %arg2, %c0_i32_8 : i32
    %10 = arith.extui %9 : i1 to i32
    %c0_i32_9 = arith.constant 0 : i32
    %11 = arith.cmpi ne, %10, %c0_i32_9 : i32
    scf.if %11 {
      %c0_10 = arith.constant 0 : index
      %c0_11 = arith.constant 0 : index
      %12 = vector.load %arg7[%c0_10, %c0_11] : memref<32x128xf32, #tpu.memory_space<vmem>>, vector<32x128xf32>
      %c0_12 = arith.constant 0 : index
      %c0_13 = arith.constant 0 : index
      %13 = vector.load %arg5[%c0_12, %c0_13] : memref<32x128xbf16, #tpu.memory_space<vmem>>, vector<32x128xbf16>
      %14 = arith.extf %13 : vector<32x128xbf16> to vector<32x128xf32>
      %15 = arith.addf %12, %14 : vector<32x128xf32>
      %16 = arith.truncf %15 : vector<32x128xf32> to vector<32x128xbf16>
      %c0_14 = arith.constant 0 : index
      %c0_15 = arith.constant 0 : index
      %17 = vector.load %arg6[%c0_14, %c0_15] : memref<32x128xbf16, #tpu.memory_space<vmem>>, vector<32x128xbf16>
      tpu.vector_store %arg6[%c0_14, %c0_15], %16 {strides = array<i32>} : memref<32x128xbf16, #tpu.memory_space<vmem>>, vector<32x128xbf16>,
    } else {
    }
    return
  }
  func.func @transform_0(%arg0: i32, %arg1: i32, %arg2: i32) -> (i32, i32) {
    %c0_i32 = arith.constant 0 : i32
    return %arg0, %arg2 : i32, i32
  }
  func.func @transform_1(%arg0: i32, %arg1: i32, %arg2: i32) -> (i32, i32) {
    %c0_i32 = arith.constant 0 : i32
    return %arg2, %arg1 : i32, i32
  }
  func.func @transform_2(%arg0: i32, %arg1: i32, %arg2: i32) -> (i32, i32) {
    %c0_i32 = arith.constant 0 : i32
    return %arg0, %arg1 : i32, i32
  }
  func.func @transform_3(%arg0: i32, %arg1: i32, %arg2: i32) -> (i32, i32) {
    %c0_i32 = arith.constant 0 : i32
    return %arg0, %arg1 : i32, i32
  }
}

module attributes {stable_mosaic.version = 11 : i64} {
  func.func @_ln_matmul_kernel(%arg0: i32, %arg1: i32, %arg2: memref<32x128xbf16, #tpu.memory_space<vmem>>, %arg3: memref<1x128xf32, #tpu.memory_space<vmem>>, %arg4: memref<128x384xbf16, #tpu.memory_space<vmem>>, %arg5: memref<32x384xbf16, #tpu.memory_space<vmem>>, %arg6: memref<32x128xbf16, #tpu.memory_space<vmem>>) attributes {dimension_semantics = [#tpu.dimension_semantics<parallel>, #tpu.dimension_semantics<arbitrary>], iteration_bounds = array<i64: 1, 1>, scalar_prefetch = 0 : i64, scratch_operands = 1 : i64, tpu.core_type = #tpu.core_type<tc>, window_params = [{transform_indices = @transform_0, window_bounds = array<i64: 32, 128>}, {pipeline_mode = #tpu.pipeline_mode<synchronous>, transform_indices = @transform_1, window_bounds = array<i64: 1, 128>}, {transform_indices = @transform_2, window_bounds = array<i64: 128, 384>}, {transform_indices = @transform_3, window_bounds = array<i64: 32, 384>}]} {
    %c0_i32 = arith.constant 0 : i32
    %0 = arith.cmpi eq, %arg1, %c0_i32 : i32
    %1 = arith.extui %0 : i1 to i32
    %c0_i32_0 = arith.constant 0 : i32
    %2 = arith.cmpi ne, %1, %c0_i32_0 : i32
    scf.if %2 {
      %c0_6 = arith.constant 0 : index
      %c0_7 = arith.constant 0 : index
      %8 = vector.load %arg2[%c0_6, %c0_7] : memref<32x128xbf16, #tpu.memory_space<vmem>>, vector<32x128xbf16>
      %9 = arith.extf %8 : vector<32x128xbf16> to vector<32x128xf32>
      %c0_8 = arith.constant 0 : index
      %c0_9 = arith.constant 0 : index
      %10 = vector.load %arg3[%c0_8, %c0_9] : memref<1x128xf32, #tpu.memory_space<vmem>>, vector<1x128xf32>
      %cst_10 = arith.constant dense<0.000000e+00> : vector<32xf32>
      %11 = vector.multi_reduction <add>, %9, %cst_10 [1] : vector<32x128xf32> to vector<32xf32>
      %12 = vector.shape_cast %11 : vector<32xf32> to vector<32x1xf32>
      %cst_11 = arith.constant 1.280000e+02 : f32
      %13 = vector.broadcast %cst_11 : f32 to vector<32x1xf32>
      %14 = arith.divf %12, %13 : vector<32x1xf32>
      %15 = vector.broadcast %14 : vector<32x1xf32> to vector<32x128xf32>
      %16 = arith.subf %9, %15 : vector<32x128xf32>
      %17 = arith.mulf %16, %16 : vector<32x128xf32>
      %cst_12 = arith.constant dense<0.000000e+00> : vector<32xf32>
      %18 = vector.multi_reduction <add>, %17, %cst_12 [1] : vector<32x128xf32> to vector<32xf32>
      %19 = vector.shape_cast %18 : vector<32xf32> to vector<32x1xf32>
      %cst_13 = arith.constant 1.280000e+02 : f32
      %20 = vector.broadcast %cst_13 : f32 to vector<32x1xf32>
      %21 = arith.divf %19, %20 : vector<32x1xf32>
      %cst_14 = arith.constant 9.99999974E-6 : f32
      %22 = vector.broadcast %cst_14 : f32 to vector<32x1xf32>
      %23 = arith.addf %21, %22 : vector<32x1xf32>
      %24 = math.rsqrt %23 : vector<32x1xf32>
      %25 = vector.broadcast %24 : vector<32x1xf32> to vector<32x128xf32>
      %26 = arith.mulf %16, %25 : vector<32x128xf32>
      %27 = vector.broadcast %10 : vector<1x128xf32> to vector<32x128xf32>
      %28 = arith.mulf %26, %27 : vector<32x128xf32>
      %29 = arith.truncf %28 : vector<32x128xf32> to vector<32x128xbf16>
      %c0_15 = arith.constant 0 : index
      %c0_16 = arith.constant 0 : index
      %30 = vector.load %arg6[%c0_15, %c0_16] : memref<32x128xbf16, #tpu.memory_space<vmem>>, vector<32x128xbf16>
      tpu.vector_store %arg6[%c0_15, %c0_16], %29 {strides = array<i32>} : memref<32x128xbf16, #tpu.memory_space<vmem>>, vector<32x128xbf16>,
    } else {
    }
    %c0 = arith.constant 0 : index
    %c0_1 = arith.constant 0 : index
    %3 = vector.load %arg6[%c0, %c0_1] : memref<32x128xbf16, #tpu.memory_space<vmem>>, vector<32x128xbf16>
    %c0_2 = arith.constant 0 : index
    %c0_3 = arith.constant 0 : index
    %4 = vector.load %arg4[%c0_2, %c0_3] : memref<128x384xbf16, #tpu.memory_space<vmem>>, vector<128x384xbf16>
    %cst = arith.constant dense<0.000000e+00> : vector<32x384xf32>
    %5 = tpu.matmul %3, %4, %cst {dimension_numbers = #tpu.dot_dimension_numbers<[1], [0], [0], [1], [0, 0, 1, 1], [], []>} : vector<32x128xbf16>, vector<128x384xbf16>, vector<32x384xf32> -> vector<32x384xf32>
    %6 = arith.truncf %5 : vector<32x384xf32> to vector<32x384xbf16>
    %c0_4 = arith.constant 0 : index
    %c0_5 = arith.constant 0 : index
    %7 = vector.load %arg5[%c0_4, %c0_5] : memref<32x384xbf16, #tpu.memory_space<vmem>>, vector<32x384xbf16>
    tpu.vector_store %arg5[%c0_4, %c0_5], %6 {strides = array<i32>} : memref<32x384xbf16, #tpu.memory_space<vmem>>, vector<32x384xbf16>,
    return
  }
  func.func @transform_0(%arg0: i32, %arg1: i32) -> (i32, i32) {
    %c0_i32 = arith.constant 0 : i32
    %c0_i32_0 = arith.constant 0 : i32
    return %arg0, %c0_i32 : i32, i32
  }
  func.func @transform_1(%arg0: i32, %arg1: i32) -> (i32, i32) {
    %c0_i32 = arith.constant 0 : i32
    %c0_i32_0 = arith.constant 0 : i32
    %c0_i32_1 = arith.constant 0 : i32
    return %c0_i32, %c0_i32_0 : i32, i32
  }
  func.func @transform_2(%arg0: i32, %arg1: i32) -> (i32, i32) {
    %c0_i32 = arith.constant 0 : i32
    %c0_i32_0 = arith.constant 0 : i32
    return %c0_i32, %arg1 : i32, i32
  }
  func.func @transform_3(%arg0: i32, %arg1: i32) -> (i32, i32) {
    %c0_i32 = arith.constant 0 : i32
    return %arg0, %arg1 : i32, i32
  }
}

module attributes {stable_mosaic.version = 11 : i64} {
  func.func @_ffn_kernel(%arg0: i32, %arg1: i32, %arg2: memref<32x128xbf16, #tpu.memory_space<vmem>>, %arg3: memref<1x128xf32, #tpu.memory_space<vmem>>, %arg4: memref<128x512xbf16, #tpu.memory_space<vmem>>, %arg5: memref<512x128xbf16, #tpu.memory_space<vmem>>, %arg6: memref<32x128xbf16, #tpu.memory_space<vmem>>, %arg7: memref<32x128xbf16, #tpu.memory_space<vmem>>, %arg8: memref<32x128xf32, #tpu.memory_space<vmem>>) attributes {dimension_semantics = [#tpu.dimension_semantics<parallel>, #tpu.dimension_semantics<arbitrary>], iteration_bounds = array<i64: 1, 1>, scalar_prefetch = 0 : i64, scratch_operands = 2 : i64, tpu.core_type = #tpu.core_type<tc>, window_params = [{transform_indices = @transform_0, window_bounds = array<i64: 32, 128>}, {pipeline_mode = #tpu.pipeline_mode<synchronous>, transform_indices = @transform_1, window_bounds = array<i64: 1, 128>}, {transform_indices = @transform_2, window_bounds = array<i64: 128, 512>}, {transform_indices = @transform_3, window_bounds = array<i64: 512, 128>}, {transform_indices = @transform_4, window_bounds = array<i64: 32, 128>}]} {
    %c0_i32 = arith.constant 0 : i32
    %0 = arith.cmpi eq, %arg1, %c0_i32 : i32
    %1 = arith.extui %0 : i1 to i32
    %c0_i32_0 = arith.constant 0 : i32
    %2 = arith.cmpi ne, %1, %c0_i32_0 : i32
    scf.if %2 {
      %c0_16 = arith.constant 0 : index
      %c0_17 = arith.constant 0 : index
      %23 = vector.load %arg2[%c0_16, %c0_17] : memref<32x128xbf16, #tpu.memory_space<vmem>>, vector<32x128xbf16>
      %24 = arith.extf %23 : vector<32x128xbf16> to vector<32x128xf32>
      %c0_18 = arith.constant 0 : index
      %c0_19 = arith.constant 0 : index
      %25 = vector.load %arg3[%c0_18, %c0_19] : memref<1x128xf32, #tpu.memory_space<vmem>>, vector<1x128xf32>
      %cst_20 = arith.constant dense<0.000000e+00> : vector<32xf32>
      %26 = vector.multi_reduction <add>, %24, %cst_20 [1] : vector<32x128xf32> to vector<32xf32>
      %27 = vector.shape_cast %26 : vector<32xf32> to vector<32x1xf32>
      %cst_21 = arith.constant 1.280000e+02 : f32
      %28 = vector.broadcast %cst_21 : f32 to vector<32x1xf32>
      %29 = arith.divf %27, %28 : vector<32x1xf32>
      %30 = vector.broadcast %29 : vector<32x1xf32> to vector<32x128xf32>
      %31 = arith.subf %24, %30 : vector<32x128xf32>
      %32 = arith.mulf %31, %31 : vector<32x128xf32>
      %cst_22 = arith.constant dense<0.000000e+00> : vector<32xf32>
      %33 = vector.multi_reduction <add>, %32, %cst_22 [1] : vector<32x128xf32> to vector<32xf32>
      %34 = vector.shape_cast %33 : vector<32xf32> to vector<32x1xf32>
      %cst_23 = arith.constant 1.280000e+02 : f32
      %35 = vector.broadcast %cst_23 : f32 to vector<32x1xf32>
      %36 = arith.divf %34, %35 : vector<32x1xf32>
      %cst_24 = arith.constant 9.99999974E-6 : f32
      %37 = vector.broadcast %cst_24 : f32 to vector<32x1xf32>
      %38 = arith.addf %36, %37 : vector<32x1xf32>
      %39 = math.rsqrt %38 : vector<32x1xf32>
      %40 = vector.broadcast %39 : vector<32x1xf32> to vector<32x128xf32>
      %41 = arith.mulf %31, %40 : vector<32x128xf32>
      %42 = vector.broadcast %25 : vector<1x128xf32> to vector<32x128xf32>
      %43 = arith.mulf %41, %42 : vector<32x128xf32>
      %44 = arith.truncf %43 : vector<32x128xf32> to vector<32x128xbf16>
      %c0_25 = arith.constant 0 : index
      %c0_26 = arith.constant 0 : index
      %45 = vector.load %arg7[%c0_25, %c0_26] : memref<32x128xbf16, #tpu.memory_space<vmem>>, vector<32x128xbf16>
      tpu.vector_store %arg7[%c0_25, %c0_26], %44 {strides = array<i32>} : memref<32x128xbf16, #tpu.memory_space<vmem>>, vector<32x128xbf16>,
      %cst_27 = arith.constant 0.000000e+00 : f32
      %46 = vector.broadcast %cst_27 : f32 to vector<32x128xf32>
      %c0_28 = arith.constant 0 : index
      %c0_29 = arith.constant 0 : index
      %47 = vector.load %arg8[%c0_28, %c0_29] : memref<32x128xf32, #tpu.memory_space<vmem>>, vector<32x128xf32>
      tpu.vector_store %arg8[%c0_28, %c0_29], %46 {strides = array<i32>} : memref<32x128xf32, #tpu.memory_space<vmem>>, vector<32x128xf32>,
    } else {
    }
    %c0 = arith.constant 0 : index
    %c0_1 = arith.constant 0 : index
    %3 = vector.load %arg7[%c0, %c0_1] : memref<32x128xbf16, #tpu.memory_space<vmem>>, vector<32x128xbf16>
    %c0_2 = arith.constant 0 : index
    %c0_3 = arith.constant 0 : index
    %4 = vector.load %arg4[%c0_2, %c0_3] : memref<128x512xbf16, #tpu.memory_space<vmem>>, vector<128x512xbf16>
    %cst = arith.constant dense<0.000000e+00> : vector<32x512xf32>
    %5 = tpu.matmul %3, %4, %cst {dimension_numbers = #tpu.dot_dimension_numbers<[1], [0], [0], [1], [0, 0, 1, 1], [], []>} : vector<32x128xbf16>, vector<128x512xbf16>, vector<32x512xf32> -> vector<32x512xf32>
    %cst_4 = arith.constant 5.000000e-01 : f32
    %6 = vector.broadcast %cst_4 : f32 to vector<32x512xf32>
    %7 = arith.mulf %6, %5 : vector<32x512xf32>
    %cst_5 = arith.constant 0.707106769 : f32
    %8 = vector.broadcast %cst_5 : f32 to vector<32x512xf32>
    %9 = arith.mulf %5, %8 : vector<32x512xf32>
    %10 = math.erf %9 : vector<32x512xf32>
    %cst_6 = arith.constant 1.000000e+00 : f32
    %11 = vector.broadcast %cst_6 : f32 to vector<32x512xf32>
    %12 = arith.addf %11, %10 : vector<32x512xf32>
    %13 = arith.mulf %7, %12 : vector<32x512xf32>
    %c0_7 = arith.constant 0 : index
    %c0_8 = arith.constant 0 : index
    %14 = vector.load %arg8[%c0_7, %c0_8] : memref<32x128xf32, #tpu.memory_space<vmem>>, vector<32x128xf32>
    %15 = arith.truncf %13 : vector<32x512xf32> to vector<32x512xbf16>
    %c0_9 = arith.constant 0 : index
    %c0_10 = arith.constant 0 : index
    %16 = vector.load %arg5[%c0_9, %c0_10] : memref<512x128xbf16, #tpu.memory_space<vmem>>, vector<512x128xbf16>
    %cst_11 = arith.constant dense<0.000000e+00> : vector<32x128xf32>
    %17 = tpu.matmul %15, %16, %cst_11 {dimension_numbers = #tpu.dot_dimension_numbers<[1], [0], [0], [1], [0, 0, 1, 1], [], []>} : vector<32x512xbf16>, vector<512x128xbf16>, vector<32x128xf32> -> vector<32x128xf32>
    %18 = arith.addf %14, %17 : vector<32x128xf32>
    %c0_12 = arith.constant 0 : index
    %c0_13 = arith.constant 0 : index
    %19 = vector.load %arg8[%c0_12, %c0_13] : memref<32x128xf32, #tpu.memory_space<vmem>>, vector<32x128xf32>
    tpu.vector_store %arg8[%c0_12, %c0_13], %18 {strides = array<i32>} : memref<32x128xf32, #tpu.memory_space<vmem>>, vector<32x128xf32>,
    %c0_i32_14 = arith.constant 0 : i32
    %20 = arith.cmpi eq, %arg1, %c0_i32_14 : i32
    %21 = arith.extui %20 : i1 to i32
    %c0_i32_15 = arith.constant 0 : i32
    %22 = arith.cmpi ne, %21, %c0_i32_15 : i32
    scf.if %22 {
      %c0_16 = arith.constant 0 : index
      %c0_17 = arith.constant 0 : index
      %23 = vector.load %arg8[%c0_16, %c0_17] : memref<32x128xf32, #tpu.memory_space<vmem>>, vector<32x128xf32>
      %c0_18 = arith.constant 0 : index
      %c0_19 = arith.constant 0 : index
      %24 = vector.load %arg2[%c0_18, %c0_19] : memref<32x128xbf16, #tpu.memory_space<vmem>>, vector<32x128xbf16>
      %25 = arith.extf %24 : vector<32x128xbf16> to vector<32x128xf32>
      %26 = arith.addf %23, %25 : vector<32x128xf32>
      %27 = arith.truncf %26 : vector<32x128xf32> to vector<32x128xbf16>
      %c0_20 = arith.constant 0 : index
      %c0_21 = arith.constant 0 : index
      %28 = vector.load %arg6[%c0_20, %c0_21] : memref<32x128xbf16, #tpu.memory_space<vmem>>, vector<32x128xbf16>
      tpu.vector_store %arg6[%c0_20, %c0_21], %27 {strides = array<i32>} : memref<32x128xbf16, #tpu.memory_space<vmem>>, vector<32x128xbf16>,
    } else {
    }
    return
  }
  func.func @transform_0(%arg0: i32, %arg1: i32) -> (i32, i32) {
    %c0_i32 = arith.constant 0 : i32
    %c0_i32_0 = arith.constant 0 : i32
    return %arg0, %c0_i32 : i32, i32
  }
  func.func @transform_1(%arg0: i32, %arg1: i32) -> (i32, i32) {
    %c0_i32 = arith.constant 0 : i32
    %c0_i32_0 = arith.constant 0 : i32
    %c0_i32_1 = arith.constant 0 : i32
    return %c0_i32, %c0_i32_0 : i32, i32
  }
  func.func @transform_2(%arg0: i32, %arg1: i32) -> (i32, i32) {
    %c0_i32 = arith.constant 0 : i32
    %c0_i32_0 = arith.constant 0 : i32
    return %c0_i32, %arg1 : i32, i32
  }
  func.func @transform_3(%arg0: i32, %arg1: i32) -> (i32, i32) {
    %c0_i32 = arith.constant 0 : i32
    %c0_i32_0 = arith.constant 0 : i32
    return %arg1, %c0_i32 : i32, i32
  }
  func.func @transform_4(%arg0: i32, %arg1: i32) -> (i32, i32) {
    %c0_i32 = arith.constant 0 : i32
    %c0_i32_0 = arith.constant 0 : i32
    return %arg0, %c0_i32 : i32, i32
  }
}

module attributes {stable_mosaic.version = 11 : i64} {
  func.func @_flash_attn_kernel(%arg0: i32, %arg1: i32, %arg2: i32, %arg3: memref<1x16x128xbf16, #tpu.memory_space<vmem>>, %arg4: memref<1x16x128xbf16, #tpu.memory_space<vmem>>, %arg5: memref<1x16x128xbf16, #tpu.memory_space<vmem>>, %arg6: memref<1x16x128xbf16, #tpu.memory_space<vmem>>, %arg7: memref<4x16x1xf32, #tpu.memory_space<vmem>>, %arg8: memref<4x16x1xf32, #tpu.memory_space<vmem>>, %arg9: memref<4x16x32xf32, #tpu.memory_space<vmem>>) attributes {dimension_semantics = [#tpu.dimension_semantics<parallel>, #tpu.dimension_semantics<parallel>, #tpu.dimension_semantics<arbitrary>], iteration_bounds = array<i64: 2, 1, 1>, scalar_prefetch = 0 : i64, scratch_operands = 3 : i64, tpu.core_type = #tpu.core_type<tc>, window_params = [{transform_indices = @transform_0, window_bounds = array<i64: 1, 16, 128>}, {transform_indices = @transform_1, window_bounds = array<i64: 1, 16, 128>}, {transform_indices = @transform_2, window_bounds = array<i64: 1, 16, 128>}, {transform_indices = @transform_3, window_bounds = array<i64: 1, 16, 128>}]} {
    %c0_i32 = arith.constant 0 : i32
    %0 = arith.cmpi eq, %arg2, %c0_i32 : i32
    %1 = arith.extui %0 : i1 to i32
    %c0_i32_0 = arith.constant 0 : i32
    %2 = arith.cmpi ne, %1, %c0_i32_0 : i32
    scf.if %2 {
      %cst = arith.constant 0xFF800000 : f32
      %9 = vector.broadcast %cst : f32 to vector<4x16x1xf32>
      %c0 = arith.constant 0 : index
      %c0_4 = arith.constant 0 : index
      %c0_5 = arith.constant 0 : index
      %10 = vector.load %arg7[%c0, %c0_4, %c0_5] : memref<4x16x1xf32, #tpu.memory_space<vmem>>, vector<4x16x1xf32>
      tpu.vector_store %arg7[%c0, %c0_4, %c0_5], %9 {strides = array<i32>} : memref<4x16x1xf32, #tpu.memory_space<vmem>>, vector<4x16x1xf32>,
      %cst_6 = arith.constant 0.000000e+00 : f32
      %11 = vector.broadcast %cst_6 : f32 to vector<4x16x1xf32>
      %c0_7 = arith.constant 0 : index
      %c0_8 = arith.constant 0 : index
      %c0_9 = arith.constant 0 : index
      %12 = vector.load %arg8[%c0_7, %c0_8, %c0_9] : memref<4x16x1xf32, #tpu.memory_space<vmem>>, vector<4x16x1xf32>
      tpu.vector_store %arg8[%c0_7, %c0_8, %c0_9], %11 {strides = array<i32>} : memref<4x16x1xf32, #tpu.memory_space<vmem>>, vector<4x16x1xf32>,
      %cst_10 = arith.constant 0.000000e+00 : f32
      %13 = vector.broadcast %cst_10 : f32 to vector<4x16x32xf32>
      %c0_11 = arith.constant 0 : index
      %c0_12 = arith.constant 0 : index
      %c0_13 = arith.constant 0 : index
      %14 = vector.load %arg9[%c0_11, %c0_12, %c0_13] : memref<4x16x32xf32, #tpu.memory_space<vmem>>, vector<4x16x32xf32>
      tpu.vector_store %arg9[%c0_11, %c0_12, %c0_13], %13 {strides = array<i32>} : memref<4x16x32xf32, #tpu.memory_space<vmem>>, vector<4x16x32xf32>,
    } else {
    }
    %3 = arith.cmpi sle, %arg2, %arg1 : i32
    %4 = arith.extui %3 : i1 to i32
    %c0_i32_1 = arith.constant 0 : i32
    %5 = arith.cmpi ne, %4, %c0_i32_1 : i32
    scf.if %5 {
      %c16_i32 = arith.constant 16 : i32
      %9 = arith.muli %arg1, %c16_i32 : i32
      %10 = tpu.iota {dimensions = array<i32: 0>} : vector<16x1xi32>
      %11 = vector.broadcast %9 : i32 to vector<16x1xi32>
      %12 = arith.addi %11, %10 : vector<16x1xi32>
      %c16_i32_4 = arith.constant 16 : i32
      %13 = arith.muli %arg2, %c16_i32_4 : i32
      %14 = tpu.iota {dimensions = array<i32: 1>} : vector<1x16xi32>
      %15 = vector.broadcast %13 : i32 to vector<1x16xi32>
      %16 = arith.addi %15, %14 : vector<1x16xi32>
      %17 = vector.broadcast %16 : vector<1x16xi32> to vector<16x16xi32>
      %18 = vector.broadcast %12 : vector<16x1xi32> to vector<16x16xi32>
      %19 = arith.cmpi sle, %17, %18 : vector<16x16xi32>
      %cst = arith.constant 0.000000e+00 : f32
      %cst_5 = arith.constant -1.000000e+30 : f32
      %20 = vector.broadcast %cst : f32 to vector<16x16xf32>
      %21 = vector.broadcast %cst_5 : f32 to vector<16x16xf32>
      %22 = arith.select %19, %20, %21 : vector<16x16xi1>, vector<16x16xf32>
      %c0 = arith.constant 0 : index
      %c0_6 = arith.constant 0 : index
      %c0_7 = arith.constant 0 : index
      %23 = vector.load %arg3[%c0, %c0_6, %c0_7] : memref<1x16x128xbf16, #tpu.memory_space<vmem>>, vector<1x16x128xbf16>
      %24 = vector.shape_cast %23 : vector<1x16x128xbf16> to vector<16x128xbf16>
      %c0_8 = arith.constant 0 : index
      %c0_9 = arith.constant 0 : index
      %c0_10 = arith.constant 0 : index
      %25 = vector.load %arg4[%c0_8, %c0_9, %c0_10] : memref<1x16x128xbf16, #tpu.memory_space<vmem>>, vector<1x16x128xbf16>
      %26 = vector.shape_cast %25 : vector<1x16x128xbf16> to vector<16x128xbf16>
      %c0_11 = arith.constant 0 : index
      %c0_12 = arith.constant 0 : index
      %c0_13 = arith.constant 0 : index
      %27 = vector.load %arg5[%c0_11, %c0_12, %c0_13] : memref<1x16x128xbf16, #tpu.memory_space<vmem>>, vector<1x16x128xbf16>
      %28 = vector.shape_cast %27 : vector<1x16x128xbf16> to vector<16x128xbf16>
      %29 = vector.extract_strided_slice %24 {offsets = [0, 0], sizes = [16, 32], strides = [1, 1]} : vector<16x128xbf16> to vector<16x32xbf16>
      %30 = vector.extract_strided_slice %26 {offsets = [0, 0], sizes = [16, 32], strides = [1, 1]} : vector<16x128xbf16> to vector<16x32xbf16>
      %cst_14 = arith.constant dense<0.000000e+00> : vector<16x16xf32>
      %31 = tpu.matmul %29, %30, %cst_14 {dimension_numbers = #tpu.dot_dimension_numbers<[1], [1], [0], [0], [0, 0, 1, 0], [], []>} : vector<16x32xbf16>, vector<16x32xbf16>, vector<16x16xf32> -> vector<16x16xf32>
      %cst_15 = arith.constant 0.176776692 : f32
      %32 = vector.broadcast %cst_15 : f32 to vector<16x16xf32>
      %33 = arith.mulf %31, %32 : vector<16x16xf32>
      %34 = arith.addf %33, %22 : vector<16x16xf32>
      %c0_16 = arith.constant 0 : index
      %c0_17 = arith.constant 0 : index
      %c0_18 = arith.constant 0 : index
      %35 = vector.load %arg7[%c0_16, %c0_17, %c0_18] : memref<4x16x1xf32, #tpu.memory_space<vmem>>, vector<1x16x1xf32>
      %36 = vector.shape_cast %35 : vector<1x16x1xf32> to vector<16x1xf32>
      %cst_19 = arith.constant dense<0xFF800000> : vector<16xf32>
      %37 = vector.multi_reduction <maximumf>, %34, %cst_19 [1] : vector<16x16xf32> to vector<16xf32>
      %38 = vector.shape_cast %37 : vector<16xf32> to vector<16x1xf32>
      %39 = arith.maximumf %36, %38 : vector<16x1xf32>
      %40 = arith.subf %36, %39 : vector<16x1xf32>
      %41 = math.exp %40 : vector<16x1xf32>
      %42 = vector.broadcast %39 : vector<16x1xf32> to vector<16x16xf32>
      %43 = arith.subf %34, %42 : vector<16x16xf32>
      %44 = math.exp %43 : vector<16x16xf32>
      %c0_20 = arith.constant 0 : index
      %c0_21 = arith.constant 0 : index
      %c0_22 = arith.constant 0 : index
      %45 = vector.load %arg8[%c0_20, %c0_21, %c0_22] : memref<4x16x1xf32, #tpu.memory_space<vmem>>, vector<1x16x1xf32>
      %46 = vector.shape_cast %45 : vector<1x16x1xf32> to vector<16x1xf32>
      %47 = arith.mulf %41, %46 : vector<16x1xf32>
      %cst_23 = arith.constant dense<0.000000e+00> : vector<16xf32>
      %48 = vector.multi_reduction <add>, %44, %cst_23 [1] : vector<16x16xf32> to vector<16xf32>
      %49 = vector.shape_cast %48 : vector<16xf32> to vector<16x1xf32>
      %50 = arith.addf %47, %49 : vector<16x1xf32>
      %c0_24 = arith.constant 0 : index
      %c0_25 = arith.constant 0 : index
      %c0_26 = arith.constant 0 : index
      %51 = vector.load %arg8[%c0_24, %c0_25, %c0_26] : memref<4x16x1xf32, #tpu.memory_space<vmem>>, vector<1x16x1xf32>
      %52 = vector.shape_cast %51 : vector<1x16x1xf32> to vector<16x1xf32>
      %53 = vector.shape_cast %50 : vector<16x1xf32> to vector<1x16x1xf32>
      tpu.vector_store %arg8[%c0_24, %c0_25, %c0_26], %53 {strides = array<i32>} : memref<4x16x1xf32, #tpu.memory_space<vmem>>, vector<1x16x1xf32>,
      %c0_27 = arith.constant 0 : index
      %c0_28 = arith.constant 0 : index
      %c0_29 = arith.constant 0 : index
      %54 = vector.load %arg9[%c0_27, %c0_28, %c0_29] : memref<4x16x32xf32, #tpu.memory_space<vmem>>, vector<1x16x32xf32>
      %55 = vector.shape_cast %54 : vector<1x16x32xf32> to vector<16x32xf32>
      %56 = vector.broadcast %41 : vector<16x1xf32> to vector<16x32xf32>
      %57 = arith.mulf %56, %55 : vector<16x32xf32>
      %58 = arith.truncf %44 : vector<16x16xf32> to vector<16x16xbf16>
      %59 = vector.extract_strided_slice %28 {offsets = [0, 0], sizes = [16, 32], strides = [1, 1]} : vector<16x128xbf16> to vector<16x32xbf16>
      %cst_30 = arith.constant dense<0.000000e+00> : vector<16x32xf32>
      %60 = tpu.matmul %58, %59, %cst_30 {dimension_numbers = #tpu.dot_dimension_numbers<[1], [0], [0], [1], [0, 0, 1, 1], [], []>} : vector<16x16xbf16>, vector<16x32xbf16>, vector<16x32xf32> -> vector<16x32xf32>
      %61 = arith.addf %57, %60 : vector<16x32xf32>
      %c0_31 = arith.constant 0 : index
      %c0_32 = arith.constant 0 : index
      %c0_33 = arith.constant 0 : index
      %62 = vector.load %arg9[%c0_31, %c0_32, %c0_33] : memref<4x16x32xf32, #tpu.memory_space<vmem>>, vector<1x16x32xf32>
      %63 = vector.shape_cast %62 : vector<1x16x32xf32> to vector<16x32xf32>
      %64 = vector.shape_cast %61 : vector<16x32xf32> to vector<1x16x32xf32>
      tpu.vector_store %arg9[%c0_31, %c0_32, %c0_33], %64 {strides = array<i32>} : memref<4x16x32xf32, #tpu.memory_space<vmem>>, vector<1x16x32xf32>,
      %c0_34 = arith.constant 0 : index
      %c0_35 = arith.constant 0 : index
      %c0_36 = arith.constant 0 : index
      %65 = vector.load %arg7[%c0_34, %c0_35, %c0_36] : memref<4x16x1xf32, #tpu.memory_space<vmem>>, vector<1x16x1xf32>
      %66 = vector.shape_cast %65 : vector<1x16x1xf32> to vector<16x1xf32>
      %67 = vector.shape_cast %39 : vector<16x1xf32> to vector<1x16x1xf32>
      tpu.vector_store %arg7[%c0_34, %c0_35, %c0_36], %67 {strides = array<i32>} : memref<4x16x1xf32, #tpu.memory_space<vmem>>, vector<1x16x1xf32>,
      %68 = vector.extract_strided_slice %24 {offsets = [0, 32], sizes = [16, 32], strides = [1, 1]} : vector<16x128xbf16> to vector<16x32xbf16>
      %69 = vector.extract_strided_slice %26 {offsets = [0, 32], sizes = [16, 32], strides = [1, 1]} : vector<16x128xbf16> to vector<16x32xbf16>
      %cst_37 = arith.constant dense<0.000000e+00> : vector<16x16xf32>
      %70 = tpu.matmul %68, %69, %cst_37 {dimension_numbers = #tpu.dot_dimension_numbers<[1], [1], [0], [0], [0, 0, 1, 0], [], []>} : vector<16x32xbf16>, vector<16x32xbf16>, vector<16x16xf32> -> vector<16x16xf32>
      %cst_38 = arith.constant 0.176776692 : f32
      %71 = vector.broadcast %cst_38 : f32 to vector<16x16xf32>
      %72 = arith.mulf %70, %71 : vector<16x16xf32>
      %73 = arith.addf %72, %22 : vector<16x16xf32>
      %c1 = arith.constant 1 : index
      %c0_39 = arith.constant 0 : index
      %c0_40 = arith.constant 0 : index
      %74 = vector.load %arg7[%c1, %c0_39, %c0_40] : memref<4x16x1xf32, #tpu.memory_space<vmem>>, vector<1x16x1xf32>
      %75 = vector.shape_cast %74 : vector<1x16x1xf32> to vector<16x1xf32>
      %cst_41 = arith.constant dense<0xFF800000> : vector<16xf32>
      %76 = vector.multi_reduction <maximumf>, %73, %cst_41 [1] : vector<16x16xf32> to vector<16xf32>
      %77 = vector.shape_cast %76 : vector<16xf32> to vector<16x1xf32>
      %78 = arith.maximumf %75, %77 : vector<16x1xf32>
      %79 = arith.subf %75, %78 : vector<16x1xf32>
      %80 = math.exp %79 : vector<16x1xf32>
      %81 = vector.broadcast %78 : vector<16x1xf32> to vector<16x16xf32>
      %82 = arith.subf %73, %81 : vector<16x16xf32>
      %83 = math.exp %82 : vector<16x16xf32>
      %c1_42 = arith.constant 1 : index
      %c0_43 = arith.constant 0 : index
      %c0_44 = arith.constant 0 : index
      %84 = vector.load %arg8[%c1_42, %c0_43, %c0_44] : memref<4x16x1xf32, #tpu.memory_space<vmem>>, vector<1x16x1xf32>
      %85 = vector.shape_cast %84 : vector<1x16x1xf32> to vector<16x1xf32>
      %86 = arith.mulf %80, %85 : vector<16x1xf32>
      %cst_45 = arith.constant dense<0.000000e+00> : vector<16xf32>
      %87 = vector.multi_reduction <add>, %83, %cst_45 [1] : vector<16x16xf32> to vector<16xf32>
      %88 = vector.shape_cast %87 : vector<16xf32> to vector<16x1xf32>
      %89 = arith.addf %86, %88 : vector<16x1xf32>
      %c1_46 = arith.constant 1 : index
      %c0_47 = arith.constant 0 : index
      %c0_48 = arith.constant 0 : index
      %90 = vector.load %arg8[%c1_46, %c0_47, %c0_48] : memref<4x16x1xf32, #tpu.memory_space<vmem>>, vector<1x16x1xf32>
      %91 = vector.shape_cast %90 : vector<1x16x1xf32> to vector<16x1xf32>
      %92 = vector.shape_cast %89 : vector<16x1xf32> to vector<1x16x1xf32>
      tpu.vector_store %arg8[%c1_46, %c0_47, %c0_48], %92 {strides = array<i32>} : memref<4x16x1xf32, #tpu.memory_space<vmem>>, vector<1x16x1xf32>,
      %c1_49 = arith.constant 1 : index
      %c0_50 = arith.constant 0 : index
      %c0_51 = arith.constant 0 : index
      %93 = vector.load %arg9[%c1_49, %c0_50, %c0_51] : memref<4x16x32xf32, #tpu.memory_space<vmem>>, vector<1x16x32xf32>
      %94 = vector.shape_cast %93 : vector<1x16x32xf32> to vector<16x32xf32>
      %95 = vector.broadcast %80 : vector<16x1xf32> to vector<16x32xf32>
      %96 = arith.mulf %95, %94 : vector<16x32xf32>
      %97 = arith.truncf %83 : vector<16x16xf32> to vector<16x16xbf16>
      %98 = vector.extract_strided_slice %28 {offsets = [0, 32], sizes = [16, 32], strides = [1, 1]} : vector<16x128xbf16> to vector<16x32xbf16>
      %cst_52 = arith.constant dense<0.000000e+00> : vector<16x32xf32>
      %99 = tpu.matmul %97, %98, %cst_52 {dimension_numbers = #tpu.dot_dimension_numbers<[1], [0], [0], [1], [0, 0, 1, 1], [], []>} : vector<16x16xbf16>, vector<16x32xbf16>, vector<16x32xf32> -> vector<16x32xf32>
      %100 = arith.addf %96, %99 : vector<16x32xf32>
      %c1_53 = arith.constant 1 : index
      %c0_54 = arith.constant 0 : index
      %c0_55 = arith.constant 0 : index
      %101 = vector.load %arg9[%c1_53, %c0_54, %c0_55] : memref<4x16x32xf32, #tpu.memory_space<vmem>>, vector<1x16x32xf32>
      %102 = vector.shape_cast %101 : vector<1x16x32xf32> to vector<16x32xf32>
      %103 = vector.shape_cast %100 : vector<16x32xf32> to vector<1x16x32xf32>
      tpu.vector_store %arg9[%c1_53, %c0_54, %c0_55], %103 {strides = array<i32>} : memref<4x16x32xf32, #tpu.memory_space<vmem>>, vector<1x16x32xf32>,
      %c1_56 = arith.constant 1 : index
      %c0_57 = arith.constant 0 : index
      %c0_58 = arith.constant 0 : index
      %104 = vector.load %arg7[%c1_56, %c0_57, %c0_58] : memref<4x16x1xf32, #tpu.memory_space<vmem>>, vector<1x16x1xf32>
      %105 = vector.shape_cast %104 : vector<1x16x1xf32> to vector<16x1xf32>
      %106 = vector.shape_cast %78 : vector<16x1xf32> to vector<1x16x1xf32>
      tpu.vector_store %arg7[%c1_56, %c0_57, %c0_58], %106 {strides = array<i32>} : memref<4x16x1xf32, #tpu.memory_space<vmem>>, vector<1x16x1xf32>,
      %107 = vector.extract_strided_slice %24 {offsets = [0, 64], sizes = [16, 32], strides = [1, 1]} : vector<16x128xbf16> to vector<16x32xbf16>
      %108 = vector.extract_strided_slice %26 {offsets = [0, 64], sizes = [16, 32], strides = [1, 1]} : vector<16x128xbf16> to vector<16x32xbf16>
      %cst_59 = arith.constant dense<0.000000e+00> : vector<16x16xf32>
      %109 = tpu.matmul %107, %108, %cst_59 {dimension_numbers = #tpu.dot_dimension_numbers<[1], [1], [0], [0], [0, 0, 1, 0], [], []>} : vector<16x32xbf16>, vector<16x32xbf16>, vector<16x16xf32> -> vector<16x16xf32>
      %cst_60 = arith.constant 0.176776692 : f32
      %110 = vector.broadcast %cst_60 : f32 to vector<16x16xf32>
      %111 = arith.mulf %109, %110 : vector<16x16xf32>
      %112 = arith.addf %111, %22 : vector<16x16xf32>
      %c2 = arith.constant 2 : index
      %c0_61 = arith.constant 0 : index
      %c0_62 = arith.constant 0 : index
      %113 = vector.load %arg7[%c2, %c0_61, %c0_62] : memref<4x16x1xf32, #tpu.memory_space<vmem>>, vector<1x16x1xf32>
      %114 = vector.shape_cast %113 : vector<1x16x1xf32> to vector<16x1xf32>
      %cst_63 = arith.constant dense<0xFF800000> : vector<16xf32>
      %115 = vector.multi_reduction <maximumf>, %112, %cst_63 [1] : vector<16x16xf32> to vector<16xf32>
      %116 = vector.shape_cast %115 : vector<16xf32> to vector<16x1xf32>
      %117 = arith.maximumf %114, %116 : vector<16x1xf32>
      %118 = arith.subf %114, %117 : vector<16x1xf32>
      %119 = math.exp %118 : vector<16x1xf32>
      %120 = vector.broadcast %117 : vector<16x1xf32> to vector<16x16xf32>
      %121 = arith.subf %112, %120 : vector<16x16xf32>
      %122 = math.exp %121 : vector<16x16xf32>
      %c2_64 = arith.constant 2 : index
      %c0_65 = arith.constant 0 : index
      %c0_66 = arith.constant 0 : index
      %123 = vector.load %arg8[%c2_64, %c0_65, %c0_66] : memref<4x16x1xf32, #tpu.memory_space<vmem>>, vector<1x16x1xf32>
      %124 = vector.shape_cast %123 : vector<1x16x1xf32> to vector<16x1xf32>
      %125 = arith.mulf %119, %124 : vector<16x1xf32>
      %cst_67 = arith.constant dense<0.000000e+00> : vector<16xf32>
      %126 = vector.multi_reduction <add>, %122, %cst_67 [1] : vector<16x16xf32> to vector<16xf32>
      %127 = vector.shape_cast %126 : vector<16xf32> to vector<16x1xf32>
      %128 = arith.addf %125, %127 : vector<16x1xf32>
      %c2_68 = arith.constant 2 : index
      %c0_69 = arith.constant 0 : index
      %c0_70 = arith.constant 0 : index
      %129 = vector.load %arg8[%c2_68, %c0_69, %c0_70] : memref<4x16x1xf32, #tpu.memory_space<vmem>>, vector<1x16x1xf32>
      %130 = vector.shape_cast %129 : vector<1x16x1xf32> to vector<16x1xf32>
      %131 = vector.shape_cast %128 : vector<16x1xf32> to vector<1x16x1xf32>
      tpu.vector_store %arg8[%c2_68, %c0_69, %c0_70], %131 {strides = array<i32>} : memref<4x16x1xf32, #tpu.memory_space<vmem>>, vector<1x16x1xf32>,
      %c2_71 = arith.constant 2 : index
      %c0_72 = arith.constant 0 : index
      %c0_73 = arith.constant 0 : index
      %132 = vector.load %arg9[%c2_71, %c0_72, %c0_73] : memref<4x16x32xf32, #tpu.memory_space<vmem>>, vector<1x16x32xf32>
      %133 = vector.shape_cast %132 : vector<1x16x32xf32> to vector<16x32xf32>
      %134 = vector.broadcast %119 : vector<16x1xf32> to vector<16x32xf32>
      %135 = arith.mulf %134, %133 : vector<16x32xf32>
      %136 = arith.truncf %122 : vector<16x16xf32> to vector<16x16xbf16>
      %137 = vector.extract_strided_slice %28 {offsets = [0, 64], sizes = [16, 32], strides = [1, 1]} : vector<16x128xbf16> to vector<16x32xbf16>
      %cst_74 = arith.constant dense<0.000000e+00> : vector<16x32xf32>
      %138 = tpu.matmul %136, %137, %cst_74 {dimension_numbers = #tpu.dot_dimension_numbers<[1], [0], [0], [1], [0, 0, 1, 1], [], []>} : vector<16x16xbf16>, vector<16x32xbf16>, vector<16x32xf32> -> vector<16x32xf32>
      %139 = arith.addf %135, %138 : vector<16x32xf32>
      %c2_75 = arith.constant 2 : index
      %c0_76 = arith.constant 0 : index
      %c0_77 = arith.constant 0 : index
      %140 = vector.load %arg9[%c2_75, %c0_76, %c0_77] : memref<4x16x32xf32, #tpu.memory_space<vmem>>, vector<1x16x32xf32>
      %141 = vector.shape_cast %140 : vector<1x16x32xf32> to vector<16x32xf32>
      %142 = vector.shape_cast %139 : vector<16x32xf32> to vector<1x16x32xf32>
      tpu.vector_store %arg9[%c2_75, %c0_76, %c0_77], %142 {strides = array<i32>} : memref<4x16x32xf32, #tpu.memory_space<vmem>>, vector<1x16x32xf32>,
      %c2_78 = arith.constant 2 : index
      %c0_79 = arith.constant 0 : index
      %c0_80 = arith.constant 0 : index
      %143 = vector.load %arg7[%c2_78, %c0_79, %c0_80] : memref<4x16x1xf32, #tpu.memory_space<vmem>>, vector<1x16x1xf32>
      %144 = vector.shape_cast %143 : vector<1x16x1xf32> to vector<16x1xf32>
      %145 = vector.shape_cast %117 : vector<16x1xf32> to vector<1x16x1xf32>
      tpu.vector_store %arg7[%c2_78, %c0_79, %c0_80], %145 {strides = array<i32>} : memref<4x16x1xf32, #tpu.memory_space<vmem>>, vector<1x16x1xf32>,
      %146 = vector.extract_strided_slice %24 {offsets = [0, 96], sizes = [16, 32], strides = [1, 1]} : vector<16x128xbf16> to vector<16x32xbf16>
      %147 = vector.extract_strided_slice %26 {offsets = [0, 96], sizes = [16, 32], strides = [1, 1]} : vector<16x128xbf16> to vector<16x32xbf16>
      %cst_81 = arith.constant dense<0.000000e+00> : vector<16x16xf32>
      %148 = tpu.matmul %146, %147, %cst_81 {dimension_numbers = #tpu.dot_dimension_numbers<[1], [1], [0], [0], [0, 0, 1, 0], [], []>} : vector<16x32xbf16>, vector<16x32xbf16>, vector<16x16xf32> -> vector<16x16xf32>
      %cst_82 = arith.constant 0.176776692 : f32
      %149 = vector.broadcast %cst_82 : f32 to vector<16x16xf32>
      %150 = arith.mulf %148, %149 : vector<16x16xf32>
      %151 = arith.addf %150, %22 : vector<16x16xf32>
      %c3 = arith.constant 3 : index
      %c0_83 = arith.constant 0 : index
      %c0_84 = arith.constant 0 : index
      %152 = vector.load %arg7[%c3, %c0_83, %c0_84] : memref<4x16x1xf32, #tpu.memory_space<vmem>>, vector<1x16x1xf32>
      %153 = vector.shape_cast %152 : vector<1x16x1xf32> to vector<16x1xf32>
      %cst_85 = arith.constant dense<0xFF800000> : vector<16xf32>
      %154 = vector.multi_reduction <maximumf>, %151, %cst_85 [1] : vector<16x16xf32> to vector<16xf32>
      %155 = vector.shape_cast %154 : vector<16xf32> to vector<16x1xf32>
      %156 = arith.maximumf %153, %155 : vector<16x1xf32>
      %157 = arith.subf %153, %156 : vector<16x1xf32>
      %158 = math.exp %157 : vector<16x1xf32>
      %159 = vector.broadcast %156 : vector<16x1xf32> to vector<16x16xf32>
      %160 = arith.subf %151, %159 : vector<16x16xf32>
      %161 = math.exp %160 : vector<16x16xf32>
      %c3_86 = arith.constant 3 : index
      %c0_87 = arith.constant 0 : index
      %c0_88 = arith.constant 0 : index
      %162 = vector.load %arg8[%c3_86, %c0_87, %c0_88] : memref<4x16x1xf32, #tpu.memory_space<vmem>>, vector<1x16x1xf32>
      %163 = vector.shape_cast %162 : vector<1x16x1xf32> to vector<16x1xf32>
      %164 = arith.mulf %158, %163 : vector<16x1xf32>
      %cst_89 = arith.constant dense<0.000000e+00> : vector<16xf32>
      %165 = vector.multi_reduction <add>, %161, %cst_89 [1] : vector<16x16xf32> to vector<16xf32>
      %166 = vector.shape_cast %165 : vector<16xf32> to vector<16x1xf32>
      %167 = arith.addf %164, %166 : vector<16x1xf32>
      %c3_90 = arith.constant 3 : index
      %c0_91 = arith.constant 0 : index
      %c0_92 = arith.constant 0 : index
      %168 = vector.load %arg8[%c3_90, %c0_91, %c0_92] : memref<4x16x1xf32, #tpu.memory_space<vmem>>, vector<1x16x1xf32>
      %169 = vector.shape_cast %168 : vector<1x16x1xf32> to vector<16x1xf32>
      %170 = vector.shape_cast %167 : vector<16x1xf32> to vector<1x16x1xf32>
      tpu.vector_store %arg8[%c3_90, %c0_91, %c0_92], %170 {strides = array<i32>} : memref<4x16x1xf32, #tpu.memory_space<vmem>>, vector<1x16x1xf32>,
      %c3_93 = arith.constant 3 : index
      %c0_94 = arith.constant 0 : index
      %c0_95 = arith.constant 0 : index
      %171 = vector.load %arg9[%c3_93, %c0_94, %c0_95] : memref<4x16x32xf32, #tpu.memory_space<vmem>>, vector<1x16x32xf32>
      %172 = vector.shape_cast %171 : vector<1x16x32xf32> to vector<16x32xf32>
      %173 = vector.broadcast %158 : vector<16x1xf32> to vector<16x32xf32>
      %174 = arith.mulf %173, %172 : vector<16x32xf32>
      %175 = arith.truncf %161 : vector<16x16xf32> to vector<16x16xbf16>
      %176 = vector.extract_strided_slice %28 {offsets = [0, 96], sizes = [16, 32], strides = [1, 1]} : vector<16x128xbf16> to vector<16x32xbf16>
      %cst_96 = arith.constant dense<0.000000e+00> : vector<16x32xf32>
      %177 = tpu.matmul %175, %176, %cst_96 {dimension_numbers = #tpu.dot_dimension_numbers<[1], [0], [0], [1], [0, 0, 1, 1], [], []>} : vector<16x16xbf16>, vector<16x32xbf16>, vector<16x32xf32> -> vector<16x32xf32>
      %178 = arith.addf %174, %177 : vector<16x32xf32>
      %c3_97 = arith.constant 3 : index
      %c0_98 = arith.constant 0 : index
      %c0_99 = arith.constant 0 : index
      %179 = vector.load %arg9[%c3_97, %c0_98, %c0_99] : memref<4x16x32xf32, #tpu.memory_space<vmem>>, vector<1x16x32xf32>
      %180 = vector.shape_cast %179 : vector<1x16x32xf32> to vector<16x32xf32>
      %181 = vector.shape_cast %178 : vector<16x32xf32> to vector<1x16x32xf32>
      tpu.vector_store %arg9[%c3_97, %c0_98, %c0_99], %181 {strides = array<i32>} : memref<4x16x32xf32, #tpu.memory_space<vmem>>, vector<1x16x32xf32>,
      %c3_100 = arith.constant 3 : index
      %c0_101 = arith.constant 0 : index
      %c0_102 = arith.constant 0 : index
      %182 = vector.load %arg7[%c3_100, %c0_101, %c0_102] : memref<4x16x1xf32, #tpu.memory_space<vmem>>, vector<1x16x1xf32>
      %183 = vector.shape_cast %182 : vector<1x16x1xf32> to vector<16x1xf32>
      %184 = vector.shape_cast %156 : vector<16x1xf32> to vector<1x16x1xf32>
      tpu.vector_store %arg7[%c3_100, %c0_101, %c0_102], %184 {strides = array<i32>} : memref<4x16x1xf32, #tpu.memory_space<vmem>>, vector<1x16x1xf32>,
    } else {
    }
    %c0_i32_2 = arith.constant 0 : i32
    %6 = arith.cmpi eq, %arg2, %c0_i32_2 : i32
    %7 = arith.extui %6 : i1 to i32
    %c0_i32_3 = arith.constant 0 : i32
    %8 = arith.cmpi ne, %7, %c0_i32_3 : i32
    scf.if %8 {
      %c0 = arith.constant 0 : index
      %c0_4 = arith.constant 0 : index
      %c0_5 = arith.constant 0 : index
      %9 = vector.load %arg9[%c0, %c0_4, %c0_5] : memref<4x16x32xf32, #tpu.memory_space<vmem>>, vector<1x16x32xf32>
      %10 = vector.shape_cast %9 : vector<1x16x32xf32> to vector<16x32xf32>
      %c0_6 = arith.constant 0 : index
      %c0_7 = arith.constant 0 : index
      %c0_8 = arith.constant 0 : index
      %11 = vector.load %arg8[%c0_6, %c0_7, %c0_8] : memref<4x16x1xf32, #tpu.memory_space<vmem>>, vector<1x16x1xf32>
      %12 = vector.shape_cast %11 : vector<1x16x1xf32> to vector<16x1xf32>
      %13 = tpu.reciprocal %12 {approx = true} : vector<16x1xf32> -> vector<16x1xf32>
      %14 = vector.broadcast %13 : vector<16x1xf32> to vector<16x32xf32>
      %15 = arith.mulf %10, %14 : vector<16x32xf32>
      %c1 = arith.constant 1 : index
      %c0_9 = arith.constant 0 : index
      %c0_10 = arith.constant 0 : index
      %16 = vector.load %arg9[%c1, %c0_9, %c0_10] : memref<4x16x32xf32, #tpu.memory_space<vmem>>, vector<1x16x32xf32>
      %17 = vector.shape_cast %16 : vector<1x16x32xf32> to vector<16x32xf32>
      %c1_11 = arith.constant 1 : index
      %c0_12 = arith.constant 0 : index
      %c0_13 = arith.constant 0 : index
      %18 = vector.load %arg8[%c1_11, %c0_12, %c0_13] : memref<4x16x1xf32, #tpu.memory_space<vmem>>, vector<1x16x1xf32>
      %19 = vector.shape_cast %18 : vector<1x16x1xf32> to vector<16x1xf32>
      %20 = tpu.reciprocal %19 {approx = true} : vector<16x1xf32> -> vector<16x1xf32>
      %21 = vector.broadcast %20 : vector<16x1xf32> to vector<16x32xf32>
      %22 = arith.mulf %17, %21 : vector<16x32xf32>
      %c2 = arith.constant 2 : index
      %c0_14 = arith.constant 0 : index
      %c0_15 = arith.constant 0 : index
      %23 = vector.load %arg9[%c2, %c0_14, %c0_15] : memref<4x16x32xf32, #tpu.memory_space<vmem>>, vector<1x16x32xf32>
      %24 = vector.shape_cast %23 : vector<1x16x32xf32> to vector<16x32xf32>
      %c2_16 = arith.constant 2 : index
      %c0_17 = arith.constant 0 : index
      %c0_18 = arith.constant 0 : index
      %25 = vector.load %arg8[%c2_16, %c0_17, %c0_18] : memref<4x16x1xf32, #tpu.memory_space<vmem>>, vector<1x16x1xf32>
      %26 = vector.shape_cast %25 : vector<1x16x1xf32> to vector<16x1xf32>
      %27 = tpu.reciprocal %26 {approx = true} : vector<16x1xf32> -> vector<16x1xf32>
      %28 = vector.broadcast %27 : vector<16x1xf32> to vector<16x32xf32>
      %29 = arith.mulf %24, %28 : vector<16x32xf32>
      %c3 = arith.constant 3 : index
      %c0_19 = arith.constant 0 : index
      %c0_20 = arith.constant 0 : index
      %30 = vector.load %arg9[%c3, %c0_19, %c0_20] : memref<4x16x32xf32, #tpu.memory_space<vmem>>, vector<1x16x32xf32>
      %31 = vector.shape_cast %30 : vector<1x16x32xf32> to vector<16x32xf32>
      %c3_21 = arith.constant 3 : index
      %c0_22 = arith.constant 0 : index
      %c0_23 = arith.constant 0 : index
      %32 = vector.load %arg8[%c3_21, %c0_22, %c0_23] : memref<4x16x1xf32, #tpu.memory_space<vmem>>, vector<1x16x1xf32>
      %33 = vector.shape_cast %32 : vector<1x16x1xf32> to vector<16x1xf32>
      %34 = tpu.reciprocal %33 {approx = true} : vector<16x1xf32> -> vector<16x1xf32>
      %35 = vector.broadcast %34 : vector<16x1xf32> to vector<16x32xf32>
      %36 = arith.mulf %31, %35 : vector<16x32xf32>
      %37 = tpu.concatenate %15, %22, %29, %36 in 1 : vector<16x32xf32>, vector<16x32xf32>, vector<16x32xf32>, vector<16x32xf32> -> vector<16x128xf32>
      %38 = arith.truncf %37 : vector<16x128xf32> to vector<16x128xbf16>
      %c0_24 = arith.constant 0 : index
      %c0_25 = arith.constant 0 : index
      %c0_26 = arith.constant 0 : index
      %39 = vector.load %arg6[%c0_24, %c0_25, %c0_26] : memref<1x16x128xbf16, #tpu.memory_space<vmem>>, vector<1x16x128xbf16>
      %40 = vector.shape_cast %39 : vector<1x16x128xbf16> to vector<16x128xbf16>
      %41 = vector.shape_cast %38 : vector<16x128xbf16> to vector<1x16x128xbf16>
      tpu.vector_store %arg6[%c0_24, %c0_25, %c0_26], %41 {strides = array<i32>} : memref<1x16x128xbf16, #tpu.memory_space<vmem>>, vector<1x16x128xbf16>,
    } else {
    }
    return
  }
  func.func @transform_0(%arg0: i32, %arg1: i32, %arg2: i32) -> (i32, i32, i32) {
    %c0_i32 = arith.constant 0 : i32
    %c0_i32_0 = arith.constant 0 : i32
    return %arg0, %arg1, %c0_i32 : i32, i32, i32
  }
  func.func @transform_1(%arg0: i32, %arg1: i32, %arg2: i32) -> (i32, i32, i32) {
    %0 = arith.minsi %arg2, %arg1 : i32
    %c1_i32 = arith.constant 1 : i32
    %c0_i32 = arith.constant 0 : i32
    return %arg0, %0, %c1_i32 : i32, i32, i32
  }
  func.func @transform_2(%arg0: i32, %arg1: i32, %arg2: i32) -> (i32, i32, i32) {
    %0 = arith.minsi %arg2, %arg1 : i32
    %c2_i32 = arith.constant 2 : i32
    %c0_i32 = arith.constant 0 : i32
    return %arg0, %0, %c2_i32 : i32, i32, i32
  }
  func.func @transform_3(%arg0: i32, %arg1: i32, %arg2: i32) -> (i32, i32, i32) {
    %c0_i32 = arith.constant 0 : i32
    %c0_i32_0 = arith.constant 0 : i32
    return %arg0, %arg1, %c0_i32 : i32, i32, i32
  }
}

module attributes {stable_mosaic.version = 11 : i64} {
  func.func @_ln_matmul_kernel(%arg0: i32, %arg1: i32, %arg2: memref<32x128xbf16, #tpu.memory_space<vmem>>, %arg3: memref<1x128xf32, #tpu.memory_space<vmem>>, %arg4: memref<128x128xbf16, #tpu.memory_space<vmem>>, %arg5: memref<32x128xf32, #tpu.memory_space<vmem>>, %arg6: memref<32x128xbf16, #tpu.memory_space<vmem>>) attributes {dimension_semantics = [#tpu.dimension_semantics<parallel>, #tpu.dimension_semantics<arbitrary>], iteration_bounds = array<i64: 1, 1>, scalar_prefetch = 0 : i64, scratch_operands = 1 : i64, tpu.core_type = #tpu.core_type<tc>, window_params = [{transform_indices = @transform_0, window_bounds = array<i64: 32, 128>}, {pipeline_mode = #tpu.pipeline_mode<synchronous>, transform_indices = @transform_1, window_bounds = array<i64: 1, 128>}, {transform_indices = @transform_2, window_bounds = array<i64: 128, 128>}, {transform_indices = @transform_3, window_bounds = array<i64: 32, 128>}]} {
    %c0_i32 = arith.constant 0 : i32
    %0 = arith.cmpi eq, %arg1, %c0_i32 : i32
    %1 = arith.extui %0 : i1 to i32
    %c0_i32_0 = arith.constant 0 : i32
    %2 = arith.cmpi ne, %1, %c0_i32_0 : i32
    scf.if %2 {
      %c0_6 = arith.constant 0 : index
      %c0_7 = arith.constant 0 : index
      %7 = vector.load %arg2[%c0_6, %c0_7] : memref<32x128xbf16, #tpu.memory_space<vmem>>, vector<32x128xbf16>
      %8 = arith.extf %7 : vector<32x128xbf16> to vector<32x128xf32>
      %c0_8 = arith.constant 0 : index
      %c0_9 = arith.constant 0 : index
      %9 = vector.load %arg3[%c0_8, %c0_9] : memref<1x128xf32, #tpu.memory_space<vmem>>, vector<1x128xf32>
      %cst_10 = arith.constant dense<0.000000e+00> : vector<32xf32>
      %10 = vector.multi_reduction <add>, %8, %cst_10 [1] : vector<32x128xf32> to vector<32xf32>
      %11 = vector.shape_cast %10 : vector<32xf32> to vector<32x1xf32>
      %cst_11 = arith.constant 1.280000e+02 : f32
      %12 = vector.broadcast %cst_11 : f32 to vector<32x1xf32>
      %13 = arith.divf %11, %12 : vector<32x1xf32>
      %14 = vector.broadcast %13 : vector<32x1xf32> to vector<32x128xf32>
      %15 = arith.subf %8, %14 : vector<32x128xf32>
      %16 = arith.mulf %15, %15 : vector<32x128xf32>
      %cst_12 = arith.constant dense<0.000000e+00> : vector<32xf32>
      %17 = vector.multi_reduction <add>, %16, %cst_12 [1] : vector<32x128xf32> to vector<32xf32>
      %18 = vector.shape_cast %17 : vector<32xf32> to vector<32x1xf32>
      %cst_13 = arith.constant 1.280000e+02 : f32
      %19 = vector.broadcast %cst_13 : f32 to vector<32x1xf32>
      %20 = arith.divf %18, %19 : vector<32x1xf32>
      %cst_14 = arith.constant 9.99999974E-6 : f32
      %21 = vector.broadcast %cst_14 : f32 to vector<32x1xf32>
      %22 = arith.addf %20, %21 : vector<32x1xf32>
      %23 = math.rsqrt %22 : vector<32x1xf32>
      %24 = vector.broadcast %23 : vector<32x1xf32> to vector<32x128xf32>
      %25 = arith.mulf %15, %24 : vector<32x128xf32>
      %26 = vector.broadcast %9 : vector<1x128xf32> to vector<32x128xf32>
      %27 = arith.mulf %25, %26 : vector<32x128xf32>
      %28 = arith.truncf %27 : vector<32x128xf32> to vector<32x128xbf16>
      %c0_15 = arith.constant 0 : index
      %c0_16 = arith.constant 0 : index
      %29 = vector.load %arg6[%c0_15, %c0_16] : memref<32x128xbf16, #tpu.memory_space<vmem>>, vector<32x128xbf16>
      tpu.vector_store %arg6[%c0_15, %c0_16], %28 {strides = array<i32>} : memref<32x128xbf16, #tpu.memory_space<vmem>>, vector<32x128xbf16>,
    } else {
    }
    %c0 = arith.constant 0 : index
    %c0_1 = arith.constant 0 : index
    %3 = vector.load %arg6[%c0, %c0_1] : memref<32x128xbf16, #tpu.memory_space<vmem>>, vector<32x128xbf16>
    %c0_2 = arith.constant 0 : index
    %c0_3 = arith.constant 0 : index
    %4 = vector.load %arg4[%c0_2, %c0_3] : memref<128x128xbf16, #tpu.memory_space<vmem>>, vector<128x128xbf16>
    %cst = arith.constant dense<0.000000e+00> : vector<32x128xf32>
    %5 = tpu.matmul %3, %4, %cst {dimension_numbers = #tpu.dot_dimension_numbers<[1], [0], [0], [1], [0, 0, 1, 1], [], []>} : vector<32x128xbf16>, vector<128x128xbf16>, vector<32x128xf32> -> vector<32x128xf32>
    %c0_4 = arith.constant 0 : index
    %c0_5 = arith.constant 0 : index
    %6 = vector.load %arg5[%c0_4, %c0_5] : memref<32x128xf32, #tpu.memory_space<vmem>>, vector<32x128xf32>
    tpu.vector_store %arg5[%c0_4, %c0_5], %5 {strides = array<i32>} : memref<32x128xf32, #tpu.memory_space<vmem>>, vector<32x128xf32>,
    return
  }
  func.func @transform_0(%arg0: i32, %arg1: i32) -> (i32, i32) {
    %c0_i32 = arith.constant 0 : i32
    %c0_i32_0 = arith.constant 0 : i32
    return %arg0, %c0_i32 : i32, i32
  }
  func.func @transform_1(%arg0: i32, %arg1: i32) -> (i32, i32) {
    %c0_i32 = arith.constant 0 : i32
    %c0_i32_0 = arith.constant 0 : i32
    %c0_i32_1 = arith.constant 0 : i32
    return %c0_i32, %c0_i32_0 : i32, i32
  }
  func.func @transform_2(%arg0: i32, %arg1: i32) -> (i32, i32) {
    %c0_i32 = arith.constant 0 : i32
    %c0_i32_0 = arith.constant 0 : i32
    return %c0_i32, %arg1 : i32, i32
  }
  func.func @transform_3(%arg0: i32, %arg1: i32) -> (i32, i32) {
    %c0_i32 = arith.constant 0 : i32
    return %arg0, %arg1 : i32, i32
  }
}

</mosaic_0001>

<bundles_post_ra>
// kernel: transformer_forward.11
= control target key start
LH: loop header
LB: loop body
LE: loop exit
PB: predicated region body
PF: predicated region fallthrough
CT: control target
= control target key end

     0   :  { %s347_s1 = inlined_call_operand.vmem [shape: bf16[128,128], index: 1, kind: input, shape index: {}]   ;;  %s348_s0 = inlined_call_operand.vmem [shape: bf16[32,128], index: 0, kind: input, shape index: {}]   ;;  %s349_s2 = inlined_call_operand.vmem [shape: bf16[32,128], index: 2, kind: input, shape index: {}]   ;;  %s350_s3 = inlined_call_operand.vmem [shape: bf16[32,128], index: 3, kind: output, shape index: {}]  }
   0x1   :  { %v275_v0 = vld [vmem:[%s347_s1 + $0x38] sm:$0xff]   ;;  %v276_v1 = vld [vmem:[%s347_s1 + $0x30] sm:$0xff]   ;;  %v277_v2 = vld [vmem:[%s347_s1 + $0x28] sm:$0xff]  }
   0x2   :  { %255 = vmatprep.subr.bf16.mxu0 %v275_v0  ;;  %v278_v3 = vld [vmem:[%s347_s1 + $0x20] sm:$0xff]   ;;  %v279_v5 = vld [vmem:[%s347_s1 + $0x18] sm:$0xff]   ;;  %v280_v6 = vld [vmem:[%s347_s1 + $0x10] sm:$0xff]  }
   0x3   :  { %256 = vmatpush3.bf16.msra.mxu0 %v275_v0  ;;  %v283_v4 = vld [vmem:[%s348_s0] sm:$0xff]   ;;  %v281_v7 = vld [vmem:[%s347_s1 + $0x8] sm:$0xff]  }
   0x4   :  { %257 = vmatprep.subr.bf16.mxu0 %v276_v1  ;;  %271 = vmatprep.mubr.bf16.mxu0 %v283_v4  ;;  %v282_v8 = vld [vmem:[%s347_s1] sm:$0xff]   ;;  %v284_v9 = vld [vmem:[%s348_s0 + $0x8] sm:$0xff]  }
   0x5   :  { %v243_v10 = vld [vmem:[%s349_s2 + $0x8] sm:$0xff]   ;;  %v226_v12 = vld [vmem:[%s349_s2] sm:$0xff]  }
   0x6   :  { %v231_v13 = vunpack.c.l.bf16 %v243_v10  ;;  %v232_v14 = vunpack.c.h.bf16 %v243_v10  ;;  %v227_v16 = vunpack.c.l.bf16 %v226_v12  ;;  %v228_v17 = vunpack.c.h.bf16 %v226_v12 }
   0x7   :  { %258 = vmatpush3.bf16.msra.mxu0 %v276_v1 }
   0x8   :  { %259 = vmatprep.subr.bf16.mxu0 %v277_v2 }
   0xb   :  { %260 = vmatpush3.bf16.msra.mxu0 %v277_v2 }
   0xc   :  { %261 = vmatprep.subr.bf16.mxu0 %v278_v3 }
   0xf   :  { %262 = vmatpush3.bf16.msra.mxu0 %v278_v3 }
  0x10   :  { %263 = vmatprep.subr.bf16.mxu0 %v279_v5 }
  0x13   :  { %264 = vmatpush3.bf16.msra.mxu0 %v279_v5 }
  0x14   :  { %265 = vmatprep.subr.bf16.mxu0 %v280_v6 }
  0x17   :  { %266 = vmatpush3.bf16.msra.mxu0 %v280_v6 }
  0x18   :  { %267 = vmatprep.subr.bf16.mxu0 %v281_v7 }
  0x1b   :  { %268 = vmatpush3.bf16.msra.mxu0 %v281_v7 }
  0x1c   :  { %269 = vmatprep.subr.bf16.mxu0 %v282_v8 }
  0x1f   :  { %270 = vmatpush3.bf16.msra.mxu0 %v282_v8 }
  0x22   :  { %272 = vmatmul.mubr.bf16.vlgmr.msra.gmra.mxu0 %v284_v9 }
  0xe2   :  { %v273_v11 = vpop.f32.mrf.mxu0 }
  0xe3   :  { %v181_v19 = vadd.f32 %v273_v11, %v231_v13 }
  0xe4   :  { %v141_v15 = vpop.f32.mrf.mxu0 }
  0xe5   :  { %v179_v22 = vadd.f32 %v227_v16, %v141_v15 }
  0xe6   :  { %v274_v18 = vpop.f32.mrf.mxu0 }
  0xe7   :  { %v182_v20 = vadd.f32 %v274_v18, %v232_v14 }
  0xe8   :  { %v144_v21 = vpop.f32.mrf.mxu0 }
  0xe9   :  { %v241_v23 = vpack.c.bf16 %v182_v20, %v181_v19  ;;  %v180_v24 = vadd.f32 %v228_v17, %v144_v21 }
  0xeb   :  { %244 = vst [vmem:[%s350_s3 + $0x8] sm:$0xff] %v241_v23   ;;  %v236_v25 = vpack.c.bf16 %v180_v24, %v179_v22 }
  0xed   :  { %237 = vst [vmem:[%s350_s3] sm:$0xff] %v236_v25  }

// kernel: transformer_forward.9
= control target key start
LH: loop header
LB: loop body
LE: loop exit
PB: predicated region body
PF: predicated region fallthrough
CT: control target
= control target key end

     0   :  { %v577_v45 = vmov 0   ;;  %s723_s0 = inlined_call_operand.vmem [shape: bf16[32,128], index: 0, kind: input, shape index: {}]   ;;  %s724_s2 = inlined_call_operand.vmem [shape: bf16[128,384], index: 2, kind: input, shape index: {}]   ;;  %s725_s1 = inlined_call_operand.vmem [shape: f32[1,128], index: 1, kind: input, shape index: {}]   ;;  %s726_s3 = inlined_call_operand.vmem [shape: bf16[32,384], index: 3, kind: output, shape index: {}]  }
   0x1   :  { %v485_v0 = vld [vmem:[%s723_s0] sm:$0xff]   ;;  %v502_v1 = vld [vmem:[%s723_s0 + $0x8] sm:$0xff]   ;;  %v540_v25 = vld [vmem:[%s724_s2 + $0xb0] ss:$12 sps:$4 sm:$0xff]   ;;  %311 = vmatprep.mubr.bf16.mxu0 %v577_v45 }
   0x2   :  { %v486_v2 = vunpack.c.l.bf16 %v485_v0  ;;  %v490_v3 = vunpack.c.l.bf16 %v502_v1  ;;  %v487_v4 = vunpack.c.h.bf16 %v485_v0  ;;  %v491_v5 = vunpack.c.h.bf16 %v502_v1  ;;  %v535_v22 = vld [vmem:[%s724_s2 + $0xac] ss:$12 sps:$4 sm:$0xff]   ;;  %v537_v23 = vld [vmem:[%s724_s2 + $0xa8] ss:$12 sps:$4 sm:$0xff]   ;;  %v541_v26 = vld [vmem:[%s724_s2 + $0x90] ss:$12 sps:$4 sm:$0xff]   ;;  %514 = vmatprep.subr.bf16.mxu1 %v540_v25 }
   0x3   :  { %279 = vmatprep.subr.bf16.mxu0 %v535_v22  ;;  %v538_v24 = vld [vmem:[%s724_s2 + $0x94] ss:$12 sps:$4 sm:$0xff]   ;;  %515 = vmatpush3.bf16.msra.mxu1 %v540_v25  ;;  %v542_v27 = vld [vmem:[%s724_s2 + $0x7c] ss:$12 sps:$4 sm:$0xff]   ;;  %v544_v28 = vld [vmem:[%s724_s2 + $0x98] ss:$12 sps:$4 sm:$0xff]  }
   0x4   :  { %28 = vadd.xlane.f32.xlu0 %v486_v2  ;;  %32 = vadd.xlane.f32.xlu1 %v490_v3  ;;  %v545_v29 = vld [vmem:[%s724_s2 + $0x78] ss:$12 sps:$4 sm:$0xff]   ;;  %v548_v31 = vld [vmem:[%s724_s2 + $0x80] ss:$12 sps:$4 sm:$0xff]   ;;  %v552_v34 = vld [vmem:[%s724_s2 + $0x68] ss:$12 sps:$4 sm:$0xff]  }
   0x5   :  { %280 = vmatpush1.bf16.msra.mxu0 %v537_v23  ;;  %516 = vmatprep.subr.bf16.mxu1 %v544_v28  ;;  %v546_v30 = vld [vmem:[%s724_s2 + $0x64] ss:$12 sps:$4 sm:$0xff]   ;;  %v549_v32 = vld [vmem:[%s724_s2 + $0x60] ss:$12 sps:$4 sm:$0xff]   ;;  %v553_v35 = vld [vmem:[%s724_s2 + $0x48] ss:$12 sps:$4 sm:$0xff]  }
   0x6   :  { %281 = vmatprep.subr.bf16.mxu0 %v538_v24  ;;  %v550_v33 = vld [vmem:[%s724_s2 + $0x4c] ss:$12 sps:$4 sm:$0xff]   ;;  %v554_v36 = vld [vmem:[%s724_s2 + $0x34] ss:$12 sps:$4 sm:$0xff]   ;;  %v556_v37 = vld [vmem:[%s724_s2 + $0x50] ss:$12 sps:$4 sm:$0xff]  }
   0x7   :  { %517 = vmatpush3.bf16.msra.mxu1 %v544_v28  ;;  %v557_v38 = vld [vmem:[%s724_s2 + $0x30] ss:$12 sps:$4 sm:$0xff]   ;;  %v560_v40 = vld [vmem:[%s724_s2 + $0x38] ss:$12 sps:$4 sm:$0xff]   ;;  %v564_v43 = vld [vmem:[%s724_s2 + $0x20] ss:$12 sps:$4 sm:$0xff]  }
   0x8   :  { %30 = vadd.xlane.f32.xlu0 %v487_v4  ;;  %34 = vadd.xlane.f32.xlu1 %v491_v5  ;;  %v558_v39 = vld [vmem:[%s724_s2 + $0x1c] ss:$12 sps:$4 sm:$0xff]   ;;  %v561_v41 = vld [vmem:[%s724_s2 + $0x18] ss:$12 sps:$4 sm:$0xff]   ;;  %v565_v44 = vld [vmem:[%s724_s2] ss:$12 sps:$4 sm:$0xff]  }
   0x9   :  { %282 = vmatpush1.bf16.msra.mxu0 %v541_v26  ;;  %518 = vmatprep.subr.bf16.mxu1 %v548_v31  ;;  %v562_v42 = vld [vmem:[%s724_s2 + $0x4] ss:$12 sps:$4 sm:$0xff]   ;;  %v567_v46 = vld [vmem:[%s724_s2 + $0x8] ss:$12 sps:$4 sm:$0xff]   ;;  %v433_v62 = vld [vmem:[%s725_s1] ss:$0 sm:$0xff] }
   0xa   :  { %283 = vmatprep.subr.bf16.mxu0 %v542_v27 }
   0xb   :  { %519 = vmatpush3.bf16.msra.mxu1 %v548_v31 }
   0xc   :  { %520 = vmatprep.subr.bf16.mxu1 %v552_v34 }
   0xd   :  { %284 = vmatpush1.bf16.msra.mxu0 %v545_v29 }
   0xe   :  { %285 = vmatprep.subr.bf16.mxu0 %v546_v30 }
   0xf   :  { %521 = vmatpush3.bf16.msra.mxu1 %v552_v34 }
  0x10   :  { %522 = vmatprep.subr.bf16.mxu1 %v556_v37 }
  0x11   :  { %286 = vmatpush1.bf16.msra.mxu0 %v549_v32 }
  0x12   :  { %287 = vmatprep.subr.bf16.mxu0 %v550_v33 }
  0x13   :  { %523 = vmatpush3.bf16.msra.mxu1 %v556_v37 }
  0x14   :  { %524 = vmatprep.subr.bf16.mxu1 %v560_v40 }
  0x15   :  { %288 = vmatpush1.bf16.msra.mxu0 %v553_v35 }
  0x16   :  { %289 = vmatprep.subr.bf16.mxu0 %v554_v36 }
  0x17   :  { %525 = vmatpush3.bf16.msra.mxu1 %v560_v40 }
  0x18   :  { %526 = vmatprep.subr.bf16.mxu1 %v564_v43 }
  0x19   :  { %290 = vmatpush1.bf16.msra.mxu0 %v557_v38 }
  0x1a   :  { %291 = vmatprep.subr.bf16.mxu0 %v558_v39 }
  0x1b   :  { %527 = vmatpush3.bf16.msra.mxu1 %v564_v43 }
  0x1c   :  { %528 = vmatprep.subr.bf16.mxu1 %v567_v46 }
  0x1d   :  { %292 = vmatpush1.bf16.msra.mxu0 %v561_v41 }
  0x1e   :  { %293 = vmatprep.subr.bf16.mxu0 %v562_v42 }
  0x1f   :  { %529 = vmatpush3.bf16.msra.mxu1 %v567_v46 }
  0x21   :  { %294 = vmatpush1.bf16.msra.mxu0 %v565_v44 }
  0x8d   :  { %v29_v6 = vpop.xlane.xlu0 %28  ;;  %v33_v7 = vpop.xlane.xlu1 %32 }
  0x8e   :  { %v37_v8 = vmul.f32 0.0078125, %v29_v6  ;;  %v39_v9 = vmul.f32 0.0078125, %v33_v7 }
  0x90   :  { %v604_v10 = vsub.f32 %v486_v2, %v37_v8  ;;  %v606_v11 = vsub.f32 %v490_v3, %v39_v9 }
  0x91   :  { %v31_v12 = vpop.xlane.xlu0 %30  ;;  %v35_v13 = vpop.xlane.xlu1 %34 }
  0x92   :  { %v38_v14 = vmul.f32 0.0078125, %v31_v12  ;;  %v45_v15 = vmul.f32 %v604_v10, %v604_v10  ;;  %v40_v16 = vmul.f32 0.0078125, %v35_v13  ;;  %v47_v19 = vmul.f32 %v606_v11, %v606_v11 }
  0x94   :  { %v610_v17 = vsub.f32 %v487_v4, %v38_v14  ;;  %49 = vadd.xlane.f32.xlu0 %v45_v15  ;;  %v612_v18 = vsub.f32 %v491_v5, %v40_v16 }
  0x96   :  { %v46_v20 = vmul.f32 %v610_v17, %v610_v17  ;;  %v48_v21 = vmul.f32 %v612_v18, %v612_v18 }
  0x98   :  { %53 = vadd.xlane.f32.xlu0 %v47_v19  ;;  %51 = vadd.xlane.f32.xlu1 %v46_v20 }
  0x9c   :  { %55 = vadd.xlane.f32.xlu1 %v48_v21 }
 0x11d   :  { %v50_v47 = vpop.xlane.xlu0 %49 }
 0x11e   :  { %v57_v48 = vmul.f32 0.0078125, %v50_v47 }
 0x120   :  { %v61_v49 = vadd.f32 1e-05, %v57_v48 }
 0x121   :  { %v52_v50 = vpop.xlane.xlu1 %51  ;;  %v54_v51 = vpop.xlane.xlu0 %53 }
 0x122   :  { %569 = vrsqrt.f32 %v61_v49  ;;  %v58_v52 = vmul.f32 0.0078125, %v52_v50  ;;  %v59_v53 = vmul.f32 0.0078125, %v54_v51 }
 0x124   :  { %v62_v54 = vadd.f32 1e-05, %v58_v52  ;;  %v63_v55 = vadd.f32 1e-05, %v59_v53 }
 0x125   :  { %v56_v56 = vpop.xlane.xlu1 %55 }
 0x126   :  { %571 = vrsqrt.f32 %v62_v54  ;;  %v60_v57 = vmul.f32 0.0078125, %v56_v56 }
 0x127   :  { %573 = vrsqrt.f32 %v63_v55 }
 0x128   :  { %v64_v58 = vadd.f32 1e-05, %v60_v57 }
 0x12a   :  { %575 = vrsqrt.f32 %v64_v58 }
 0x12f   :  { %v570_v59 = vpop.eup %569 }
 0x130   :  { %v69_v60 = vmul.f32 %v570_v59, %v604_v10 }
 0x132   :  { %v79_v1 = vmul.f32 %v433_v62, %v69_v60 }
 0x133   :  { %v572_v61 = vpop.eup %571 }
 0x134   :  { %v574_v63 = vpop.eup %573  ;;  %v70_v0 = vmul.f32 %v572_v61, %v610_v17 }
 0x135   :  { %v71_v3 = vmul.f32 %v574_v63, %v606_v11 }
 0x136   :  { %v80_v2 = vmul.f32 %v433_v62, %v70_v0 }
 0x137   :  { %v576_v4 = vpop.eup %575  ;;  %v81_v7 = vmul.f32 %v433_v62, %v71_v3 }
 0x138   :  { %v495_v5 = vpack.c.bf16 %v80_v2, %v79_v1  ;;  %v72_v6 = vmul.f32 %v576_v4, %v612_v18 }
 0x13a   :  { %496 = vst [vmem:[#allocation2] sm:$0xff] %v495_v5   ;;  %v82_v8 = vmul.f32 %v433_v62, %v72_v6 }
 0x13c   :  { %v500_v9 = vpack.c.bf16 %v82_v8, %v81_v7 }
 0x13e   :  { %503 = vst [vmem:[#allocation2 + $0x8] sm:$0xff] %v500_v9  }
 0x141   :  { %v566_v10 = vld [vmem:[#allocation2] sm:$0xff]  }
 0x142   :  { %312 = vmatmul.mubr.bf16.vlgmr.msra.gmra.mxu0 %v566_v10  ;;  %530 = vmatprep.mubr.bf16.mxu1 %v566_v10 }
 0x143   :  { %321 = vmatprep.mubr.bf16.mxu0 %v577_v45 }
 0x145   :  { %v568_v12 = vld [vmem:[#allocation2 + $0x8] sm:$0xff]  }
 0x146   :  { %531 = vmatmul.mubr.bf16.vlgmr.msra.gmra.mxu1 %v568_v12 }
 0x14a   :  { %322 = vmatmul.mubr.bf16.gmra.mxu0 %v568_v12 }
 0x202   :  { %v313_v13 = vpop.f32.mrf.mxu0 }
 0x204   :  { %v315_v14 = vpop.f32.mrf.mxu0 }
 0x205   :  { %v476_v15 = vpack.c.bf16 %v315_v14, %v313_v13 }
 0x206   :  { %v317_v11 = vpop.f32.mrf.mxu0  ;;  %v532_v16 = vpop.f32.mrf.mxu1 }
 0x207   :  { %421 = vst [vmem:[%s726_s3] sm:$0xff] %v476_v15  ;;  %v481_v17 = vpack.c.bf16 %v532_v16, %v532_v16 }
 0x208   :  { %v319_v18 = vpop.f32.mrf.mxu0  ;;  %v366_v19 = vpop.f32.mrf.mxu1 }
 0x209   :  { %426 = vst [vmem:[%s726_s3 + $0x20] sm:$0xf] %v481_v17  ;;  %v478_v20 = vpack.c.bf16 %v319_v18, %v317_v11  ;;  %v477_v21 = vpack.c.bf16 %v366_v19, %v366_v19 }
 0x20a   :  { %v323_v22 = vpop.f32.mrf.mxu0  ;;  %v533_v23 = vpop.f32.mrf.mxu1 }
 0x20b   :  { %423 = vst [vmem:[%s726_s3 + $0xc] sm:$0xff] %v478_v20  ;;  %422 = vst [vmem:[%s726_s3 + $0x8] sm:$0xf] %v477_v21  ;;  %v483_v24 = vpack.c.bf16 %v533_v23, %v533_v23 }
 0x20c   :  { %v325_v25 = vpop.f32.mrf.mxu0  ;;  %v369_v26 = vpop.f32.mrf.mxu1 }
 0x20d   :  { %428 = vst [vmem:[%s726_s3 + $0x2c] sm:$0xf] %v483_v24  ;;  %v480_v27 = vpack.c.bf16 %v325_v25, %v323_v22  ;;  %v479_v28 = vpack.c.bf16 %v369_v26, %v369_v26 }
 0x20e   :  { %v327_v29 = vpop.f32.mrf.mxu0 }
 0x20f   :  { %425 = vst [vmem:[%s726_s3 + $0x18] sm:$0xff] %v480_v27  ;;  %424 = vst [vmem:[%s726_s3 + $0x14] sm:$0xf] %v479_v28 }
 0x210   :  { %v329_v30 = vpop.f32.mrf.mxu0 }
 0x211   :  { %v482_v31 = vpack.c.bf16 %v329_v30, %v327_v29 }
 0x213   :  { %427 = vst [vmem:[%s726_s3 + $0x24] sm:$0xff] %v482_v31 }

// kernel: transformer_forward.12
= control target key start
LH: loop header
LB: loop body
LE: loop exit
PB: predicated region body
PF: predicated region fallthrough
CT: control target
= control target key end

     0   :  { %v1223_v54 = vmov 0   ;;  %s1536_s0 = inlined_call_operand.vmem [shape: bf16[32,128], index: 0, kind: input, shape index: {}]   ;;  %s1537_s2 = inlined_call_operand.vmem [shape: bf16[128,512], index: 2, kind: input, shape index: {}]   ;;  %s1538_s3 = inlined_call_operand.vmem [shape: bf16[512,128], index: 3, kind: input, shape index: {}]   ;;  %s1539_s1 = inlined_call_operand.vmem [shape: f32[1,128], index: 1, kind: input, shape index: {}]   ;;  %s1540_s4 = inlined_call_operand.vmem [shape: bf16[32,128], index: 4, kind: output, shape index: {}]  }
   0x1   :  { %v1005_v0 = vld [vmem:[%s1536_s0] sm:$0xff]   ;;  %v1040_v1 = vld [vmem:[%s1536_s0 + $0x8] sm:$0xff]   ;;  %350 = vmatprep.mubr.bf16.mxu0 %v1223_v54  ;;  %403 = vmatprep.mubr.bf16.mxu1 %v1223_v54  ;;  %v1151_v55 = vld [vmem:[%s1538_s3 + $0x78] sm:$0xff]  }
   0x2   :  { %v1255_v2 = vunpack.c.l.bf16 %v1005_v0  ;;  %v1257_v3 = vunpack.c.l.bf16 %v1040_v1  ;;  %v1261_v4 = vunpack.c.h.bf16 %v1005_v0  ;;  %v1263_v5 = vunpack.c.h.bf16 %v1040_v1  ;;  %v1101_v22 = vld [vmem:[%s1537_s2 + $0xe4] ss:$16 sps:$4 sm:$0xff]   ;;  %v1103_v23 = vld [vmem:[%s1537_s2 + $0xec] ss:$16 sps:$4 sm:$0xff]   ;;  %v1105_v24 = vld [vmem:[%s1537_s2 + $0xe0] ss:$16 sps:$4 sm:$0xff]  }
   0x3   :  { %318 = vmatprep.subr.bf16.mxu0 %v1101_v22  ;;  %v1106_v25 = vld [vmem:[%s1537_s2 + $0xe8] ss:$16 sps:$4 sm:$0xff]   ;;  %371 = vmatprep.subr.bf16.mxu1 %v1103_v23  ;;  %v1107_v26 = vld [vmem:[%s1537_s2 + $0xc4] ss:$16 sps:$4 sm:$0xff]   ;;  %v1109_v27 = vld [vmem:[%s1537_s2 + $0xcc] ss:$16 sps:$4 sm:$0xff]  }
   0x4   :  { %31 = vadd.xlane.f32.xlu0 %v1255_v2  ;;  %35 = vadd.xlane.f32.xlu1 %v1257_v3  ;;  %v1111_v28 = vld [vmem:[%s1537_s2 + $0xc0] ss:$16 sps:$4 sm:$0xff]   ;;  %v1112_v29 = vld [vmem:[%s1537_s2 + $0xc8] ss:$16 sps:$4 sm:$0xff]   ;;  %v1113_v30 = vld [vmem:[%s1537_s2 + $0xa4] ss:$16 sps:$4 sm:$0xff]  }
   0x5   :  { %319 = vmatpush1.bf16.msra.mxu0 %v1105_v24  ;;  %372 = vmatpush1.bf16.msra.mxu1 %v1106_v25  ;;  %v1115_v31 = vld [vmem:[%s1537_s2 + $0xac] ss:$16 sps:$4 sm:$0xff]   ;;  %v1117_v32 = vld [vmem:[%s1537_s2 + $0xa0] ss:$16 sps:$4 sm:$0xff]   ;;  %v1118_v33 = vld [vmem:[%s1537_s2 + $0xa8] ss:$16 sps:$4 sm:$0xff]  }
   0x6   :  { %320 = vmatprep.subr.bf16.mxu0 %v1107_v26  ;;  %373 = vmatprep.subr.bf16.mxu1 %v1109_v27  ;;  %v1119_v34 = vld [vmem:[%s1537_s2 + $0x84] ss:$16 sps:$4 sm:$0xff]   ;;  %v1121_v35 = vld [vmem:[%s1537_s2 + $0x8c] ss:$16 sps:$4 sm:$0xff]   ;;  %v1123_v36 = vld [vmem:[%s1537_s2 + $0x80] ss:$16 sps:$4 sm:$0xff]  }
   0x7   :  { %v1124_v37 = vld [vmem:[%s1537_s2 + $0x88] ss:$16 sps:$4 sm:$0xff]   ;;  %v1125_v38 = vld [vmem:[%s1537_s2 + $0x64] ss:$16 sps:$4 sm:$0xff]   ;;  %v1127_v39 = vld [vmem:[%s1537_s2 + $0x6c] ss:$16 sps:$4 sm:$0xff]  }
   0x8   :  { %33 = vadd.xlane.f32.xlu0 %v1261_v4  ;;  %37 = vadd.xlane.f32.xlu1 %v1263_v5  ;;  %v1129_v40 = vld [vmem:[%s1537_s2 + $0x60] ss:$16 sps:$4 sm:$0xff]   ;;  %v1130_v41 = vld [vmem:[%s1537_s2 + $0x68] ss:$16 sps:$4 sm:$0xff]   ;;  %v1131_v42 = vld [vmem:[%s1537_s2 + $0x44] ss:$16 sps:$4 sm:$0xff]  }
   0x9   :  { %321 = vmatpush1.bf16.msra.mxu0 %v1111_v28  ;;  %374 = vmatpush1.bf16.msra.mxu1 %v1112_v29  ;;  %v1133_v43 = vld [vmem:[%s1537_s2 + $0x4c] ss:$16 sps:$4 sm:$0xff]   ;;  %v1135_v44 = vld [vmem:[%s1537_s2 + $0x40] ss:$16 sps:$4 sm:$0xff]   ;;  %v1136_v45 = vld [vmem:[%s1537_s2 + $0x48] ss:$16 sps:$4 sm:$0xff]  }
   0xa   :  { %322 = vmatprep.subr.bf16.mxu0 %v1113_v30  ;;  %375 = vmatprep.subr.bf16.mxu1 %v1115_v31  ;;  %v1137_v46 = vld [vmem:[%s1537_s2 + $0x24] ss:$16 sps:$4 sm:$0xff]   ;;  %v1139_v47 = vld [vmem:[%s1537_s2 + $0x2c] ss:$16 sps:$4 sm:$0xff]   ;;  %v1141_v48 = vld [vmem:[%s1537_s2 + $0x20] ss:$16 sps:$4 sm:$0xff]  }
   0xb   :  { %v1142_v49 = vld [vmem:[%s1537_s2 + $0x28] ss:$16 sps:$4 sm:$0xff]   ;;  %v1143_v50 = vld [vmem:[%s1537_s2 + $0x4] ss:$16 sps:$4 sm:$0xff]   ;;  %v1145_v51 = vld [vmem:[%s1537_s2 + $0xc] ss:$16 sps:$4 sm:$0xff]  }
   0xc   :  { %v1147_v52 = vld [vmem:[%s1537_s2] ss:$16 sps:$4 sm:$0xff]   ;;  %v1148_v53 = vld [vmem:[%s1537_s2 + $0x8] ss:$16 sps:$4 sm:$0xff]  }
   0xd   :  { %323 = vmatpush1.bf16.msra.mxu0 %v1117_v32  ;;  %376 = vmatpush1.bf16.msra.mxu1 %v1118_v33  ;;  %v1152_v56 = vld [vmem:[%s1538_s3 + $0xf8] sm:$0xff]   ;;  %v1156_v29 = vld [vmem:[%s1538_s3 + $0xf0] sm:$0xff]   ;;  %v1159_v32 = vld [vmem:[%s1538_s3 + $0x68] sm:$0xff]  }
   0xe   :  { %324 = vmatprep.subr.bf16.mxu0 %v1119_v34  ;;  %377 = vmatprep.subr.bf16.mxu1 %v1121_v35  ;;  %v1153_v27 = vld [vmem:[%s1538_s3 + $0x38] sm:$0xff]   ;;  %v1157_v30 = vld [vmem:[%s1538_s3 + $0x30] sm:$0xff]   ;;  %v1160_v33 = vld [vmem:[%s1538_s3 + $0xe8] sm:$0xff]  }
   0xf   :  { %v1158_v31 = vld [vmem:[%s1538_s3 + $0xb0] sm:$0xff]   ;;  %v1161_v34 = vld [vmem:[%s1538_s3 + $0x28] sm:$0xff]  }
  0x10   :  { %v1162_v35 = vld [vmem:[%s1538_s3 + $0xa8] sm:$0xff]  }
  0x11   :  { %325 = vmatpush1.bf16.msra.mxu0 %v1123_v36  ;;  %378 = vmatpush1.bf16.msra.mxu1 %v1124_v37  ;;  %v1163_v36 = vld [vmem:[%s1538_s3 + $0x60] sm:$0xff]  }
  0x12   :  { %326 = vmatprep.subr.bf16.mxu0 %v1125_v38  ;;  %379 = vmatprep.subr.bf16.mxu1 %v1127_v39  ;;  %v1164_v37 = vld [vmem:[%s1538_s3 + $0xe0] sm:$0xff]  }
  0x13   :  { %v1165_v38 = vld [vmem:[%s1538_s3 + $0x20] sm:$0xff]  }
  0x14   :  { %v1166_v39 = vld [vmem:[%s1538_s3 + $0xa0] sm:$0xff]  }
  0x15   :  { %327 = vmatpush1.bf16.msra.mxu0 %v1129_v40  ;;  %380 = vmatpush1.bf16.msra.mxu1 %v1130_v41  ;;  %v1167_v40 = vld [vmem:[%s1538_s3 + $0x58] sm:$0xff]  }
  0x16   :  { %328 = vmatprep.subr.bf16.mxu0 %v1131_v42  ;;  %381 = vmatprep.subr.bf16.mxu1 %v1133_v43  ;;  %v1168_v41 = vld [vmem:[%s1538_s3 + $0xd8] sm:$0xff]  }
  0x17   :  { %v1169_v42 = vld [vmem:[%s1538_s3 + $0x18] sm:$0xff]  }
  0x18   :  { %v1170_v43 = vld [vmem:[%s1538_s3 + $0x98] sm:$0xff]  }
  0x19   :  { %329 = vmatpush1.bf16.msra.mxu0 %v1135_v44  ;;  %382 = vmatpush1.bf16.msra.mxu1 %v1136_v45  ;;  %v1171_v44 = vld [vmem:[%s1538_s3 + $0x50] sm:$0xff]  }
  0x1a   :  { %330 = vmatprep.subr.bf16.mxu0 %v1137_v46  ;;  %383 = vmatprep.subr.bf16.mxu1 %v1139_v47  ;;  %v1172_v45 = vld [vmem:[%s1538_s3 + $0xd0] sm:$0xff]  }
  0x1b   :  { %v1173_v46 = vld [vmem:[%s1538_s3 + $0x10] sm:$0xff]  }
  0x1c   :  { %v1174_v47 = vld [vmem:[%s1538_s3 + $0x90] sm:$0xff]  }
  0x1d   :  { %331 = vmatpush1.bf16.msra.mxu0 %v1141_v48  ;;  %384 = vmatpush1.bf16.msra.mxu1 %v1142_v49  ;;  %v1175_v48 = vld [vmem:[%s1538_s3 + $0x48] sm:$0xff]  }
  0x1e   :  { %332 = vmatprep.subr.bf16.mxu0 %v1143_v50  ;;  %385 = vmatprep.subr.bf16.mxu1 %v1145_v51  ;;  %v1176_v49 = vld [vmem:[%s1538_s3 + $0xc8] sm:$0xff]  }
  0x1f   :  { %v1177_v50 = vld [vmem:[%s1538_s3 + $0x8] sm:$0xff]  }
  0x20   :  { %v1178_v51 = vld [vmem:[%s1538_s3 + $0x88] sm:$0xff]  }
  0x21   :  { %333 = vmatpush1.bf16.msra.mxu0 %v1147_v52  ;;  %386 = vmatpush1.bf16.msra.mxu1 %v1148_v53  ;;  %v1179_v52 = vld [vmem:[%s1538_s3 + $0x40] sm:$0xff]  }
  0x22   :  { %1044 = vmatprep.subr.bf16.mxu0 %v1151_v55  ;;  %1072 = vmatprep.subr.bf16.mxu1 %v1152_v56  ;;  %v1180_v53 = vld [vmem:[%s1538_s3 + $0xc0] sm:$0xff]  }
  0x23   :  { %v1182_v55 = vld [vmem:[%s1538_s3 + $0x80] sm:$0xff]  }
  0x8d   :  { %v32_v6 = vpop.xlane.xlu0 %31  ;;  %v36_v7 = vpop.xlane.xlu1 %35 }
  0x8e   :  { %v40_v8 = vmul.f32 0.0078125, %v32_v6  ;;  %v42_v9 = vmul.f32 0.0078125, %v36_v7 }
  0x90   :  { %v1268_v10 = vsub.f32 %v1255_v2, %v40_v8  ;;  %v1271_v11 = vsub.f32 %v1257_v3, %v42_v9 }
  0x91   :  { %v34_v12 = vpop.xlane.xlu0 %33  ;;  %v38_v13 = vpop.xlane.xlu1 %37 }
  0x92   :  { %v41_v14 = vmul.f32 0.0078125, %v34_v12  ;;  %v48_v15 = vmul.f32 %v1268_v10, %v1268_v10  ;;  %v43_v16 = vmul.f32 0.0078125, %v38_v13  ;;  %v50_v19 = vmul.f32 %v1271_v11, %v1271_v11 }
  0x94   :  { %v1276_v17 = vsub.f32 %v1261_v4, %v41_v14  ;;  %52 = vadd.xlane.f32.xlu0 %v48_v15  ;;  %v1279_v18 = vsub.f32 %v1263_v5, %v43_v16  ;;  %v921_v14 = vld [vmem:[%s1539_s1] ss:$0 sm:$0xff] }
  0x96   :  { %v49_v20 = vmul.f32 %v1276_v17, %v1276_v17  ;;  %v51_v21 = vmul.f32 %v1279_v18, %v1279_v18 }
  0x98   :  { %56 = vadd.xlane.f32.xlu0 %v50_v19  ;;  %54 = vadd.xlane.f32.xlu1 %v49_v20 }
  0x9c   :  { %58 = vadd.xlane.f32.xlu1 %v51_v21 }
 0x11d   :  { %v53_v57 = vpop.xlane.xlu0 %52 }
 0x11e   :  { %v60_v58 = vmul.f32 0.0078125, %v53_v57 }
 0x120   :  { %v64_v59 = vadd.f32 1e-05, %v60_v58 }
 0x121   :  { %v55_v60 = vpop.xlane.xlu1 %54  ;;  %v57_v61 = vpop.xlane.xlu0 %56 }
 0x122   :  { %1183 = vrsqrt.f32 %v64_v59  ;;  %v61_v62 = vmul.f32 0.0078125, %v55_v60  ;;  %v62_v63 = vmul.f32 0.0078125, %v57_v61 }
 0x124   :  { %v65_v0 = vadd.f32 1e-05, %v61_v62  ;;  %v66_v1 = vadd.f32 1e-05, %v62_v63 }
 0x125   :  { %v59_v6 = vpop.xlane.xlu1 %58 }
 0x126   :  { %1185 = vrsqrt.f32 %v65_v0  ;;  %v63_v7 = vmul.f32 0.0078125, %v59_v6 }
 0x127   :  { %1187 = vrsqrt.f32 %v66_v1 }
 0x128   :  { %v67_v8 = vadd.f32 1e-05, %v63_v7 }
 0x12a   :  { %1189 = vrsqrt.f32 %v67_v8 }
 0x12f   :  { %v1184_v9 = vpop.eup %1183 }
 0x130   :  { %v72_v12 = vmul.f32 %v1184_v9, %v1268_v10 }
 0x132   :  { %v82_v19 = vmul.f32 %v921_v14, %v72_v12 }
 0x133   :  { %v1186_v13 = vpop.eup %1185 }
 0x134   :  { %v1188_v15 = vpop.eup %1187  ;;  %v73_v16 = vmul.f32 %v1186_v13, %v1276_v17  ;;  %v1154_v17 = vld [vmem:[%s1538_s3 + $0xb8] sm:$0xff]  }
 0x135   :  { %v74_v21 = vmul.f32 %v1188_v15, %v1271_v11 }
 0x136   :  { %v83_v20 = vmul.f32 %v921_v14, %v73_v16 }
 0x137   :  { %v1190_v22 = vpop.eup %1189  ;;  %v84_v25 = vmul.f32 %v921_v14, %v74_v21 }
 0x138   :  { %v1015_v23 = vpack.c.bf16 %v83_v20, %v82_v19  ;;  %v75_v24 = vmul.f32 %v1190_v22, %v1279_v18  ;;  %v1155_v18 = vld [vmem:[%s1538_s3 + $0x70] sm:$0xff]  }
 0x13a   :  { %1016 = vst [vmem:[#allocation2] sm:$0xff] %v1015_v23   ;;  %v85_v26 = vmul.f32 %v921_v14, %v75_v24 }
 0x13c   :  { %v1020_v10 = vpack.c.bf16 %v85_v26, %v84_v25 }
 0x13e   :  { %1041 = vst [vmem:[#allocation2 + $0x8] sm:$0xff] %v1020_v10  }
 0x141   :  { %v1149_v28 = vld [vmem:[#allocation2] sm:$0xff]  }
 0x142   :  { %351 = vmatmul.mubr.bf16.vlgmr.msra.gmra.mxu0 %v1149_v28  ;;  %404 = vmatmul.mubr.bf16.vlgmr.msra.gmra.mxu1 %v1149_v28 }
 0x143   :  { %360 = vmatprep.mubr.bf16.mxu0 %v1223_v54  ;;  %413 = vmatprep.mubr.bf16.mxu1 %v1223_v54  ;;  %v1181_v54 = vld [vmem:[%s1538_s3] sm:$0xff]  }
 0x144   :  { %1045 = vmatpush3.bf16.msra.mxu0 %v1153_v27  ;;  %1073 = vmatpush3.bf16.msra.mxu1 %v1154_v17 }
 0x145   :  { %v1150_v11 = vld [vmem:[#allocation2 + $0x8] sm:$0xff]   ;;  %1046 = vmatprep.subr.bf16.mxu0 %v1155_v18  ;;  %1074 = vmatprep.subr.bf16.mxu1 %v1156_v29 }
 0x148   :  { %1047 = vmatpush3.bf16.msra.mxu0 %v1157_v30  ;;  %1075 = vmatpush3.bf16.msra.mxu1 %v1158_v31 }
 0x149   :  { %1048 = vmatprep.subr.bf16.mxu0 %v1159_v32  ;;  %1076 = vmatprep.subr.bf16.mxu1 %v1160_v33 }
 0x14a   :  { %361 = vmatmul.mubr.bf16.gmra.mxu0 %v1150_v11  ;;  %414 = vmatmul.mubr.bf16.gmra.mxu1 %v1150_v11 }
 0x14c   :  { %1049 = vmatpush3.bf16.msra.mxu0 %v1161_v34  ;;  %1077 = vmatpush3.bf16.msra.mxu1 %v1162_v35 }
 0x14d   :  { %1050 = vmatprep.subr.bf16.mxu0 %v1163_v36  ;;  %1078 = vmatprep.subr.bf16.mxu1 %v1164_v37 }
 0x150   :  { %1051 = vmatpush3.bf16.msra.mxu0 %v1165_v38  ;;  %1079 = vmatpush3.bf16.msra.mxu1 %v1166_v39 }
 0x151   :  { %1052 = vmatprep.subr.bf16.mxu0 %v1167_v40  ;;  %1080 = vmatprep.subr.bf16.mxu1 %v1168_v41 }
 0x154   :  { %1053 = vmatpush3.bf16.msra.mxu0 %v1169_v42  ;;  %1081 = vmatpush3.bf16.msra.mxu1 %v1170_v43 }
 0x155   :  { %1054 = vmatprep.subr.bf16.mxu0 %v1171_v44  ;;  %1082 = vmatprep.subr.bf16.mxu1 %v1172_v45 }
 0x158   :  { %1055 = vmatpush3.bf16.msra.mxu0 %v1173_v46  ;;  %1083 = vmatpush3.bf16.msra.mxu1 %v1174_v47 }
 0x159   :  { %1056 = vmatprep.subr.bf16.mxu0 %v1175_v48  ;;  %1084 = vmatprep.subr.bf16.mxu1 %v1176_v49 }
 0x15c   :  { %1057 = vmatpush3.bf16.msra.mxu0 %v1177_v50  ;;  %1085 = vmatpush3.bf16.msra.mxu1 %v1178_v51 }
 0x15d   :  { %1058 = vmatprep.subr.bf16.mxu0 %v1179_v52  ;;  %1086 = vmatprep.subr.bf16.mxu1 %v1180_v53 }
 0x160   :  { %1059 = vmatpush3.bf16.msra.mxu0 %v1181_v54  ;;  %1087 = vmatpush3.bf16.msra.mxu1 %v1182_v55 }
 0x202   :  { %v352_v56 = vpop.f32.mrf.mxu0  ;;  %v1486_v57 = vpop.f32.mrf.mxu1 }
 0x203   :  { %v440_v58 = vmul.f32 0.70710677, %v352_v56  ;;  %v442_v59 = vmul.f32 0.70710677, %v1486_v57  ;;  %v424_v34 = vmul.f32 0.5, %v352_v56  ;;  %v426_v54 = vmul.f32 0.5, %v1486_v57 }
 0x204   :  { %v354_v60 = vpop.f32.mrf.mxu0  ;;  %v1489_v61 = vpop.f32.mrf.mxu1 }
 0x205   :  { %1191 = verf.f32 %v440_v58  ;;  %v441_v62 = vmul.f32 0.70710677, %v354_v60  ;;  %v443_v63 = vmul.f32 0.70710677, %v1489_v61  ;;  %v425_v35 = vmul.f32 0.5, %v354_v60 }
 0x206   :  { %1193 = verf.f32 %v442_v59  ;;  %v356_v0 = vpop.f32.mrf.mxu0  ;;  %v409_v1 = vpop.f32.mrf.mxu1  ;;  %v427_v49 = vmul.f32 0.5, %v1489_v61 }
 0x207   :  { %1195 = verf.f32 %v441_v62  ;;  %v444_v6 = vmul.f32 0.70710677, %v356_v0  ;;  %v446_v7 = vmul.f32 0.70710677, %v409_v1  ;;  %v428_v41 = vmul.f32 0.5, %v356_v0 }
 0x208   :  { %1197 = verf.f32 %v443_v63  ;;  %v358_v8 = vpop.f32.mrf.mxu0  ;;  %v411_v9 = vpop.f32.mrf.mxu1  ;;  %v430_v45 = vmul.f32 0.5, %v409_v1 }
 0x209   :  { %1199 = verf.f32 %v444_v6  ;;  %v445_v12 = vmul.f32 0.70710677, %v358_v8  ;;  %v447_v13 = vmul.f32 0.70710677, %v411_v9  ;;  %v429_v46 = vmul.f32 0.5, %v358_v8 }
 0x20a   :  { %1201 = verf.f32 %v446_v7  ;;  %v1492_v14 = vpop.f32.mrf.mxu0  ;;  %v1494_v15 = vpop.f32.mrf.mxu1  ;;  %v431_v51 = vmul.f32 0.5, %v411_v9 }
 0x20b   :  { %1203 = verf.f32 %v445_v12  ;;  %v448_v16 = vmul.f32 0.70710677, %v1492_v14  ;;  %v450_v19 = vmul.f32 0.70710677, %v1494_v15  ;;  %v432_v61 = vmul.f32 0.5, %v1492_v14 }
 0x20c   :  { %1205 = verf.f32 %v447_v13  ;;  %v1498_v20 = vpop.f32.mrf.mxu0  ;;  %v1500_v21 = vpop.f32.mrf.mxu1 }
 0x20d   :  { %1207 = verf.f32 %v448_v16  ;;  %v449_v22 = vmul.f32 0.70710677, %v1498_v20  ;;  %v451_v23 = vmul.f32 0.70710677, %v1500_v21  ;;  %v433_v16 = vmul.f32 0.5, %v1498_v20 }
 0x20e   :  { %1209 = verf.f32 %v450_v19  ;;  %v1504_v24 = vpop.f32.mrf.mxu0  ;;  %v1506_v25 = vpop.f32.mrf.mxu1  ;;  %v435_v20 = vmul.f32 0.5, %v1500_v21 }
 0x20f   :  { %1211 = verf.f32 %v449_v22  ;;  %v452_v26 = vmul.f32 0.70710677, %v1504_v24  ;;  %v454_v10 = vmul.f32 0.70710677, %v1506_v25  ;;  %v438_v14 = vmul.f32 0.5, %v1506_v25 }
 0x210   :  { %1213 = verf.f32 %v451_v23  ;;  %v1510_v27 = vpop.f32.mrf.mxu0  ;;  %v1512_v17 = vpop.f32.mrf.mxu1 }
 0x211   :  { %1215 = verf.f32 %v452_v26  ;;  %v453_v28 = vmul.f32 0.70710677, %v1510_v27  ;;  %v455_v18 = vmul.f32 0.70710677, %v1512_v17 }
 0x212   :  { %v1192_v11 = vpop.eup %1191  ;;  %1217 = verf.f32 %v454_v10  ;;  %v436_v10 = vmul.f32 0.5, %v1504_v24 }
 0x213   :  { %v1194_v29 = vpop.eup %1193  ;;  %1219 = verf.f32 %v453_v28  ;;  %v472_v39 = vadd.f32 1.0, %v1192_v11 }
 0x214   :  { %v1196_v30 = vpop.eup %1195  ;;  %1221 = verf.f32 %v455_v18  ;;  %v474_v44 = vadd.f32 1.0, %v1194_v29  ;;  %v437_v29 = vmul.f32 0.5, %v1510_v27 }
 0x215   :  { %v1198_v31 = vpop.eup %1197  ;;  %v473_v36 = vadd.f32 1.0, %v1196_v30  ;;  %v488_v60 = vmul.f32 %v472_v39, %v424_v34  ;;  %v434_v34 = vmul.f32 0.5, %v1494_v15 }
 0x216   :  { %v1200_v32 = vpop.eup %1199  ;;  %v475_v40 = vadd.f32 1.0, %v1198_v31  ;;  %v490_v1 = vmul.f32 %v474_v44, %v426_v54 }
 0x217   :  { %v1202_v33 = vpop.eup %1201  ;;  %v476_v37 = vadd.f32 1.0, %v1200_v32  ;;  %v489_v55 = vmul.f32 %v473_v36, %v425_v35  ;;  %v439_v32 = vmul.f32 0.5, %v1512_v17 }
 0x218   :  { %v1204_v38 = vpop.eup %1203  ;;  %v478_v42 = vadd.f32 1.0, %v1202_v33  ;;  %v491_v62 = vmul.f32 %v475_v40, %v427_v49 }
 0x219   :  { %v1206_v43 = vpop.eup %1205  ;;  %v477_v47 = vadd.f32 1.0, %v1204_v38  ;;  %v492_v50 = vmul.f32 %v476_v37, %v428_v41 }
 0x21a   :  { %v1208_v48 = vpop.eup %1207  ;;  %v479_v52 = vadd.f32 1.0, %v1206_v43  ;;  %v494_v56 = vmul.f32 %v478_v42, %v430_v45 }
 0x21b   :  { %v1210_v53 = vpop.eup %1209  ;;  %v493_v58 = vmul.f32 %v477_v47, %v429_v46  ;;  %v508_v8 = vpack.c.bf16 %v492_v50, %v488_v60  ;;  %v480_v23 = vadd.f32 1.0, %v1208_v48 }
 0x21c   :  { %v1212_v59 = vpop.eup %1211  ;;  %v495_v63 = vmul.f32 %v479_v52, %v431_v51  ;;  %v510_v13 = vpack.c.bf16 %v494_v56, %v490_v1  ;;  %v482_v18 = vadd.f32 1.0, %v1210_v53 }
 0x21d   :  { %v1214_v0 = vpop.eup %1213  ;;  %v509_v6 = vpack.c.bf16 %v493_v58, %v489_v55  ;;  %v481_v57 = vadd.f32 1.0, %v1212_v59  ;;  %v496_v37 = vmul.f32 %v480_v23, %v432_v61 }
 0x21e   :  { %v1216_v7 = vpop.eup %1215  ;;  %v511_v12 = vpack.c.bf16 %v495_v63, %v491_v62  ;;  %v483_v26 = vadd.f32 1.0, %v1214_v0  ;;  %v498_v40 = vmul.f32 %v482_v18, %v434_v34 }
 0x21f   :  { %v1218_v9 = vpop.eup %1217  ;;  %v484_v19 = vadd.f32 1.0, %v1216_v7  ;;  %804 = vmatprep.mubr.bf16.mxu0 %v509_v6  ;;  %v497_v24 = vmul.f32 %v481_v57, %v433_v16 }
 0x220   :  { %v1220_v22 = vpop.eup %1219  ;;  %v486_v28 = vadd.f32 1.0, %v1218_v9  ;;  %853 = vmatprep.mubr.bf16.mxu1 %v511_v12  ;;  %805 = vmatmul.mubr.bf16.vlgmr.msra.gmra.mxu0 %v508_v8  ;;  %v499_v38 = vmul.f32 %v483_v26, %v435_v20 }
 0x221   :  { %v1222_v11 = vpop.eup %1221  ;;  %v485_v30 = vadd.f32 1.0, %v1220_v22  ;;  %854 = vmatmul.mubr.bf16.vlgmr.msra.gmra.mxu1 %v510_v13  ;;  %v500_v31 = vmul.f32 %v484_v19, %v436_v10 }
 0x222   :  { %v487_v33 = vadd.f32 1.0, %v1222_v11  ;;  %v502_v35 = vmul.f32 %v486_v28, %v438_v14 }
 0x223   :  { %v501_v36 = vmul.f32 %v485_v30, %v437_v29  ;;  %v512_v27 = vpack.c.bf16 %v500_v31, %v496_v37 }
 0x224   :  { %v503_v39 = vmul.f32 %v487_v33, %v439_v32  ;;  %v514_v42 = vpack.c.bf16 %v502_v35, %v498_v40 }
 0x225   :  { %v513_v25 = vpack.c.bf16 %v501_v36, %v497_v24 }
 0x226   :  { %v515_v41 = vpack.c.bf16 %v503_v39, %v499_v38 }
 0x227   :  { %812 = vmatprep.mubr.bf16.mxu0 %v513_v25 }
 0x228   :  { %861 = vmatprep.mubr.bf16.mxu1 %v515_v41  ;;  %813 = vmatmul.mubr.bf16.gmra.mxu0 %v512_v27 }
 0x229   :  { %862 = vmatmul.mubr.bf16.gmra.mxu1 %v514_v42 }
 0x2e0   :  { %v1060_v21 = vpop.f32.mrf.mxu0 }
 0x2e1   :  { %v1088_v17 = vpop.f32.mrf.mxu1 }
 0x2e2   :  { %v1061_v43 = vpop.f32.mrf.mxu0 }
 0x2e3   :  { %v1089_v44 = vpop.f32.mrf.mxu1  ;;  %v1062_v15 = vadd.f32 %v1061_v43, %v1060_v21 }
 0x2e4   :  { %v1090_v45 = vadd.f32 %v1089_v44, %v1088_v17  ;;  %v1063_v46 = vpop.f32.mrf.mxu0 }
 0x2e5   :  { %v1091_v47 = vpop.f32.mrf.mxu1 }
 0x2e6   :  { %v1064_v48 = vpop.f32.mrf.mxu0  ;;  %v856_v51 = vadd.f32 %v1090_v45, %v1062_v15 }
 0x2e7   :  { %v1065_v49 = vadd.f32 %v1064_v48, %v1063_v46  ;;  %v1092_v50 = vpop.f32.mrf.mxu1 }
 0x2e8   :  { %v1093_v52 = vadd.f32 %v1092_v50, %v1091_v47  ;;  %v1066_v53 = vpop.f32.mrf.mxu0  ;;  %v893_v59 = vadd.f32 %v1255_v2, %v856_v51 }
 0x2e9   :  { %v1094_v54 = vpop.f32.mrf.mxu1 }
 0x2ea   :  { %v859_v55 = vadd.f32 %v1093_v52, %v1065_v49  ;;  %v1067_v56 = vpop.f32.mrf.mxu0 }
 0x2eb   :  { %v1095_v58 = vpop.f32.mrf.mxu1  ;;  %v1068_v62 = vadd.f32 %v1067_v56, %v1066_v53 }
 0x2ec   :  { %v894_v60 = vadd.f32 %v1261_v4, %v859_v55  ;;  %v1096_v63 = vadd.f32 %v1095_v58, %v1094_v54  ;;  %v1069_v0 = vpop.f32.mrf.mxu0 }
 0x2ed   :  { %v1097_v1 = vpop.f32.mrf.mxu1 }
 0x2ee   :  { %v1033_v6 = vpack.c.bf16 %v894_v60, %v893_v59  ;;  %v1070_v7 = vpop.f32.mrf.mxu0  ;;  %v864_v12 = vadd.f32 %v1096_v63, %v1068_v62 }
 0x2ef   :  { %v1071_v8 = vadd.f32 %v1070_v7, %v1069_v0  ;;  %v1098_v61 = vpop.f32.mrf.mxu1 }
 0x2f0   :  { %1034 = vst [vmem:[%s1540_s4] sm:$0xff] %v1033_v6   ;;  %v1099_v9 = vadd.f32 %v1098_v61, %v1097_v1  ;;  %v895_v16 = vadd.f32 %v1257_v3, %v864_v12 }
 0x2f2   :  { %v867_v13 = vadd.f32 %v1099_v9, %v1071_v8 }
 0x2f4   :  { %v896_v2 = vadd.f32 %v1263_v5, %v867_v13 }
 0x2f6   :  { %v1038_v4 = vpack.c.bf16 %v896_v2, %v895_v16 }
 0x2f8   :  { %1043 = vst [vmem:[%s1540_s4 + $0x8] sm:$0xff] %v1038_v4  }

// kernel: transformer_forward.10
= control target key start
LH: loop header
LB: loop body
LE: loop exit
PB: predicated region body
PF: predicated region fallthrough
CT: control target
= control target key end

     0   :  { %s1728_s12 = smov 0   ;;  %s1730_s13 = smov 0   ;;  %s2113_s0 = inlined_call_operand.vmem [shape: bf16[2,16,384], index: 0, kind: input, shape index: {}, may-alias: {0,1,2}]   ;;  %s2114_s1 = inlined_call_operand.vmem [shape: bf16[2,16,384], index: 1, kind: input, shape index: {}, may-alias: {0,1,2}]   ;;  %s2115_s2 = inlined_call_operand.vmem [shape: bf16[2,16,384], index: 2, kind: input, shape index: {}, may-alias: {0,1,2}]   ;;  %s2116_s3 = inlined_call_operand.vmem [shape: bf16[2,16,128], index: 3, kind: output, shape index: {}]  }
   0x1   :  { %s1732_s14 = smov 0   ;;  %s1734_s15 = smov 0  }
   0x2   :  { %s1736_s16 = smov 0  }
   0x3 LB: > { %s32_s17 = sadd.s32 1, %s1694_s15  ;;  %p48_p1 = scmp.ne.s32.totalorder %s1686_s13, %s1682_s12  ;;  %s1698_s16 = sphi %s1736_s16, %s13_s16   ;;  %s1694_s15 = sphi %s1734_s15, %s2121_s15   ;;  %s1690_s14 = sphi %s1732_s14, %s2120_s14   ;;  %s1686_s13 = sphi %s1730_s13, %s2119_s13   ;;  %s1682_s12 = sphi %s1728_s12, %s2118_s12  }
   0x4   : > { %p34_p0 = scmp.ge.s32.totalorder %s32_s17, 2  ;;  %p49_p2 = scmp.eq.s32.totalorder %s1698_s16, 0 }
   0x5   : > { %s41_s20 = sadd.s32 1, %s1686_s13  ;;  %p1439_p5 = scmp.ge.s32.totalorder %s1698_s16, 2 }
   0x6   : > { %s2123_s17 = smov (%p34_p0, %s32_s17), 0  ;;  %p1759_p3 = por %p49_p2, %p48_p1 }
   0x7   : > { %s36_s19 = ssub.s32 %s1694_s15, %s2123_s17  ;;  %166 = sbr.rel (%p1439_p5) target bundleno = 30 (0x1e), region = 16 }
   0x8   : > { %p39_p4 = scmp.eq.s32.totalorder %s36_s19, 0 }
   0xa   : > { %s1767_s21 = scalar_select %p39_p4, %s1686_s13, %s41_s20  }
   0xc   : > { %169 = sbr.rel (!%p1759_p3) target bundleno = 18 (0x12), region = 20  ;;  %s171_s22 = sand.u32 (%p1759_p3), 1, %s1686_s13  }
   0xd   : > { %s1543_s23 = smul.u32 (%p1759_p3), 24, %s1694_s15  ;;  %s1440_s24 = sshll.u32 (%p1759_p3), %s171_s22, 3 }
   0xe   : > { %s173_s28 = scalar_lea.vmem (%p1759_p3), [#allocation5], %s1440_s24 }
   0xf   : > { %s179_s27 = scalar_lea.vmem (%p1759_p3), %s2113_s0, %s1543_s23 }
  0x10   : > { %v196_v0 = vld [vmem:[%s179_s27] sm:$0xf] (%p1759_p3)  ;;  %v198_v1 = vld [vmem:[%s179_s27 + $0xc] sm:$0xf] (%p1759_p3) }
  0x11   : > { %197 = vst [vmem:[%s173_s28] sm:$0xf] %v196_v0  ;;  %199 = vst [vmem:[%s173_s28 + $0x4] sm:$0xf] %v198_v1 }
  0x12 PF: > { %227 = sbr.rel (!%p1759_p3) target bundleno = 24 (0x18), region = 61  ;;  %s229_s29 = sand.u32 (%p1759_p3), 1, %s1686_s13  }
  0x13   : > { %s1443_s30 = smul.u32 (%p1759_p3), 24, %s1694_s15  ;;  %s1442_s4 = sshll.u32 (%p1759_p3), %s229_s29, 3 }
  0x14   : > { %s231_s8 = scalar_lea.vmem (%p1759_p3), [#allocation6], %s1442_s4 }
  0x15   : > { %s1342_s7 = scalar_lea.vmem (%p1759_p3), %s2114_s1, %s1443_s30 }
  0x16   : > { %v1444_v2 = vld [vmem:[%s1342_s7 + $0x4] sm:$0xf] (%p1759_p3)  ;;  %v1445_v3 = vld [vmem:[%s1342_s7 + $0x10] sm:$0xf] (%p1759_p3) }
  0x17   : > { %258 = vst [vmem:[%s231_s8] sm:$0xf] %v1444_v2  ;;  %260 = vst [vmem:[%s231_s8 + $0x4] sm:$0xf] %v1445_v3 }
  0x18 PF: > { %288 = sbr.rel (!%p1759_p3) target bundleno = 30 (0x1e), region = 102  ;;  %s290_s9 = sand.u32 (%p1759_p3), 1, %s1686_s13  }
  0x19   : > { %s1447_s10 = smul.u32 (%p1759_p3), 24, %s1694_s15  ;;  %s1446_s11 = sshll.u32 (%p1759_p3), %s290_s9, 3 }
  0x1a   : > { %s292_s23 = scalar_lea.vmem (%p1759_p3), [#allocation7], %s1446_s11 }
  0x1b   : > { %s1350_s22 = scalar_lea.vmem (%p1759_p3), %s2115_s2, %s1447_s10 }
  0x1c   : > { %v1448_v4 = vld [vmem:[%s1350_s22 + $0x8] sm:$0xf] (%p1759_p3)  ;;  %v1449_v5 = vld [vmem:[%s1350_s22 + $0x14] sm:$0xf] (%p1759_p3) }
  0x1d   : > { %319 = vst [vmem:[%s292_s23] sm:$0xf] %v1448_v4  ;;  %321 = vst [vmem:[%s292_s23 + $0x4] sm:$0xf] %v1449_v5 }
  0x1e PF: > { %p1450_p6 = scmp.ge.s32.totalorder %s1698_s16, 1  ;;  %p348_p7 = scmp.lt.s32.totalorder %s1698_s16, 3 }
  0x20   : > { %p349_p8 = pnand %p1450_p6, %p348_p7 }
  0x21   : > { %s355_s18 = sand.u32 (!%p349_p8), 1, %s1682_s12   ;;  %s1705_s26 = smov (!%p349_p8), 96  }
  0x22   : > { %352 = sbr.rel (%p349_p8) target bundleno = 1455 (0x5af), region = 143  ;;  %s1795_s24 = sshll.u32 (!%p349_p8), %s355_s18, 3 }
  0x23   : > { %s364_s12 = scalar_lea.vmem (!%p349_p8), [#allocation6], %s1795_s24  ;;  %s357_s25 = scalar_lea.vmem (!%p349_p8), [#allocation5], %s1795_s24 }
  0x24   : > { %s371_s27 = scalar_lea.vmem (!%p349_p8), [#allocation7], %s1795_s24  ;;  %s1706_s28 = smov (!%p349_p8), 64  }
  0x25   : > { %s1707_s29 = smov (!%p349_p8), 32   ;;  %p412_p9 = scmp.lt.s32.totalorder (!%p349_p8), %s1690_s14, 1 }
  0x27   : > { %vm443_vm0 = vcmask 261120   ;;  %v1700_v6 = vmov 0.0   ;;  %vm1701_vm1 = vmmov 0   ;;  %v1819_v7 = vld [vmem:[%s364_s12] sm:$0xff]   ;;  %v1825_v9 = vld [vmem:[%s357_s25] sm:$0xff]   ;;  %vm426_vm2 = vcmask 7168  }
  0x28   : > { %1495 = vmatprep.subr.bf16.mxu0 %v1700_v6  ;;  %444 = vst.msk [vmem:[#allocation4] sm:$0xff] %vm443_vm0, %v1700_v6  ;;  %445 = vst.msk [vmem:[#allocation4 + $0x8] sm:$0xff] %vm443_vm0, %v1700_v6  ;;  %1497 = vmatprep.mubr.msk.bf16.mxu0 %vm1701_vm1, %v1700_v6  ;;  %v493_v8 = vsel %vm443_vm0, %v1819_v7, 0  ;;  %v1702_v10 = vmov -inf   ;;  %v457_v11 = vlaneseq  ;;  %v1703_v16 = vmov -1e+30  }
  0x29   : > { %446 = vst.msk [vmem:[#allocation4 + $0x10] sm:$0xff] %vm443_vm0, %v1700_v6  ;;  %447 = vst.msk [vmem:[#allocation4 + $0x18] sm:$0xff] %vm443_vm0, %v1700_v6  ;;  %1501 = vmatprep.subr.bf16.mxu1 %v1700_v6  ;;  %1503 = vmatprep.mubr.msk.bf16.mxu1 %vm1701_vm1, %v1700_v6  ;;  %vm542_vm5 = vcmask 130048   ;;  %v1704_v28 = vmov 0   ;;  %v1886_v37 = vld [vmem:[%s371_s27] sm:$0xff]   ;;  %s2125_s14 = smov (!%p412_p9, %s1690_s14), 1 }
  0x2a   : > { %448 = vst.msk [vmem:[#allocation4 + $0x20] sm:$0xff] %vm443_vm0, %v1700_v6  ;;  %449 = vst.msk [vmem:[#allocation4 + $0x28] sm:$0xff] %vm443_vm0, %v1700_v6  ;;  %1496 = vmatpush3.bf16.xpose.msra.mxu0 %v493_v8  ;;  %v458_v12 = vshrl.u32 %v457_v11, 7  ;;  %v465_v13 = vand.u32 127, %v457_v11  ;;  %1592 = vset.pattern.permute.xlu1 %v1704_v28  ;;  %vm1283_vm6 = vcmask 523264   ;;  %s1471_s30 = sshll.u32 %s2125_s14, 3 }
  0x2b   : > { %450 = vst.msk [vmem:[#allocation4 + $0x30] sm:$0xff] %vm443_vm0, %v1700_v6  ;;  %451 = vst.msk [vmem:[#allocation4 + $0x38] sm:$0xff] %vm443_vm0, %v1700_v6  ;;  %1513 = vmatprep.subr.bf16.mxu0 %v1700_v6  ;;  %1593 = vset.pattern.permute.xlu0 %v1704_v28  ;;  %vm1286_vm7 = vcmask 785408   ;;  %s419_s6 = scalar_lea.vmem %s2116_s3, %s1471_s30 }
  0x2c   : > { %427 = vst.msk [vmem:[#allocation2] sm:$0xff] %vm426_vm2, %v1702_v10  ;;  %428 = vst.msk [vmem:[#allocation2 + $0x8] sm:$0xff] %vm426_vm2, %v1702_v10  ;;  %vm468_vm3 = vcmp.le.s32.totalorder %v465_v13, %v458_v12  ;;  %v459_v14 = vadd.s32 8, %v458_v12  ;;  %1502 = vmatpush3.bf16.msra.mxu1 %v1886_v37 }
  0x2d   : > { %429 = vst.msk [vmem:[#allocation2 + $0x10] sm:$0xff] %vm426_vm2, %v1702_v10  ;;  %430 = vst.msk [vmem:[#allocation2 + $0x18] sm:$0xff] %vm426_vm2, %v1702_v10  ;;  %v1855_v17 = vsel %vm468_vm3, 0.0, %v1703_v16  ;;  %1507 = vmatprep.subr.bf16.mxu1 %v1700_v6 }
  0x2e   : > { %431 = vst.msk [vmem:[#allocation2 + $0x20] sm:$0xff] %vm426_vm2, %v1702_v10  ;;  %432 = vst.msk [vmem:[#allocation2 + $0x28] sm:$0xff] %vm426_vm2, %v1702_v10  ;;  %vm469_vm4 = vcmp.le.s32.totalorder %v465_v13, %v459_v14 }
  0x2f   : > { %433 = vst.msk [vmem:[#allocation2 + $0x30] sm:$0xff] %vm426_vm2, %v1702_v10  ;;  %434 = vst.msk [vmem:[#allocation2 + $0x38] sm:$0xff] %vm426_vm2, %v1702_v10  ;;  %v1858_v22 = vsel %vm469_vm4, 0.0, %v1703_v16 }
  0x30   : > { %435 = vst.msk [vmem:[#allocation3] sm:$0xff] %vm426_vm2, %v1700_v6  ;;  %436 = vst.msk [vmem:[#allocation3 + $0x8] sm:$0xff] %vm426_vm2, %v1700_v6 }
  0x31   : > { %1498 = vmatmul.mubr.msk.bf16.vlgmr.msra.gmra.mxu0 %vm443_vm0, %v1825_v9  ;;  %437 = vst.msk [vmem:[#allocation3 + $0x10] sm:$0xff] %vm426_vm2, %v1700_v6  ;;  %438 = vst.msk [vmem:[#allocation3 + $0x18] sm:$0xff] %vm426_vm2, %v1700_v6 }
  0x32   : > { %1515 = vmatprep.mubr.msk.bf16.mxu0 %vm1701_vm1, %v1700_v6  ;;  %439 = vst.msk [vmem:[#allocation3 + $0x20] sm:$0xff] %vm426_vm2, %v1700_v6  ;;  %440 = vst.msk [vmem:[#allocation3 + $0x28] sm:$0xff] %vm426_vm2, %v1700_v6 }
  0x33   : > { %441 = vst.msk [vmem:[#allocation3 + $0x30] sm:$0xff] %vm426_vm2, %v1700_v6  ;;  %442 = vst.msk [vmem:[#allocation3 + $0x38] sm:$0xff] %vm426_vm2, %v1700_v6  ;;  %v1865_v29 = vld [vmem:[#allocation2] sm:$0xff]  ;;  %v1870_v32 = vld [vmem:[#allocation2 + $0x8] sm:$0xff] }
  0xf1   : > { %v529_v15 = vpop.f32.mrf.mxu0 }
  0xf2   : > { %v536_v18 = vmul.f32 0.17677669, %v529_v15 }
  0xf3   : > { %v1499_v19 = vpop.f32.mrf.mxu0 }
  0xf4   : > { %v538_v20 = vadd.f32 %v536_v18, %v1855_v17 }
  0xf5   : > { %v532_v21 = vpop.f32.mrf.mxu0 }
  0xf6   : > { %v537_v23 = vmul.f32 0.17677669, %v532_v21  ;;  %v543_v24 = vsel %vm542_vm5, %v538_v20, -inf }
  0xf7   : > { %544 = vmax.xlane.f32.xlu0 %v543_v24  ;;  %v1500_v25 = vpop.f32.mrf.mxu0 }
  0xf8   : > { %v539_v26 = vadd.f32 %v537_v23, %v1858_v22 }
  0xfa   : > { %v546_v27 = vsel %vm542_vm5, %v539_v26, -inf }
  0xfb   : > { %547 = vmax.xlane.f32.xlu0 %v546_v27 }
 0x111   : > { %661 = vrot.lane.b32.xlu0 %v1819_v7, %s1705_s26 }
 0x180   : > { %v545_v30 = vpop.xlane.xlu0 %544 }
 0x181   : > { %v1868_v31 = vmax.f32 %v1865_v29, %v545_v30  ;;  %v1955_v30 = vld [vmem:[#allocation2 + $0x10] sm:$0xff] }
 0x183   : > { %v551_v33 = vsub.f32 %v1865_v29, %v1868_v31  ;;  %657 = vst.msk [vmem:[#allocation2] sm:$0xff] %vm426_vm2, %v1868_v31  ;;  %559 = vperm.xlu1 %1592, %v1868_v31  }
 0x184   : > { %v548_v34 = vpop.xlane.xlu0 %547 }
 0x185   : > { %v1878_v35 = vmax.f32 %v1870_v32, %v548_v34 }
 0x187   : > { %v552_v36 = vsub.f32 %v1870_v32, %v1878_v35  ;;  %658 = vst.msk [vmem:[#allocation2 + $0x8] sm:$0xff] %vm426_vm2, %v1878_v35  ;;  %564 = vperm.xlu1 %1592, %v1878_v35  }
 0x188   : > { %v662_v45 = vpop.permute.xlu0 %661 }
 0x189   : > { %v667_v48 = vsel %vm443_vm0, %v662_v45, 0  ;;  %v1982_v45 = vld [vmem:[#allocation2 + $0x28] sm:$0xff] }
 0x18b   : > { %659 = vrot.lane.b32.xlu1 %v1825_v9, %s1705_s26 }
 0x18f   : > { %833 = vrot.lane.b32.xlu1 %v1819_v7, %s1706_s28 }
 0x193   : > { %831 = vrot.lane.b32.xlu1 %v1825_v9, %s1706_s28 }
 0x197   : > { %1005 = vrot.lane.b32.xlu1 %v1819_v7, %s1707_s29 }
 0x19b   : > { %1003 = vrot.lane.b32.xlu1 %v1825_v9, %s1707_s29 }
 0x1fe   : > { %v560_v38 = vpop.permute.xlu1 %559 }
 0x1ff   : > { %v567_v39 = vsub.f32 %v538_v20, %v560_v38  ;;  %v1960_v38 = vld [vmem:[#allocation2 + $0x18] sm:$0xff] }
 0x201   : > { %v569_v40 = vmul.f32 1.442695, %v567_v39 }
 0x202   : > { %v565_v41 = vpop.permute.xlu1 %564 }
 0x203   : > { %v568_v42 = vsub.f32 %v539_v26, %v565_v41  ;;  %1612 = vpow2.f32 %v569_v40  ;;  %v1970_v41 = vld [vmem:[#allocation2 + $0x20] sm:$0xff] }
 0x205   : > { %v571_v43 = vmul.f32 1.442695, %v568_v42 }
 0x206   : > { %v660_v44 = vpop.permute.xlu1 %659 }
 0x207   : > { %1614 = vpow2.f32 %v571_v43 }
 0x20a   : > { %v834_v50 = vpop.permute.xlu1 %833 }
 0x20b   : > { %v839_v52 = vsel %vm443_vm0, %v834_v50, 0 }
 0x20e   : > { %v832_v51 = vpop.permute.xlu1 %831 }
 0x210   : > { %v1900_v46 = vpop.eup %1612 }
 0x212   : > { %v1006_v53 = vpop.permute.xlu1 %1005 }
 0x213   : > { %v1011_v54 = vsel %vm443_vm0, %v1006_v53, 0 }
 0x214   : > { %v1902_v47 = vpop.eup %1614 }
 0x215   : > { %v602_v49 = vpack.c.bf16 %v1902_v47, %v1900_v46 }
 0x216   : > { %v1004_v55 = vpop.permute.xlu1 %1003 }
 0x217   : > { %1504 = vmatmul.mubr.msk.bf16.vlgmr.msra.gmra.mxu1 %vm542_vm5, %v602_v49 }
 0x218   : > { %1508 = vmatpush3.bf16.xpose.msra.mxu1 %v667_v48  ;;  %1509 = vmatprep.mubr.msk.bf16.mxu1 %vm1701_vm1, %v1700_v6 }
 0x219   : > { %1519 = vmatprep.subr.bf16.mxu1 %v1700_v6 }
 0x21f   : > { %1510 = vmatmul.mubr.msk.bf16.vlgmr.msra.gmra.mxu1 %vm443_vm0, %v660_v44 }
 0x220   : > { %1520 = vmatpush3.bf16.xpose.msra.mxu1 %v839_v52  ;;  %1521 = vmatprep.mubr.msk.bf16.mxu1 %vm1701_vm1, %v1700_v6 }
 0x221   : > { %1531 = vmatprep.subr.bf16.mxu1 %v1700_v6 }
 0x227   : > { %1522 = vmatmul.mubr.msk.bf16.vlgmr.msra.gmra.mxu1 %vm443_vm0, %v832_v51  ;;  %v1992_v51 = vld [vmem:[#allocation2 + $0x30] sm:$0xff] }
 0x228   : > { %1532 = vmatpush3.bf16.xpose.msra.mxu1 %v1011_v54  ;;  %1533 = vmatprep.mubr.msk.bf16.mxu1 %vm1701_vm1, %v1700_v6 }
 0x22f   : > { %1534 = vmatmul.mubr.msk.bf16.vlgmr.msra.gmra.mxu1 %vm443_vm0, %v1004_v55  ;;  %v2002_v55 = vld [vmem:[#allocation2 + $0x38] sm:$0xff] }
 0x2d7   : > { %v1921_v56 = vpop.f32.mrf.mxu1 }
 0x2d9   : > { %v1505_v57 = vpop.f32.mrf.mxu1 }
 0x2db   : > { %v1923_v58 = vpop.f32.mrf.mxu1 }
 0x2dd   : > { %v1506_v59 = vpop.f32.mrf.mxu1 }
 0x2df   : > { %v703_v60 = vpop.f32.mrf.mxu1 }
 0x2e0   : > { %v710_v61 = vmul.f32 0.17677669, %v703_v60 }
 0x2e1   : > { %v1511_v62 = vpop.f32.mrf.mxu1 }
 0x2e2   : > { %v1926_v63 = vadd.f32 %v710_v61, %v1855_v17  ;;  %v580_v62 = vsel %vm542_vm5, %v1902_v47, 0.0 }
 0x2e3   : > { %v706_v0 = vpop.f32.mrf.mxu1 }
 0x2e4   : > { %v711_v1 = vmul.f32 0.17677669, %v706_v0  ;;  %v717_v2 = vsel %vm542_vm5, %v1926_v63, -inf  ;;  %v577_v0 = vsel %vm542_vm5, %v1900_v46, 0.0 }
 0x2e5   : > { %718 = vmax.xlane.f32.xlu1 %v717_v2  ;;  %v1512_v3 = vpop.f32.mrf.mxu1 }
 0x2e6   : > { %v1931_v4 = vadd.f32 %v711_v1, %v1858_v22 }
 0x2e7   : > { %v875_v5 = vpop.f32.mrf.mxu1 }
 0x2e8   : > { %v882_v7 = vmul.f32 0.17677669, %v875_v5  ;;  %v720_v8 = vsel %vm542_vm5, %v1931_v4, -inf }
 0x2e9   : > { %721 = vmax.xlane.f32.xlu0 %v720_v8  ;;  %v1523_v9 = vpop.f32.mrf.mxu1 }
 0x2ea   : > { %v1936_v10 = vadd.f32 %v882_v7, %v1855_v17 }
 0x2eb   : > { %v878_v11 = vpop.f32.mrf.mxu1 }
 0x2ec   : > { %v883_v12 = vmul.f32 0.17677669, %v878_v11  ;;  %v889_v13 = vsel %vm542_vm5, %v1936_v10, -inf }
 0x2ed   : > { %890 = vmax.xlane.f32.xlu0 %v889_v13  ;;  %v1524_v14 = vpop.f32.mrf.mxu1 }
 0x2ee   : > { %v1941_v15 = vadd.f32 %v883_v12, %v1858_v22 }
 0x2ef   : > { %v1047_v16 = vpop.f32.mrf.mxu1 }
 0x2f0   : > { %v1054_v18 = vmul.f32 0.17677669, %v1047_v16  ;;  %v892_v19 = vsel %vm542_vm5, %v1941_v15, -inf }
 0x2f1   : > { %893 = vmax.xlane.f32.xlu1 %v892_v19  ;;  %v1535_v20 = vpop.f32.mrf.mxu1 }
 0x2f2   : > { %v1946_v21 = vadd.f32 %v1054_v18, %v1855_v17 }
 0x2f3   : > { %v1050_v23 = vpop.f32.mrf.mxu1 }
 0x2f4   : > { %v1055_v24 = vmul.f32 0.17677669, %v1050_v23  ;;  %v1061_v25 = vsel %vm542_vm5, %v1946_v21, -inf }
 0x2f5   : > { %1062 = vmax.xlane.f32.xlu0 %v1061_v25  ;;  %v1536_v26 = vpop.f32.mrf.mxu1 }
 0x2f6   : > { %v1951_v27 = vadd.f32 %v1055_v24, %v1858_v22 }
 0x2f8   : > { %v1064_v28 = vsel %vm542_vm5, %v1951_v27, -inf }
 0x2f9   : > { %1065 = vmax.xlane.f32.xlu1 %v1064_v28 }
 0x36e   : > { %v719_v34 = vpop.xlane.xlu1 %718 }
 0x36f   : > { %v1958_v17 = vmax.f32 %v1955_v30, %v719_v34 }
 0x371   : > { %v725_v39 = vsub.f32 %v1955_v30, %v1958_v17  ;;  %829 = vst.msk [vmem:[#allocation2 + $0x10] sm:$0xff] %vm426_vm2, %v1958_v17  ;;  %733 = vperm.xlu0 %1593, %v1958_v17  }
 0x372   : > { %v722_v22 = vpop.xlane.xlu0 %721 }
 0x373   : > { %v1968_v40 = vmax.f32 %v1960_v38, %v722_v22  ;;  %v727_v31 = vmul.f32 1.442695, %v725_v39 }
 0x375   : > { %v726_v42 = vsub.f32 %v1960_v38, %v1968_v40  ;;  %830 = vst.msk [vmem:[#allocation2 + $0x18] sm:$0xff] %vm426_vm2, %v1968_v40  ;;  %1122 = vrot.lane.b32.xlu0 %v1886_v37, %s1707_s29  ;;  %738 = vperm.xlu1 %1592, %v1968_v40  }
 0x376   : > { %v891_v43 = vpop.xlane.xlu0 %890 }
 0x377   : > { %v1980_v44 = vmax.f32 %v1970_v41, %v891_v43 }
 0x379   : > { %v897_v48 = vsub.f32 %v1970_v41, %v1980_v44  ;;  %1001 = vst.msk [vmem:[#allocation2 + $0x20] sm:$0xff] %vm426_vm2, %v1980_v44  ;;  %905 = vperm.xlu1 %1592, %v1980_v44   ;;  %v729_v41 = vmul.f32 1.442695, %v726_v42 }
 0x37a   : > { %v894_v49 = vpop.xlane.xlu1 %893 }
 0x37b   : > { %v1990_v50 = vmax.f32 %v1982_v45, %v894_v49  ;;  %v899_v22 = vmul.f32 1.442695, %v897_v48  ;;  %v574_v49 = vld [vmem:[#allocation3 + $0x8] sm:$0xff] }
 0x37d   : > { %v898_v52 = vsub.f32 %v1982_v45, %v1990_v50  ;;  %1002 = vst.msk [vmem:[#allocation2 + $0x28] sm:$0xff] %vm426_vm2, %v1990_v50  ;;  %910 = vperm.xlu1 %1592, %v1990_v50  }
 0x37e   : > { %v1063_v53 = vpop.xlane.xlu0 %1062 }
 0x37f   : > { %v2000_v54 = vmax.f32 %v1992_v51, %v1063_v53  ;;  %v901_v39 = vmul.f32 1.442695, %v898_v52 }
 0x381   : > { %v1069_v57 = vsub.f32 %v1992_v51, %v2000_v54  ;;  %1173 = vst.msk [vmem:[#allocation2 + $0x30] sm:$0xff] %vm426_vm2, %v2000_v54  ;;  %1077 = vperm.xlu1 %1592, %v2000_v54  }
 0x382   : > { %v1066_v59 = vpop.xlane.xlu1 %1065 }
 0x383   : > { %v2010_v60 = vmax.f32 %v2002_v55, %v1066_v59 }
 0x385   : > { %v1070_v61 = vsub.f32 %v2002_v55, %v2010_v60  ;;  %1174 = vst.msk [vmem:[#allocation2 + $0x38] sm:$0xff] %vm426_vm2, %v2010_v60  ;;  %1082 = vperm.xlu1 %1592, %v2010_v60   ;;  %v573_v60 = vld [vmem:[#allocation3] sm:$0xff] }
 0x387   : > { %v1073_v45 = vmul.f32 1.442695, %v1070_v61 }
 0x389   : > { %778 = vrot.lane.b32.xlu1 %v1886_v37, %s1705_s26 }
 0x38d   : > { %950 = vrot.lane.b32.xlu1 %v1886_v37, %s1706_s28 }
 0x394   : > { %581 = vadd.xlane.f32.xlu0 %v580_v62 }
 0x3b1   : > { %578 = vadd.xlane.f32.xlu1 %v577_v0 }
 0x3ec   : > { %v734_v1 = vpop.permute.xlu0 %733 }
 0x3ed   : > { %v741_v2 = vsub.f32 %v1926_v63, %v734_v1 }
 0x3ef   : > { %v743_v3 = vmul.f32 1.442695, %v741_v2 }
 0x3f0   : > { %v739_v5 = vpop.permute.xlu1 %738  ;;  %v1123_v35 = vpop.permute.xlu0 %1122 }
 0x3f1   : > { %1616 = vpow2.f32 %v743_v3  ;;  %v742_v7 = vsub.f32 %v1931_v4, %v739_v5  ;;  %v748_v3 = vld [vmem:[#allocation3 + $0x10] sm:$0xff] }
 0x3f3   : > { %v745_v8 = vmul.f32 1.442695, %v742_v7 }
 0x3f4   : > { %v906_v9 = vpop.permute.xlu1 %905 }
 0x3f5   : > { %1618 = vpow2.f32 %v745_v8  ;;  %v913_v37 = vsub.f32 %v1936_v10, %v906_v9  ;;  %v749_v8 = vld [vmem:[#allocation3 + $0x18] sm:$0xff] }
 0x3f7   : > { %v915_v11 = vmul.f32 1.442695, %v913_v37 }
 0x3f8   : > { %v911_v47 = vpop.permute.xlu1 %910 }
 0x3f9   : > { %1620 = vpow2.f32 %v915_v11  ;;  %v914_v12 = vsub.f32 %v1941_v15, %v911_v47  ;;  %v920_v47 = vld [vmem:[#allocation3 + $0x20] sm:$0xff] }
 0x3fb   : > { %v917_v46 = vmul.f32 1.442695, %v914_v12 }
 0x3fc   : > { %v1078_v13 = vpop.permute.xlu1 %1077 }
 0x3fd   : > { %1622 = vpow2.f32 %v917_v46  ;;  %v1085_v63 = vsub.f32 %v1946_v21, %v1078_v13  ;;  %v553_v21 = vmul.f32 1.442695, %v551_v33 }
 0x3fe   : > { %v1617_v14 = vpop.eup %1616 }
 0x3ff   : > { %v1087_v16 = vmul.f32 1.442695, %v1085_v63  ;;  %v752_v18 = vsel %vm542_vm5, %v1617_v14, 0.0  ;;  %v921_v63 = vld [vmem:[#allocation3 + $0x28] sm:$0xff] }
 0x400   : > { %753 = vadd.xlane.f32.xlu1 %v752_v18  ;;  %v1083_v4 = vpop.permute.xlu1 %1082 }
 0x401   : > { %1624 = vpow2.f32 %v1087_v16  ;;  %v1086_v19 = vsub.f32 %v1951_v27, %v1083_v4  ;;  %v555_v27 = vmul.f32 1.442695, %v552_v36  ;;  %v588_v16 = vld [vmem:[#allocation4] sm:$0xff] }
 0x402   : > { %v1619_v10 = vpop.eup %1618 }
 0x403   : > { %v1089_v20 = vmul.f32 1.442695, %v1086_v19  ;;  %v755_v23 = vsel %vm542_vm5, %v1619_v10, 0.0  ;;  %v777_v25 = vpack.c.bf16 %v1619_v10, %v1617_v14 }
 0x404   : > { %756 = vadd.xlane.f32.xlu0 %v755_v23  ;;  %v779_v15 = vpop.permute.xlu1 %778 }
 0x405   : > { %1626 = vpow2.f32 %v1089_v20  ;;  %1514 = vmatpush3.bf16.msra.mxu0 %v779_v15  ;;  %v1092_v20 = vld [vmem:[#allocation3 + $0x30] sm:$0xff] }
 0x406   : > { %v1621_v24 = vpop.eup %1620  ;;  %1525 = vmatprep.subr.bf16.mxu0 %v1700_v6  ;;  %1628 = vpow2.f32 %v553_v21 }
 0x407   : > { %v924_v26 = vsel %vm542_vm5, %v1621_v24, 0.0  ;;  %1630 = vpow2.f32 %v555_v27  ;;  %v1093_v27 = vld [vmem:[#allocation3 + $0x38] sm:$0xff] }
 0x408   : > { %925 = vadd.xlane.f32.xlu1 %v924_v26  ;;  %1516 = vmatmul.mubr.msk.bf16.vlgmr.msra.gmra.mxu0 %vm542_vm5, %v777_v25  ;;  %v951_v28 = vpop.permute.xlu1 %950  ;;  %1632 = vpow2.f32 %v727_v31 }
 0x409   : > { %1526 = vmatpush3.bf16.msra.mxu0 %v951_v28  ;;  %1527 = vmatprep.mubr.msk.bf16.mxu0 %vm1701_vm1, %v1700_v6  ;;  %1634 = vpow2.f32 %v899_v22 }
 0x40a   : > { %v1623_v34 = vpop.eup %1622  ;;  %1537 = vmatprep.subr.bf16.mxu0 %v1700_v6  ;;  %1636 = vpow2.f32 %v901_v39 }
 0x40b   : > { %v927_v29 = vsel %vm542_vm5, %v1623_v34, 0.0  ;;  %v949_v33 = vpack.c.bf16 %v1623_v34, %v1621_v24  ;;  %1638 = vpow2.f32 %v729_v41 }
 0x40c   : > { %928 = vadd.xlane.f32.xlu1 %v927_v29 }
 0x40e   : > { %v1625_v32 = vpop.eup %1624 }
 0x40f   : > { %v1096_v36 = vsel %vm542_vm5, %v1625_v32, 0.0 }
 0x410   : > { %1097 = vadd.xlane.f32.xlu1 %v1096_v36  ;;  %1528 = vmatmul.mubr.msk.bf16.vlgmr.msra.gmra.mxu0 %vm542_vm5, %v949_v33  ;;  %v589_v33 = vld [vmem:[#allocation4 + $0x8] sm:$0xff] }
 0x411   : > { %1538 = vmatpush3.bf16.msra.mxu0 %v1123_v35  ;;  %1539 = vmatprep.mubr.msk.bf16.mxu0 %vm1701_vm1, %v1700_v6  ;;  %v1071_v6 = vmul.f32 1.442695, %v1069_v57 }
 0x412   : > { %v1627_v30 = vpop.eup %1626 }
 0x413   : > { %v1099_v17 = vsel %vm542_vm5, %v1627_v30, 0.0  ;;  %v1121_v43 = vpack.c.bf16 %v1627_v30, %v1625_v32  ;;  %v1629_v44 = vpop.eup %1628  ;;  %1640 = vpow2.f32 %v1071_v6 }
 0x414   : > { %1100 = vadd.xlane.f32.xlu1 %v1099_v17  ;;  %v1631_v48 = vpop.eup %1630  ;;  %1642 = vpow2.f32 %v1073_v45  ;;  %v575_v61 = vmul.f32 %v1629_v44, %v573_v60  ;;  %v763_v45 = vld [vmem:[#allocation4 + $0x10] sm:$0xff] }
 0x415   : > { %v576_v50 = vmul.f32 %v1631_v48, %v574_v49  ;;  %v1633_v38 = vpop.eup %1632 }
 0x416   : > { %v1635_v51 = vpop.eup %1634  ;;  %v750_v5 = vmul.f32 %v1633_v38, %v748_v3 }
 0x417   : > { %v1637_v52 = vpop.eup %1636  ;;  %v922_v46 = vmul.f32 %v1635_v51, %v920_v47  ;;  %v1108_v47 = vld [vmem:[#allocation4 + $0x38] sm:$0xff] }
 0x418   : > { %1540 = vmatmul.mubr.msk.bf16.vlgmr.msra.gmra.mxu0 %vm542_vm5, %v1121_v43  ;;  %v1639_v54 = vpop.eup %1638  ;;  %v923_v4 = vmul.f32 %v1637_v52, %v921_v63 }
 0x419   : > { %v751_v37 = vmul.f32 %v1639_v54, %v749_v8 }
 0x41a   : > { %592 = vperm.xlu0 %1593, %v1629_v44  }
 0x41d   : > { %v582_v40 = vpop.xlane.xlu0 %581 }
 0x41e   : > { %v584_v42 = vadd.f32 %v582_v40, %v576_v50  ;;  %767 = vperm.xlu0 %1593, %v1633_v38  }
 0x420   : > { %587 = vst.msk [vmem:[#allocation3 + $0x8] sm:$0xff] %vm426_vm2, %v584_v42  ;;  %v1641_v57 = vpop.eup %1640 }
 0x421   : > { %v1643_v55 = vpop.eup %1642  ;;  %v1094_v21 = vmul.f32 %v1641_v57, %v1092_v20 }
 0x422   : > { %939 = vperm.xlu0 %1593, %v1635_v51   ;;  %v1095_v29 = vmul.f32 %v1643_v55, %v1093_v27 }
 0x425   : > { %597 = vperm.xlu1 %1592, %v1631_v48  }
 0x426   : > { %944 = vperm.xlu0 %1593, %v1637_v52  }
 0x427   : > { %v1181_v53 = vld [vmem:[#allocation3 + $0x8] sm:$0xff] }
 0x428   : > { %1644 = vrcp.f32 %v1181_v53 }
 0x429   : > { %772 = vperm.xlu1 %1592, %v1639_v54   ;;  %v935_v54 = vld [vmem:[#allocation4 + $0x20] sm:$0xff] }
 0x42a   : > { %1111 = vperm.xlu0 %1593, %v1641_v57  }
 0x42e   : > { %1116 = vperm.xlu0 %1593, %v1643_v55  }
 0x435   : > { %v1645_v59 = vpop.eup %1644 }
 0x436   : > { %1191 = vperm.xlu0 %1593, %v1645_v59  }
 0x43a   : > { %v579_v62 = vpop.xlane.xlu1 %578 }
 0x43b   : > { %v583_v0 = vadd.f32 %v579_v62, %v575_v61  ;;  %v936_v62 = vld [vmem:[#allocation4 + $0x28] sm:$0xff] }
 0x43d   : > { %586 = vst.msk [vmem:[#allocation3] sm:$0xff] %vm426_vm2, %v583_v0 }
 0x444   : > { %v1180_v1 = vld [vmem:[#allocation3] sm:$0xff] }
 0x445   : > { %1646 = vrcp.f32 %v1180_v1 }
 0x452   : > { %v1647_v2 = vpop.eup %1646 }
 0x453   : > { %1186 = vperm.xlu1 %1592, %v1647_v2  }
 0x489   : > { %v754_v7 = vpop.xlane.xlu1 %753 }
 0x48a   : > { %v758_v9 = vadd.f32 %v754_v7, %v750_v5  ;;  %v1107_v7 = vld [vmem:[#allocation4 + $0x30] sm:$0xff] }
 0x48c   : > { %760 = vst.msk [vmem:[#allocation3 + $0x10] sm:$0xff] %vm426_vm2, %v758_v9 }
 0x48d   : > { %v757_v11 = vpop.xlane.xlu0 %756 }
 0x48e   : > { %v759_v12 = vadd.f32 %v757_v11, %v751_v37 }
 0x490   : > { %761 = vst.msk [vmem:[#allocation3 + $0x18] sm:$0xff] %vm426_vm2, %v759_v12 }
 0x491   : > { %v926_v13 = vpop.xlane.xlu1 %925 }
 0x492   : > { %v930_v14 = vadd.f32 %v926_v13, %v922_v46 }
 0x493   : > { %v1200_v18 = vld [vmem:[#allocation3 + $0x10] sm:$0xff] }
 0x494   : > { %932 = vst.msk [vmem:[#allocation3 + $0x20] sm:$0xff] %vm426_vm2, %v930_v14  ;;  %1648 = vrcp.f32 %v1200_v18 }
 0x495   : > { %v593_v19 = vpop.permute.xlu0 %592  ;;  %v929_v10 = vpop.xlane.xlu1 %928 }
 0x496   : > { %v600_v23 = vmul.f32 %v593_v19, %v588_v16  ;;  %v931_v15 = vadd.f32 %v929_v10, %v923_v4 }
 0x497   : > { %v1201_v24 = vld [vmem:[#allocation3 + $0x18] sm:$0xff] }
 0x498   : > { %v653_v25 = vadd.f32 %v1921_v56, %v600_v23  ;;  %933 = vst.msk [vmem:[#allocation3 + $0x28] sm:$0xff] %vm426_vm2, %v931_v15  ;;  %1650 = vrcp.f32 %v1201_v24 }
 0x499   : > { %v1098_v26 = vpop.xlane.xlu1 %1097  ;;  %v768_v49 = vpop.permute.xlu0 %767 }
 0x49a   : > { %655 = vst.msk [vmem:[#allocation4] sm:$0xff] %vm443_vm0, %v653_v25  ;;  %v1102_v28 = vadd.f32 %v1098_v26, %v1094_v21  ;;  %v775_v38 = vmul.f32 %v768_v49, %v763_v45 }
 0x49b   : > { %v1220_v34 = vld [vmem:[#allocation3 + $0x20] sm:$0xff] }
 0x49c   : > { %1104 = vst.msk [vmem:[#allocation3 + $0x30] sm:$0xff] %vm426_vm2, %v1102_v28  ;;  %1652 = vrcp.f32 %v1220_v34 }
 0x49d   : > { %v1101_v31 = vpop.xlane.xlu1 %1100  ;;  %v940_v50 = vpop.permute.xlu0 %939 }
 0x49e   : > { %v1103_v32 = vadd.f32 %v1101_v31, %v1095_v29  ;;  %v947_v61 = vmul.f32 %v940_v50, %v935_v54 }
 0x49f   : > { %v1221_v35 = vld [vmem:[#allocation3 + $0x28] sm:$0xff] }
 0x4a0   : > { %1105 = vst.msk [vmem:[#allocation3 + $0x38] sm:$0xff] %vm426_vm2, %v1103_v32  ;;  %1654 = vrcp.f32 %v1221_v35 }
 0x4a1   : > { %v1649_v56 = vpop.eup %1648  ;;  %v598_v36 = vpop.permute.xlu1 %597  ;;  %v1178_v49 = vld [vmem:[#allocation4] sm:$0xff] }
 0x4a2   : > { %v601_v22 = vmul.f32 %v598_v36, %v589_v33  ;;  %1206 = vperm.xlu1 %1592, %v1649_v56   ;;  %v945_v57 = vpop.permute.xlu0 %944 }
 0x4a3   : > { %v1240_v30 = vld [vmem:[#allocation3 + $0x30] sm:$0xff]  ;;  %v948_v5 = vmul.f32 %v945_v57, %v936_v62 }
 0x4a4   : > { %v654_v17 = vadd.f32 %v1923_v58, %v601_v22  ;;  %1656 = vrcp.f32 %v1240_v30  ;;  %v764_v58 = vld [vmem:[#allocation4 + $0x18] sm:$0xff] }
 0x4a5   : > { %v1651_v39 = vpop.eup %1650  ;;  %v773_v40 = vpop.permute.xlu1 %772 }
 0x4a6   : > { %656 = vst.msk [vmem:[#allocation4 + $0x8] sm:$0xff] %vm443_vm0, %v654_v17  ;;  %1211 = vperm.xlu0 %1593, %v1651_v39   ;;  %v776_v53 = vmul.f32 %v773_v40, %v764_v58  ;;  %v1112_v2 = vpop.permute.xlu0 %1111 }
 0x4a7   : > { %v1241_v43 = vld [vmem:[#allocation3 + $0x38] sm:$0xff]  ;;  %v1119_v11 = vmul.f32 %v1112_v2, %v1107_v7 }
 0x4a8   : > { %1658 = vrcp.f32 %v1241_v43 }
 0x4a9   : > { %v1653_v41 = vpop.eup %1652 }
 0x4aa   : > { %1226 = vperm.xlu1 %1592, %v1653_v41   ;;  %v1117_v12 = vpop.permute.xlu0 %1116 }
 0x4ab   : > { %v1120_v14 = vmul.f32 %v1117_v12, %v1108_v47 }
 0x4ad   : > { %v1655_v44 = vpop.eup %1654 }
 0x4ae   : > { %1231 = vperm.xlu0 %1593, %v1655_v44  }
 0x4b1   : > { %v1657_v6 = vpop.eup %1656  ;;  %v1192_v10 = vpop.permute.xlu0 %1191 }
 0x4b2   : > { %1246 = vperm.xlu1 %1592, %v1657_v6  }
 0x4b5   : > { %v1659_v48 = vpop.eup %1658 }
 0x4b6   : > { %1251 = vperm.xlu0 %1593, %v1659_v48   ;;  %v1179_v48 = vld [vmem:[#allocation4 + $0x8] sm:$0xff] }
 0x4c8   : > { %v818_v42 = vpop.f32.mrf.mxu0 }
 0x4c9   : > { %v825_v51 = vadd.f32 %v818_v42, %v775_v38  ;;  %v1195_v38 = vmul.f32 %v1192_v10, %v1179_v48 }
 0x4ca   : > { %v1517_v52 = vpop.f32.mrf.mxu0 }
 0x4cb   : > { %827 = vst.msk [vmem:[#allocation4 + $0x10] sm:$0xff] %vm443_vm0, %v825_v51 }
 0x4cc   : > { %v821_v55 = vpop.f32.mrf.mxu0 }
 0x4cd   : > { %v826_v59 = vadd.f32 %v821_v55, %v776_v53 }
 0x4ce   : > { %v1518_v60 = vpop.f32.mrf.mxu0  ;;  %v1187_v19 = vpop.permute.xlu1 %1186 }
 0x4cf   : > { %828 = vst.msk [vmem:[#allocation4 + $0x18] sm:$0xff] %vm443_vm0, %v826_v59  ;;  %v1194_v58 = vmul.f32 %v1187_v19, %v1178_v49 }
 0x4d0   : > { %v990_v0 = vpop.f32.mrf.mxu0 }
 0x4d1   : > { %v997_v1 = vadd.f32 %v990_v0, %v947_v61 }
 0x4d2   : > { %v1529_v3 = vpop.f32.mrf.mxu0  ;;  %v1197_v23 = vld [vmem:[#allocation4 + $0x10] sm:$0xff] }
 0x4d3   : > { %999 = vst.msk [vmem:[#allocation4 + $0x20] sm:$0xff] %vm443_vm0, %v997_v1 }
 0x4d4   : > { %v993_v8 = vpop.f32.mrf.mxu0 }
 0x4d5   : > { %v998_v9 = vadd.f32 %v993_v8, %v948_v5 }
 0x4d6   : > { %v1530_v37 = vpop.f32.mrf.mxu0  ;;  %v1198_v24 = vld [vmem:[#allocation4 + $0x18] sm:$0xff] }
 0x4d7   : > { %1000 = vst.msk [vmem:[#allocation4 + $0x28] sm:$0xff] %vm443_vm0, %v998_v9 }
 0x4d8   : > { %v1162_v46 = vpop.f32.mrf.mxu0 }
 0x4d9   : > { %v1169_v13 = vadd.f32 %v1162_v46, %v1119_v11 }
 0x4da   : > { %v1541_v63 = vpop.f32.mrf.mxu0  ;;  %v1217_v28 = vld [vmem:[#allocation4 + $0x20] sm:$0xff] }
 0x4db   : > { %1171 = vst.msk [vmem:[#allocation4 + $0x30] sm:$0xff] %vm443_vm0, %v1169_v13 }
 0x4dc   : > { %v1165_v16 = vpop.f32.mrf.mxu0 }
 0x4dd   : > { %v1170_v18 = vadd.f32 %v1165_v16, %v1120_v14 }
 0x4de   : > { %v1542_v4 = vpop.f32.mrf.mxu0  ;;  %v1218_v29 = vld [vmem:[#allocation4 + $0x28] sm:$0xff] }
 0x4df   : > { %1172 = vst.msk [vmem:[#allocation4 + $0x38] sm:$0xff] %vm443_vm0, %v1170_v18 }
 0x4e2   : > { %v1237_v56 = vld [vmem:[#allocation4 + $0x30] sm:$0xff] }
 0x4e6   : > { %v1238_v22 = vld [vmem:[#allocation4 + $0x38] sm:$0xff] }
 0x51d   : > { %v1207_v20 = vpop.permute.xlu1 %1206 }
 0x51e   : > { %v1214_v25 = vmul.f32 %v1207_v20, %v1197_v23 }
 0x521   : > { %v1212_v15 = vpop.permute.xlu0 %1211 }
 0x522   : > { %v1215_v21 = vmul.f32 %v1212_v15, %v1198_v24 }
 0x524   : > { %v1594_v26 = vpack.i.bf16 %v1215_v21, %v1214_v25 }
 0x525   : > { %v1227_v27 = vpop.permute.xlu1 %1226 }
 0x526   : > { %1595 = vrot.lane.b32.xlu1 %v1594_v26, %s1707_s29  ;;  %v1234_v31 = vmul.f32 %v1227_v27, %v1217_v28 }
 0x529   : > { %v1232_v34 = vpop.permute.xlu0 %1231 }
 0x52a   : > { %v1235_v32 = vmul.f32 %v1232_v34, %v1218_v29 }
 0x52c   : > { %v1599_v33 = vpack.i.bf16 %v1235_v32, %v1234_v31 }
 0x52d   : > { %v1247_v35 = vpop.permute.xlu1 %1246 }
 0x52e   : > { %1600 = vrot.lane.b32.xlu0 %v1599_v33, %s1706_s28  ;;  %v1254_v30 = vmul.f32 %v1247_v35, %v1237_v56 }
 0x531   : > { %v1252_v36 = vpop.permute.xlu0 %1251 }
 0x532   : > { %v1255_v17 = vmul.f32 %v1252_v36, %v1238_v22 }
 0x534   : > { %v1604_v39 = vpack.i.bf16 %v1255_v17, %v1254_v30 }
 0x536   : > { %1605 = vrot.lane.b32.xlu1 %v1604_v39, %s1705_s26 }
 0x598   : > { %v1596_v43 = vpop.permute.xlu1 %1595 }
 0x599   : > { %v1598_v44 = vunpack.i.h.bf16 %v1596_v43  ;;  %v1597_v6 = vunpack.i.l.bf16 %v1596_v43 }
 0x59b   : > { %v1282_v42 = vsel %vm443_vm0, %v1195_v38, %v1598_v44  ;;  %v1281_v51 = vsel %vm443_vm0, %v1194_v58, %v1597_v6 }
 0x5a0   : > { %v1601_v41 = vpop.permute.xlu0 %1600 }
 0x5a1   : > { %v1603_v45 = vunpack.i.h.bf16 %v1601_v41  ;;  %v1602_v50 = vunpack.i.l.bf16 %v1601_v41 }
 0x5a3   : > { %v1285_v54 = vsel %vm1283_vm6, %v1282_v42, %v1603_v45  ;;  %v1284_v57 = vsel %vm1283_vm6, %v1281_v51, %v1602_v50 }
 0x5a8   : > { %v1606_v40 = vpop.permute.xlu1 %1605 }
 0x5a9   : > { %v1608_v52 = vunpack.i.h.bf16 %v1606_v40  ;;  %v1607_v53 = vunpack.i.l.bf16 %v1606_v40 }
 0x5ab   : > { %v1288_v55 = vsel %vm1286_vm7, %v1285_v54, %v1608_v52  ;;  %v1287_v59 = vsel %vm1286_vm7, %v1284_v57, %v1607_v53 }
 0x5ac   : > { %v1477_v60 = vpack.c.bf16 %v1288_v55, %v1287_v59 }
 0x5ae   : > { %1478 = vst [vmem:[%s419_s6] sm:$0xff] %v1477_v60  }
 0x5af PF: > { %s13_s16 = sadd.s32 1, %s1698_s16   ;;  %s2118_s12 = smov %s1686_s13 }
 0x5b0   : > { %p10_p10 = scmp.ge.s32.totalorder %s13_s16, 4   ;;  %s2119_s13 = smov %s1767_s21 }
 0x5b1   : > { %s2120_s14 = smov %s1694_s15  ;;  %s2121_s15 = smov %s2123_s17 }
 0x5b2   :  { %12 = sbr.rel (!%p10_p10) target bundleno = 3 (0x3), region = 233 }

// kernel: transformer_forward.17
= control target key start
LH: loop header
LB: loop body
LE: loop exit
PB: predicated region body
PF: predicated region fallthrough
CT: control target
= control target key end

     0   :  { %s429_s0 = inlined_call_operand.vmem [shape: bf16[32,128], index: 0, kind: input, shape index: {}]   ;;  %s430_s1 = inlined_call_operand.vmem [shape: f32[1,128], index: 1, kind: input, shape index: {}]   ;;  %s431_s2 = inlined_call_operand.vmem [shape: bf16[128,128], index: 2, kind: input, shape index: {}]   ;;  %s432_s3 = inlined_call_operand.hbm [shape: f32[32,128], index: 3, kind: output, shape index: {}]  }
   0x1   :  { %v273_v0 = vld [vmem:[%s429_s0] sm:$0xff]   ;;  %v290_v1 = vld [vmem:[%s429_s0 + $0x8] sm:$0xff]  }
   0x2   :  { %v274_v2 = vunpack.c.l.bf16 %v273_v0  ;;  %v278_v3 = vunpack.c.l.bf16 %v290_v1  ;;  %v275_v4 = vunpack.c.h.bf16 %v273_v0  ;;  %v279_v5 = vunpack.c.h.bf16 %v290_v1 }
   0x4   :  { %29 = vadd.xlane.f32.xlu0 %v274_v2  ;;  %33 = vadd.xlane.f32.xlu1 %v278_v3 }
   0x5   :  { %8 = vsyncpa [#allocation4], 0  ;;  %v325_v22 = vld [vmem:[%s431_s2 + $0x38] sm:$0xff]   ;;  %v326_v23 = vld [vmem:[%s431_s2 + $0x30] sm:$0xff]  }
   0x6   :  { %302 = vmatprep.subr.bf16.mxu0 %v325_v22  ;;  %v327_v24 = vld [vmem:[%s431_s2 + $0x28] sm:$0xff]   ;;  %v328_v25 = vld [vmem:[%s431_s2 + $0x20] sm:$0xff]   ;;  %v329_v26 = vld [vmem:[%s431_s2 + $0x18] sm:$0xff]  }
   0x7   :  { %303 = vmatpush3.bf16.msra.mxu0 %v325_v22  ;;  %v330_v27 = vld [vmem:[%s431_s2 + $0x10] sm:$0xff]   ;;  %v331_v28 = vld [vmem:[%s431_s2 + $0x8] sm:$0xff]   ;;  %v332_v29 = vld [vmem:[%s431_s2] sm:$0xff]  }
   0x8   :  { %31 = vadd.xlane.f32.xlu0 %v275_v4  ;;  %35 = vadd.xlane.f32.xlu1 %v279_v5  ;;  %v253_v45 = vld [vmem:[%s430_s1] ss:$0 sm:$0xff]  ;;  %s365_s1 = smov [#allocation3]  }
   0x9   :  { %304 = vmatprep.subr.bf16.mxu0 %v326_v23  ;;  %s242_s5 = sshll.u32 %s365_s1, 4  ;;  %s243_s5 = int_to_ptr.vmem [resolvable:$true] %s242_s5 }
   0xa   :  { %s343_s6 = scalar_lea.vmem %s243_s5, 512  ;;  %p348_p1 = scmp.lt.s32.totalorder %s243_s5, %s243_s5 }
   0xb   :  { %305 = vmatpush3.bf16.msra.mxu0 %v326_v23  ;;  %p344_p0 = scmp.ne.s32.totalorder %s243_s5, %s343_s6  ;;  %p349_p2 = scmp.lt.s32.totalorder %s343_s6, %s343_s6 }
   0xc   :  { %306 = vmatprep.subr.bf16.mxu0 %v327_v24 }
   0xd   :  { %p350_p3 = por %p349_p2, %p348_p1 }
   0xf   :  { %307 = vmatpush3.bf16.msra.mxu0 %v327_v24  ;;  %p351_p4 = pnand %p350_p3, %p344_p0 }
  0x10   :  { %308 = vmatprep.subr.bf16.mxu0 %v328_v25 }
  0x13   :  { %309 = vmatpush3.bf16.msra.mxu0 %v328_v25 }
  0x14   :  { %310 = vmatprep.subr.bf16.mxu0 %v329_v26 }
  0x17   :  { %311 = vmatpush3.bf16.msra.mxu0 %v329_v26 }
  0x18   :  { %312 = vmatprep.subr.bf16.mxu0 %v330_v27 }
  0x1b   :  { %313 = vmatpush3.bf16.msra.mxu0 %v330_v27 }
  0x1c   :  { %314 = vmatprep.subr.bf16.mxu0 %v331_v28 }
  0x1f   :  { %315 = vmatpush3.bf16.msra.mxu0 %v331_v28 }
  0x20   :  { %316 = vmatprep.subr.bf16.mxu0 %v332_v29 }
  0x23   :  { %317 = vmatpush3.bf16.msra.mxu0 %v332_v29 }
  0x8d   :  { %v30_v6 = vpop.xlane.xlu0 %29  ;;  %v34_v7 = vpop.xlane.xlu1 %33 }
  0x8e   :  { %v38_v8 = vmul.f32 0.0078125, %v30_v6  ;;  %v40_v9 = vmul.f32 0.0078125, %v34_v7 }
  0x90   :  { %v42_v10 = vsub.f32 %v274_v2, %v38_v8  ;;  %v394_v11 = vsub.f32 %v278_v3, %v40_v9 }
  0x91   :  { %v32_v12 = vpop.xlane.xlu0 %31  ;;  %v36_v13 = vpop.xlane.xlu1 %35 }
  0x92   :  { %v39_v14 = vmul.f32 0.0078125, %v32_v12  ;;  %v46_v15 = vmul.f32 %v42_v10, %v42_v10  ;;  %v41_v16 = vmul.f32 0.0078125, %v36_v13  ;;  %v48_v19 = vmul.f32 %v394_v11, %v394_v11 }
  0x94   :  { %v43_v17 = vsub.f32 %v275_v4, %v39_v14  ;;  %50 = vadd.xlane.f32.xlu0 %v46_v15  ;;  %v45_v18 = vsub.f32 %v279_v5, %v41_v16 }
  0x96   :  { %v47_v20 = vmul.f32 %v43_v17, %v43_v17  ;;  %v49_v21 = vmul.f32 %v45_v18, %v45_v18 }
  0x98   :  { %54 = vadd.xlane.f32.xlu0 %v48_v19  ;;  %52 = vadd.xlane.f32.xlu1 %v47_v20 }
  0x9c   :  { %56 = vadd.xlane.f32.xlu1 %v49_v21 }
 0x11d   :  { %v51_v30 = vpop.xlane.xlu0 %50 }
 0x11e   :  { %v58_v31 = vmul.f32 0.0078125, %v51_v30 }
 0x120   :  { %v62_v32 = vadd.f32 1e-05, %v58_v31 }
 0x121   :  { %v53_v33 = vpop.xlane.xlu1 %52  ;;  %v55_v34 = vpop.xlane.xlu0 %54 }
 0x122   :  { %335 = vrsqrt.f32 %v62_v32  ;;  %v59_v35 = vmul.f32 0.0078125, %v53_v33  ;;  %v60_v36 = vmul.f32 0.0078125, %v55_v34 }
 0x124   :  { %v63_v37 = vadd.f32 1e-05, %v59_v35  ;;  %v64_v38 = vadd.f32 1e-05, %v60_v36 }
 0x125   :  { %v57_v39 = vpop.xlane.xlu1 %56 }
 0x126   :  { %337 = vrsqrt.f32 %v63_v37  ;;  %v61_v40 = vmul.f32 0.0078125, %v57_v39 }
 0x127   :  { %339 = vrsqrt.f32 %v64_v38 }
 0x128   :  { %v65_v41 = vadd.f32 1e-05, %v61_v40 }
 0x12a   :  { %341 = vrsqrt.f32 %v65_v41 }
 0x12f   :  { %v336_v42 = vpop.eup %335 }
 0x130   :  { %v70_v43 = vmul.f32 %v336_v42, %v42_v10 }
 0x132   :  { %v80_v48 = vmul.f32 %v253_v45, %v70_v43 }
 0x133   :  { %v338_v44 = vpop.eup %337 }
 0x134   :  { %v340_v46 = vpop.eup %339  ;;  %v71_v47 = vmul.f32 %v338_v44, %v43_v17 }
 0x135   :  { %v72_v50 = vmul.f32 %v340_v46, %v394_v11 }
 0x136   :  { %v81_v49 = vmul.f32 %v253_v45, %v71_v47 }
 0x137   :  { %v342_v51 = vpop.eup %341  ;;  %v82_v54 = vmul.f32 %v253_v45, %v72_v50 }
 0x138   :  { %v283_v52 = vpack.c.bf16 %v81_v49, %v80_v48  ;;  %v73_v53 = vmul.f32 %v342_v51, %v45_v18 }
 0x13a   :  { %284 = vst [vmem:[#allocation2] sm:$0xff] %v283_v52   ;;  %v83_v55 = vmul.f32 %v253_v45, %v73_v53 }
 0x13c   :  { %v288_v56 = vpack.c.bf16 %v83_v55, %v82_v54 }
 0x13e   :  { %291 = vst [vmem:[#allocation2 + $0x8] sm:$0xff] %v288_v56  }
 0x141   :  { %v333_v57 = vld [vmem:[#allocation2] sm:$0xff]  }
 0x142   :  { %318 = vmatprep.mubr.bf16.mxu0 %v333_v57 }
 0x145   :  { %v334_v58 = vld [vmem:[#allocation2 + $0x8] sm:$0xff]  }
 0x146   :  { %319 = vmatmul.mubr.bf16.vlgmr.msra.gmra.mxu0 %v334_v58 }
 0x206   :  { %v320_v59 = vpop.f32.mrf.mxu0 }
 0x207   :  { %235 = vst [vmem:[#allocation3 + $0x10] sm:$0xff] %v320_v59 }
 0x208   :  { %v218_v60 = vpop.f32.mrf.mxu0 }
 0x209   :  { %233 = vst [vmem:[#allocation3] sm:$0xff] %v218_v60 }
 0x20a   :  { %v321_v61 = vpop.f32.mrf.mxu0 }
 0x20b   :  { %236 = vst [vmem:[#allocation3 + $0x18] sm:$0xff] %v321_v61 }
 0x20c   :  { %v221_v62 = vpop.f32.mrf.mxu0 }
 0x20d   :  { %234 = vst [vmem:[#allocation3 + $0x8] sm:$0xff] %v221_v62 }
 0x20e   :  { %354 = shalt.err (!%p351_p4)
}
 0x20f   :  { %s366_s7 = smov 128   ;;  %s367_s8 = smov 8  }
 0x210   :  { %248 = dma.vmem_to_hbm [thread:$0]  %s243_s5, 512, %s432_s3, [#allocation4], %s366_s7, %s366_s7, %s367_s8  }
 0x211   :  { %363 = dma.done.wait [#allocation4], 512  }
 0x212   :  { %364 = vsyncadd [#allocation4], 4294966784 }
 0x213   :  { %252 = vsyncpa [#allocation4], 1 }

</bundles_post_ra>
